<compile_context>
chip_gen: v5e
topology: v5e:2x2
jax: 0.10.0
libtpu: 0.0.40
codegen_flags: <defaults>
</compile_context>

<pallas_src>
import jax
import jax.numpy as jnp
from jax.experimental import pallas as pl
from jax.experimental.pallas import tpu as pltpu

_LANE = 128
_ROW_BLK = 8 * _LANE   # 1024-row granularity keeps every block (8,128)-aligned
_TM_MAX = 4096         # safe for v5e's 16 MiB scoped-VMEM default and v7x's 64 MiB VMEM


def _make_kernel(p, out_rows_per_slice):
    """Kernel specialized on the static fc1 pack factor P and per-slice output rows."""

    def kernel(xp_ref, w1_ref, b1_ref, w2_ref, b2_ref, w3t_ref, o_ref):
        # xp_ref: (tm/P, P*D) packed rows (lane-dense when P*D == 128)
        # w1_ref: (P*D, P*H1) block-diagonal fc1 weight (resident every grid step)
        h1 = jnp.dot(xp_ref[...], w1_ref[...], preferred_element_type=jnp.float32)
        h1 = jnp.maximum(h1 + b1_ref[...], 0.0)        # f32 bias + ReLU on the VPU
        h1 = h1.astype(w2_ref.dtype)                   # feed the fc2 MXU at weight precision

        w2 = w2_ref[...]
        b2 = b2_ref[...]
        w3 = w3t_ref[...]                              # (1, H2) f32
        h1w = w1_ref.shape[1] // p                     # = H1 (static)

        # Lane-block j of the packed fc1 result holds rows {P*r + j} of the tile; every
        # op below is per-row, so the slices are processed independently and the row
        # permutation is undone (cheaply) on the output side in the wrapper.
        for j in range(p):                             # static unroll (p <= 8)
            h1_j = h1[:, j * h1w:(j + 1) * h1w]        # lane-aligned static slice (free)
            h2_j = jnp.dot(h1_j, w2, preferred_element_type=jnp.float32)
            h2_j = jnp.maximum(h2_j + b2, 0.0)         # (tm/P, H2) f32
            # fc3: VPU broadcast-mul + XLU lane reduce (no 1-column MXU push); b3 is
            # added in the wrapper.
            s_j = jnp.sum(h2_j * w3, axis=-1, keepdims=True)       # (tm/P, 1) f32
            s_row = jnp.transpose(s_j)                              # (1, tm/P): one XLU transpose
            for g in range(out_rows_per_slice):                     # lane-aligned slices
                o_ref[pl.ds(j * out_rows_per_slice + g, 1), :] = (
                    s_row[:, g * _LANE:(g + 1) * _LANE].astype(o_ref.dtype))

    return kernel


def _block_diag(w, p):
    """(D, F) -> (P*D, P*F) block-diagonal replication of w."""
    if p == 1:
        return w
    d, f = w.shape
    eye = jnp.eye(p, dtype=w.dtype)
    return (eye[:, None, :, None] * w[None, :, None, :]).reshape(p * d, p * f)


def linear_similarity_discriminator(x, params, *, tm=_TM_MAX, use_bf16=True):
    """x: (B, C, H, W). Returns (B*C, 1, H, 1), matching the PyTorch module."""
    B, C, H, W = x.shape
    N = B * C * H
    D = W
    w1, b1, w2, b2, w3, b3 = params
    H1, H2 = w1.shape[1], w2.shape[1]

    # fc1 pack factor: pack P rows (P*D <= 128 lanes) per packed row.  P=8 for the
    # module's input_dim=16; falls back to P=1 (plain path) when D doesn't divide 128.
    P = min(8, 128 // D) if (D < 128 and 128 % D == 0) else 1

    # Row tiling: multiples of 1024 keep every block (8,128)-aligned.  Cap at 4096
    # (v5e 16 MiB scoped-VMEM default / v7x 64 MiB physical).  When there are >= 2048
    # rows, force at least two grid steps so v7x's two TensorCores both get work.
    tm = max(_ROW_BLK, min(_TM_MAX, (tm // _ROW_BLK) * _ROW_BLK))
    n_min = pl.cdiv(N, _ROW_BLK) * _ROW_BLK
    if n_min >= 2 * _ROW_BLK:
        tm = min(tm, pl.cdiv(n_min // 2, _ROW_BLK) * _ROW_BLK)
    else:
        tm = _ROW_BLK
    n_pad = pl.cdiv(N, tm) * tm
    n_tiles = n_pad // tm

    # bf16 MXU inputs by default (f32 accumulation everywhere); the elementwise path
    # stays f32, so v5e's bf16-less VPU is unaffected.
    mxu_dtype = jnp.bfloat16 if use_bf16 else x.dtype

    x2d = x.reshape(N, D).astype(mxu_dtype)
    if n_pad != N:
        x2d = jnp.pad(x2d, ((0, n_pad - N), (0, 0)))   # padded rows: bias-only garbage, sliced off
    # Consecutive-row packing is a FREE contiguous reshape: packed row m holds original
    # rows P*m .. P*m+P-1 side by side on the lane axis.
    xp = x2d.reshape(n_pad // P, P * D)

    w1_bd = _block_diag(w1.astype(mxu_dtype), P)                        # (P*D, P*H1)
    b1_t = jnp.tile(b1.reshape(1, H1).astype(jnp.float32), (1, P))      # (1, P*H1)
    w2_c = w2.astype(mxu_dtype)
    b2_c = b2.reshape(1, H2).astype(jnp.float32)
    w3_t = w3.reshape(1, H2).astype(jnp.float32)

    out_rows_per_slice = (tm // P) // _LANE
    kernel = _make_kernel(P, out_rows_per_slice)

    out2d = pl.pallas_call(
        kernel,
        out_shape=jax.ShapeDtypeStruct((n_pad // _LANE, _LANE), jnp.float32),
        grid_spec=pltpu.PrefetchScalarGridSpec(
            num_scalar_prefetch=0,
            grid=(n_tiles,),
            in_specs=[
                pl.BlockSpec((tm // P, P * D), lambda i: (i, 0)),   # packed x tile (lane-dense)
                pl.BlockSpec((P * D, P * H1), lambda i: (0, 0)),    # block-diag W1 (resident)
                pl.BlockSpec((1, P * H1), lambda i: (0, 0)),        # b1 tiled
                pl.BlockSpec((H1, H2), lambda i: (0, 0)),           # W2 (resident)
                pl.BlockSpec((1, H2), lambda i: (0, 0)),            # b2
                pl.BlockSpec((1, H2), lambda i: (0, 0)),            # W3^T (1, 64)
            ],
            out_specs=pl.BlockSpec((tm // _LANE, _LANE), lambda i: (i, 0)),
        ),
        compiler_params=pltpu.CompilerParams(
            # Row axis is embarrassingly parallel -> grid steps shard across v7x's 2 TCs.
            dimension_semantics=("parallel",)),
    )(xp, w1_bd, b1_t, w2_c, b2_c, w3_t)

    # Undo the per-tile slice-major row ordering produced by fc1 packing.  This touches
    # only 4 B/row (the scalar outputs).  Then add b3 and apply view(-1, 1, shape, 1).
    flat = out2d.reshape(n_tiles, P, tm // P)
    flat = jnp.transpose(flat, (0, 2, 1)).reshape(-1)
    return (flat[:N] + jnp.reshape(b3.astype(jnp.float32), ())).reshape(-1, 1, H, 1)


def init_params(key, input_dim):
    """Deterministic synthetic init matching nn.Linear shapes (stored transposed as
    (in, out) so the kernel computes x @ W)."""
    k1, k2, k3, k4, k5, k6 = jax.random.split(key, 6)
    w1 = jax.random.normal(k1, (input_dim, 128), jnp.float32) * 0.1
    b1 = jax.random.normal(k2, (1, 128), jnp.float32) * 0.1
    w2 = jax.random.normal(k3, (128, 64), jnp.float32) * 0.1
    b2 = jax.random.normal(k4, (1, 64), jnp.float32) * 0.1
    w3 = jax.random.normal(k5, (64, 1), jnp.float32) * 0.1
    b3 = jax.random.normal(k6, (1, 1), jnp.float32) * 0.1
    return (w1, b1, w2, b2, w3, b3)


def reference_forward(x, params):
    """Pure-JAX reference mirroring the PyTorch forward."""
    w1, b1, w2, b2, w3, b3 = params
    B, C, H, W = x.shape
    v = x.reshape(-1, W)
    v = jnp.maximum(v @ w1 + b1, 0.0)
    v = jnp.maximum(v @ w2 + b2, 0.0)
    v = v @ w3 + b3
    return v.reshape(-1, 1, H, 1)


if __name__ == "__main__":
    key = jax.random.PRNGKey(0)
    kx, kp, kx2, kx3, kp3 = jax.random.split(key, 5)

    # Primary shape consistent with the module: input_dim = 16.
    B, C, H, W = 2, 4, 16, 16
    x = jax.random.normal(kx, (B, C, H, W), jnp.float32)
    params = init_params(kp, W)
    ref = reference_forward(x, params)

    # Default path: bf16 MXU inputs, fc1 packing (P=8).  Tolerance per bf16 mantissa.
    out = jax.block_until_ready(linear_similarity_discriminator(x, params))
    assert out.shape == (B * C, 1, H, 1), out.shape
    assert jnp.allclose(out, ref, atol=5e-2, rtol=5e-2), "bf16 default mismatch vs reference"

    # f32 MXU path (tight tolerance) validates packing / permutation / store indexing.
    out_f32 = jax.block_until_ready(
        linear_similarity_discriminator(x, params, use_bf16=False))
    assert jnp.allclose(out_f32, ref, atol=1e-5, rtol=1e-5), "f32 mismatch vs reference"

    # Ragged, multi-tile path: N = 1200 rows -> tm = 1024, grid = (2,).
    B2, C2, S2, W2 = 2, 2, 300, 16
    x2 = jax.random.normal(kx2, (B2, C2, S2, W2), jnp.float32)
    ref2 = reference_forward(x2, params)
    out2 = jax.block_until_ready(linear_similarity_discriminator(x2, params))
    assert out2.shape == (B2 * C2, 1, S2, 1), out2.shape
    assert jnp.allclose(out2, ref2, atol=5e-2, rtol=5e-2), "ragged mismatch vs reference"

    # Fallback path: input_dim does not divide 128 -> no fc1 packing (P = 1).
    B3, C3, S3, W3 = 2, 2, 8, 20
    x3 = jax.random.normal(kx3, (B3, C3, S3, W3), jnp.float32)
    params3 = init_params(kp3, W3)
    ref3 = reference_forward(x3, params3)
    out3 = jax.block_until_ready(
        linear_similarity_discriminator(x3, params3, use_bf16=False))
    assert out3.shape == (B3 * C3, 1, S3, 1), out3.shape
    assert jnp.allclose(out3, ref3, atol=1e-5, rtol=1e-5), "fallback (P=1) mismatch vs reference"

    print("KERNEL_OK")
</pallas_src>

<mosaic_0001>
module attributes {stable_mosaic.version = 11 : i64} {
  func.func @kernel(%arg0: i32, %arg1: memref<128x128xbf16, #tpu.memory_space<vmem>>, %arg2: memref<128x1024xbf16, #tpu.memory_space<vmem>>, %arg3: memref<1x1024xf32, #tpu.memory_space<vmem>>, %arg4: memref<128x64xbf16, #tpu.memory_space<vmem>>, %arg5: memref<1x64xf32, #tpu.memory_space<vmem>>, %arg6: memref<1x64xf32, #tpu.memory_space<vmem>>, %arg7: memref<8x128xf32, #tpu.memory_space<vmem>>) attributes {dimension_semantics = [#tpu.dimension_semantics<parallel>], iteration_bounds = array<i64: 1>, scalar_prefetch = 0 : i64, scratch_operands = 0 : i64, tpu.core_type = #tpu.core_type<tc>, window_params = [{transform_indices = @transform_0, window_bounds = array<i64: 128, 128>}, {pipeline_mode = #tpu.pipeline_mode<synchronous>, transform_indices = @transform_1, window_bounds = array<i64: 128, 1024>}, {pipeline_mode = #tpu.pipeline_mode<synchronous>, transform_indices = @transform_2, window_bounds = array<i64: 1, 1024>}, {pipeline_mode = #tpu.pipeline_mode<synchronous>, transform_indices = @transform_3, window_bounds = array<i64: 128, 64>}, {pipeline_mode = #tpu.pipeline_mode<synchronous>, transform_indices = @transform_4, window_bounds = array<i64: 1, 64>}, {pipeline_mode = #tpu.pipeline_mode<synchronous>, transform_indices = @transform_5, window_bounds = array<i64: 1, 64>}, {transform_indices = @transform_6, window_bounds = array<i64: 8, 128>}]} {
    %c0 = arith.constant 0 : index
    %c0_0 = arith.constant 0 : index
    %0 = vector.load %arg1[%c0, %c0_0] : memref<128x128xbf16, #tpu.memory_space<vmem>>, vector<128x128xbf16>
    %c0_1 = arith.constant 0 : index
    %c0_2 = arith.constant 0 : index
    %1 = vector.load %arg2[%c0_1, %c0_2] : memref<128x1024xbf16, #tpu.memory_space<vmem>>, vector<128x1024xbf16>
    %cst = arith.constant dense<0.000000e+00> : vector<128x1024xf32>
    %2 = tpu.matmul %0, %1, %cst {dimension_numbers = #tpu.dot_dimension_numbers<[1], [0], [0], [1], [0, 0, 1, 1], [], []>} : vector<128x128xbf16>, vector<128x1024xbf16>, vector<128x1024xf32> -> vector<128x1024xf32>
    %c0_3 = arith.constant 0 : index
    %c0_4 = arith.constant 0 : index
    %3 = vector.load %arg3[%c0_3, %c0_4] : memref<1x1024xf32, #tpu.memory_space<vmem>>, vector<1x1024xf32>
    %4 = vector.broadcast %3 : vector<1x1024xf32> to vector<128x1024xf32>
    %5 = arith.addf %2, %4 : vector<128x1024xf32>
    %cst_5 = arith.constant 0.000000e+00 : f32
    %6 = vector.broadcast %cst_5 : f32 to vector<128x1024xf32>
    %7 = arith.maximumf %5, %6 : vector<128x1024xf32>
    %8 = arith.truncf %7 : vector<128x1024xf32> to vector<128x1024xbf16>
    %c0_6 = arith.constant 0 : index
    %c0_7 = arith.constant 0 : index
    %9 = vector.load %arg4[%c0_6, %c0_7] : memref<128x64xbf16, #tpu.memory_space<vmem>>, vector<128x64xbf16>
    %c0_8 = arith.constant 0 : index
    %c0_9 = arith.constant 0 : index
    %10 = vector.load %arg5[%c0_8, %c0_9] : memref<1x64xf32, #tpu.memory_space<vmem>>, vector<1x64xf32>
    %c0_10 = arith.constant 0 : index
    %c0_11 = arith.constant 0 : index
    %11 = vector.load %arg6[%c0_10, %c0_11] : memref<1x64xf32, #tpu.memory_space<vmem>>, vector<1x64xf32>
    %12 = vector.extract_strided_slice %8 {offsets = [0, 0], sizes = [128, 128], strides = [1, 1]} : vector<128x1024xbf16> to vector<128x128xbf16>
    %cst_12 = arith.constant dense<0.000000e+00> : vector<128x64xf32>
    %13 = tpu.matmul %12, %9, %cst_12 {dimension_numbers = #tpu.dot_dimension_numbers<[1], [0], [0], [1], [0, 0, 1, 1], [], []>} : vector<128x128xbf16>, vector<128x64xbf16>, vector<128x64xf32> -> vector<128x64xf32>
    %14 = vector.broadcast %10 : vector<1x64xf32> to vector<128x64xf32>
    %15 = arith.addf %13, %14 : vector<128x64xf32>
    %cst_13 = arith.constant 0.000000e+00 : f32
    %16 = vector.broadcast %cst_13 : f32 to vector<128x64xf32>
    %17 = arith.maximumf %15, %16 : vector<128x64xf32>
    %18 = vector.broadcast %11 : vector<1x64xf32> to vector<128x64xf32>
    %19 = arith.mulf %17, %18 : vector<128x64xf32>
    %cst_14 = arith.constant dense<0.000000e+00> : vector<128xf32>
    %20 = vector.multi_reduction <add>, %19, %cst_14 [1] : vector<128x64xf32> to vector<128xf32>
    %21 = vector.shape_cast %20 : vector<128xf32> to vector<128x1xf32>
    %22 = tpu.transpose %21, [1, 0] : vector<128x1xf32> -> vector<1x128xf32>
    %c0_15 = arith.constant 0 : index
    %c0_16 = arith.constant 0 : index
    %23 = vector.load %arg7[%c0_15, %c0_16] : memref<8x128xf32, #tpu.memory_space<vmem>>, vector<1x128xf32>
    tpu.vector_store %arg7[%c0_15, %c0_16], %22 {strides = array<i32>} : memref<8x128xf32, #tpu.memory_space<vmem>>, vector<1x128xf32>,
    %24 = vector.extract_strided_slice %8 {offsets = [0, 128], sizes = [128, 128], strides = [1, 1]} : vector<128x1024xbf16> to vector<128x128xbf16>
    %cst_17 = arith.constant dense<0.000000e+00> : vector<128x64xf32>
    %25 = tpu.matmul %24, %9, %cst_17 {dimension_numbers = #tpu.dot_dimension_numbers<[1], [0], [0], [1], [0, 0, 1, 1], [], []>} : vector<128x128xbf16>, vector<128x64xbf16>, vector<128x64xf32> -> vector<128x64xf32>
    %26 = vector.broadcast %10 : vector<1x64xf32> to vector<128x64xf32>
    %27 = arith.addf %25, %26 : vector<128x64xf32>
    %cst_18 = arith.constant 0.000000e+00 : f32
    %28 = vector.broadcast %cst_18 : f32 to vector<128x64xf32>
    %29 = arith.maximumf %27, %28 : vector<128x64xf32>
    %30 = vector.broadcast %11 : vector<1x64xf32> to vector<128x64xf32>
    %31 = arith.mulf %29, %30 : vector<128x64xf32>
    %cst_19 = arith.constant dense<0.000000e+00> : vector<128xf32>
    %32 = vector.multi_reduction <add>, %31, %cst_19 [1] : vector<128x64xf32> to vector<128xf32>
    %33 = vector.shape_cast %32 : vector<128xf32> to vector<128x1xf32>
    %34 = tpu.transpose %33, [1, 0] : vector<128x1xf32> -> vector<1x128xf32>
    %c1 = arith.constant 1 : index
    %c0_20 = arith.constant 0 : index
    %35 = vector.load %arg7[%c1, %c0_20] : memref<8x128xf32, #tpu.memory_space<vmem>>, vector<1x128xf32>
    tpu.vector_store %arg7[%c1, %c0_20], %34 {strides = array<i32>} : memref<8x128xf32, #tpu.memory_space<vmem>>, vector<1x128xf32>,
    %36 = vector.extract_strided_slice %8 {offsets = [0, 256], sizes = [128, 128], strides = [1, 1]} : vector<128x1024xbf16> to vector<128x128xbf16>
    %cst_21 = arith.constant dense<0.000000e+00> : vector<128x64xf32>
    %37 = tpu.matmul %36, %9, %cst_21 {dimension_numbers = #tpu.dot_dimension_numbers<[1], [0], [0], [1], [0, 0, 1, 1], [], []>} : vector<128x128xbf16>, vector<128x64xbf16>, vector<128x64xf32> -> vector<128x64xf32>
    %38 = vector.broadcast %10 : vector<1x64xf32> to vector<128x64xf32>
    %39 = arith.addf %37, %38 : vector<128x64xf32>
    %cst_22 = arith.constant 0.000000e+00 : f32
    %40 = vector.broadcast %cst_22 : f32 to vector<128x64xf32>
    %41 = arith.maximumf %39, %40 : vector<128x64xf32>
    %42 = vector.broadcast %11 : vector<1x64xf32> to vector<128x64xf32>
    %43 = arith.mulf %41, %42 : vector<128x64xf32>
    %cst_23 = arith.constant dense<0.000000e+00> : vector<128xf32>
    %44 = vector.multi_reduction <add>, %43, %cst_23 [1] : vector<128x64xf32> to vector<128xf32>
    %45 = vector.shape_cast %44 : vector<128xf32> to vector<128x1xf32>
    %46 = tpu.transpose %45, [1, 0] : vector<128x1xf32> -> vector<1x128xf32>
    %c2 = arith.constant 2 : index
    %c0_24 = arith.constant 0 : index
    %47 = vector.load %arg7[%c2, %c0_24] : memref<8x128xf32, #tpu.memory_space<vmem>>, vector<1x128xf32>
    tpu.vector_store %arg7[%c2, %c0_24], %46 {strides = array<i32>} : memref<8x128xf32, #tpu.memory_space<vmem>>, vector<1x128xf32>,
    %48 = vector.extract_strided_slice %8 {offsets = [0, 384], sizes = [128, 128], strides = [1, 1]} : vector<128x1024xbf16> to vector<128x128xbf16>
    %cst_25 = arith.constant dense<0.000000e+00> : vector<128x64xf32>
    %49 = tpu.matmul %48, %9, %cst_25 {dimension_numbers = #tpu.dot_dimension_numbers<[1], [0], [0], [1], [0, 0, 1, 1], [], []>} : vector<128x128xbf16>, vector<128x64xbf16>, vector<128x64xf32> -> vector<128x64xf32>
    %50 = vector.broadcast %10 : vector<1x64xf32> to vector<128x64xf32>
    %51 = arith.addf %49, %50 : vector<128x64xf32>
    %cst_26 = arith.constant 0.000000e+00 : f32
    %52 = vector.broadcast %cst_26 : f32 to vector<128x64xf32>
    %53 = arith.maximumf %51, %52 : vector<128x64xf32>
    %54 = vector.broadcast %11 : vector<1x64xf32> to vector<128x64xf32>
    %55 = arith.mulf %53, %54 : vector<128x64xf32>
    %cst_27 = arith.constant dense<0.000000e+00> : vector<128xf32>
    %56 = vector.multi_reduction <add>, %55, %cst_27 [1] : vector<128x64xf32> to vector<128xf32>
    %57 = vector.shape_cast %56 : vector<128xf32> to vector<128x1xf32>
    %58 = tpu.transpose %57, [1, 0] : vector<128x1xf32> -> vector<1x128xf32>
    %c3 = arith.constant 3 : index
    %c0_28 = arith.constant 0 : index
    %59 = vector.load %arg7[%c3, %c0_28] : memref<8x128xf32, #tpu.memory_space<vmem>>, vector<1x128xf32>
    tpu.vector_store %arg7[%c3, %c0_28], %58 {strides = array<i32>} : memref<8x128xf32, #tpu.memory_space<vmem>>, vector<1x128xf32>,
    %60 = vector.extract_strided_slice %8 {offsets = [0, 512], sizes = [128, 128], strides = [1, 1]} : vector<128x1024xbf16> to vector<128x128xbf16>
    %cst_29 = arith.constant dense<0.000000e+00> : vector<128x64xf32>
    %61 = tpu.matmul %60, %9, %cst_29 {dimension_numbers = #tpu.dot_dimension_numbers<[1], [0], [0], [1], [0, 0, 1, 1], [], []>} : vector<128x128xbf16>, vector<128x64xbf16>, vector<128x64xf32> -> vector<128x64xf32>
    %62 = vector.broadcast %10 : vector<1x64xf32> to vector<128x64xf32>
    %63 = arith.addf %61, %62 : vector<128x64xf32>
    %cst_30 = arith.constant 0.000000e+00 : f32
    %64 = vector.broadcast %cst_30 : f32 to vector<128x64xf32>
    %65 = arith.maximumf %63, %64 : vector<128x64xf32>
    %66 = vector.broadcast %11 : vector<1x64xf32> to vector<128x64xf32>
    %67 = arith.mulf %65, %66 : vector<128x64xf32>
    %cst_31 = arith.constant dense<0.000000e+00> : vector<128xf32>
    %68 = vector.multi_reduction <add>, %67, %cst_31 [1] : vector<128x64xf32> to vector<128xf32>
    %69 = vector.shape_cast %68 : vector<128xf32> to vector<128x1xf32>
    %70 = tpu.transpose %69, [1, 0] : vector<128x1xf32> -> vector<1x128xf32>
    %c4 = arith.constant 4 : index
    %c0_32 = arith.constant 0 : index
    %71 = vector.load %arg7[%c4, %c0_32] : memref<8x128xf32, #tpu.memory_space<vmem>>, vector<1x128xf32>
    tpu.vector_store %arg7[%c4, %c0_32], %70 {strides = array<i32>} : memref<8x128xf32, #tpu.memory_space<vmem>>, vector<1x128xf32>,
    %72 = vector.extract_strided_slice %8 {offsets = [0, 640], sizes = [128, 128], strides = [1, 1]} : vector<128x1024xbf16> to vector<128x128xbf16>
    %cst_33 = arith.constant dense<0.000000e+00> : vector<128x64xf32>
    %73 = tpu.matmul %72, %9, %cst_33 {dimension_numbers = #tpu.dot_dimension_numbers<[1], [0], [0], [1], [0, 0, 1, 1], [], []>} : vector<128x128xbf16>, vector<128x64xbf16>, vector<128x64xf32> -> vector<128x64xf32>
    %74 = vector.broadcast %10 : vector<1x64xf32> to vector<128x64xf32>
    %75 = arith.addf %73, %74 : vector<128x64xf32>
    %cst_34 = arith.constant 0.000000e+00 : f32
    %76 = vector.broadcast %cst_34 : f32 to vector<128x64xf32>
    %77 = arith.maximumf %75, %76 : vector<128x64xf32>
    %78 = vector.broadcast %11 : vector<1x64xf32> to vector<128x64xf32>
    %79 = arith.mulf %77, %78 : vector<128x64xf32>
    %cst_35 = arith.constant dense<0.000000e+00> : vector<128xf32>
    %80 = vector.multi_reduction <add>, %79, %cst_35 [1] : vector<128x64xf32> to vector<128xf32>
    %81 = vector.shape_cast %80 : vector<128xf32> to vector<128x1xf32>
    %82 = tpu.transpose %81, [1, 0] : vector<128x1xf32> -> vector<1x128xf32>
    %c5 = arith.constant 5 : index
    %c0_36 = arith.constant 0 : index
    %83 = vector.load %arg7[%c5, %c0_36] : memref<8x128xf32, #tpu.memory_space<vmem>>, vector<1x128xf32>
    tpu.vector_store %arg7[%c5, %c0_36], %82 {strides = array<i32>} : memref<8x128xf32, #tpu.memory_space<vmem>>, vector<1x128xf32>,
    %84 = vector.extract_strided_slice %8 {offsets = [0, 768], sizes = [128, 128], strides = [1, 1]} : vector<128x1024xbf16> to vector<128x128xbf16>
    %cst_37 = arith.constant dense<0.000000e+00> : vector<128x64xf32>
    %85 = tpu.matmul %84, %9, %cst_37 {dimension_numbers = #tpu.dot_dimension_numbers<[1], [0], [0], [1], [0, 0, 1, 1], [], []>} : vector<128x128xbf16>, vector<128x64xbf16>, vector<128x64xf32> -> vector<128x64xf32>
    %86 = vector.broadcast %10 : vector<1x64xf32> to vector<128x64xf32>
    %87 = arith.addf %85, %86 : vector<128x64xf32>
    %cst_38 = arith.constant 0.000000e+00 : f32
    %88 = vector.broadcast %cst_38 : f32 to vector<128x64xf32>
    %89 = arith.maximumf %87, %88 : vector<128x64xf32>
    %90 = vector.broadcast %11 : vector<1x64xf32> to vector<128x64xf32>
    %91 = arith.mulf %89, %90 : vector<128x64xf32>
    %cst_39 = arith.constant dense<0.000000e+00> : vector<128xf32>
    %92 = vector.multi_reduction <add>, %91, %cst_39 [1] : vector<128x64xf32> to vector<128xf32>
    %93 = vector.shape_cast %92 : vector<128xf32> to vector<128x1xf32>
    %94 = tpu.transpose %93, [1, 0] : vector<128x1xf32> -> vector<1x128xf32>
    %c6 = arith.constant 6 : index
    %c0_40 = arith.constant 0 : index
    %95 = vector.load %arg7[%c6, %c0_40] : memref<8x128xf32, #tpu.memory_space<vmem>>, vector<1x128xf32>
    tpu.vector_store %arg7[%c6, %c0_40], %94 {strides = array<i32>} : memref<8x128xf32, #tpu.memory_space<vmem>>, vector<1x128xf32>,
    %96 = vector.extract_strided_slice %8 {offsets = [0, 896], sizes = [128, 128], strides = [1, 1]} : vector<128x1024xbf16> to vector<128x128xbf16>
    %cst_41 = arith.constant dense<0.000000e+00> : vector<128x64xf32>
    %97 = tpu.matmul %96, %9, %cst_41 {dimension_numbers = #tpu.dot_dimension_numbers<[1], [0], [0], [1], [0, 0, 1, 1], [], []>} : vector<128x128xbf16>, vector<128x64xbf16>, vector<128x64xf32> -> vector<128x64xf32>
    %98 = vector.broadcast %10 : vector<1x64xf32> to vector<128x64xf32>
    %99 = arith.addf %97, %98 : vector<128x64xf32>
    %cst_42 = arith.constant 0.000000e+00 : f32
    %100 = vector.broadcast %cst_42 : f32 to vector<128x64xf32>
    %101 = arith.maximumf %99, %100 : vector<128x64xf32>
    %102 = vector.broadcast %11 : vector<1x64xf32> to vector<128x64xf32>
    %103 = arith.mulf %101, %102 : vector<128x64xf32>
    %cst_43 = arith.constant dense<0.000000e+00> : vector<128xf32>
    %104 = vector.multi_reduction <add>, %103, %cst_43 [1] : vector<128x64xf32> to vector<128xf32>
    %105 = vector.shape_cast %104 : vector<128xf32> to vector<128x1xf32>
    %106 = tpu.transpose %105, [1, 0] : vector<128x1xf32> -> vector<1x128xf32>
    %c7 = arith.constant 7 : index
    %c0_44 = arith.constant 0 : index
    %107 = vector.load %arg7[%c7, %c0_44] : memref<8x128xf32, #tpu.memory_space<vmem>>, vector<1x128xf32>
    tpu.vector_store %arg7[%c7, %c0_44], %106 {strides = array<i32>} : memref<8x128xf32, #tpu.memory_space<vmem>>, vector<1x128xf32>,
    return
  }
  func.func @transform_0(%arg0: i32) -> (i32, i32) {
    %c0_i32 = arith.constant 0 : i32
    %c0_i32_0 = arith.constant 0 : i32
    return %arg0, %c0_i32 : i32, i32
  }
  func.func @transform_1(%arg0: i32) -> (i32, i32) {
    %c0_i32 = arith.constant 0 : i32
    %c0_i32_0 = arith.constant 0 : i32
    %c0_i32_1 = arith.constant 0 : i32
    return %c0_i32, %c0_i32_0 : i32, i32
  }
  func.func @transform_2(%arg0: i32) -> (i32, i32) {
    %c0_i32 = arith.constant 0 : i32
    %c0_i32_0 = arith.constant 0 : i32
    %c0_i32_1 = arith.constant 0 : i32
    return %c0_i32, %c0_i32_0 : i32, i32
  }
  func.func @transform_3(%arg0: i32) -> (i32, i32) {
    %c0_i32 = arith.constant 0 : i32
    %c0_i32_0 = arith.constant 0 : i32
    %c0_i32_1 = arith.constant 0 : i32
    return %c0_i32, %c0_i32_0 : i32, i32
  }
  func.func @transform_4(%arg0: i32) -> (i32, i32) {
    %c0_i32 = arith.constant 0 : i32
    %c0_i32_0 = arith.constant 0 : i32
    %c0_i32_1 = arith.constant 0 : i32
    return %c0_i32, %c0_i32_0 : i32, i32
  }
  func.func @transform_5(%arg0: i32) -> (i32, i32) {
    %c0_i32 = arith.constant 0 : i32
    %c0_i32_0 = arith.constant 0 : i32
    %c0_i32_1 = arith.constant 0 : i32
    return %c0_i32, %c0_i32_0 : i32, i32
  }
  func.func @transform_6(%arg0: i32) -> (i32, i32) {
    %c0_i32 = arith.constant 0 : i32
    %c0_i32_0 = arith.constant 0 : i32
    return %arg0, %c0_i32 : i32, i32
  }
}

</mosaic_0001>

<bundles_post_ra>
// kernel: tpu_custom_call.1
= control target key start
LH: loop header
LB: loop body
LE: loop exit
PB: predicated region body
PF: predicated region fallthrough
CT: control target
= control target key end

     0   :  { %11 = vsyncpa [#allocation3], 0  ;;  %s4511_s0 = inlined_call_operand.vmem [shape: bf16[128,128], index: 0, kind: input, shape index: {}]   ;;  %s4512_s1 = inlined_call_operand.hbm [shape: bf16[128,1024], index: 1, kind: input, shape index: {}]   ;;  %s4513_s2 = inlined_call_operand.vmem [shape: f32[1,1024], index: 2, kind: input, shape index: {}]   ;;  %s4514_s3 = inlined_call_operand.vmem [shape: bf16[128,64], index: 3, kind: input, shape index: {}]   ;;  %s4515_s4 = inlined_call_operand.vmem [shape: f32[1,64], index: 4, kind: input, shape index: {}]   ;;  %s4516_s5 = inlined_call_operand.vmem [shape: f32[1,64], index: 5, kind: input, shape index: {}]   ;;  %s4517_s6 = inlined_call_operand.hbm [shape: f32[8,128], index: 6, kind: output, shape index: {}]  }
   0x1   :  { %12 = vsyncpa [#allocation4], 0  ;;  %s19_s23 = sshll.u32 %s4512_s1, 4  ;;  %s3258_s24 = smov [#allocation2]   ;;  %s20_s23 = int_to_ptr.hbm [resolvable:$true] %s19_s23 }
   0x2   :  { %s21_s25 = sshll.u32 %s3258_s24, 4  ;;  %s3259_s26 = smov 512   ;;  %s22_s25 = int_to_ptr.vmem [resolvable:$true] %s21_s25 }
   0x3   :  { %s3260_s27 = smov 32  }
   0x4   :  { %27 = dma.hbm_to_vmem [thread:$0]  %s20_s23, 8192, %s22_s25, [#allocation3], %s3259_s26, %s3259_s26, %s3260_s27  }
   0x5   :  { %3254 = dma.done.wait [#allocation3], 8192  }
   0x6   :  { %3255 = vsyncadd [#allocation3], 4294959104  ;;  %v3054_v0 = vld [vmem:[#allocation2 + $0x1c0] sm:$0xf]  ;;  %v3180_v2 = vld [vmem:[#allocation2 + $0x1c4] sm:$0xf] }
   0x7   :  { %v3184_v1 = vld [vmem:[#allocation2 + $0x1dc] sm:$0xf0]  ;;  %v3056_v4 = vld [vmem:[#allocation2 + $0x1e0] sm:$0xf0]  ;;  %v3062_v5 = vld [vmem:[#allocation2 + $0x1c8] sm:$0xf] }
   0x8   :  { %v3055_v3 = vor.u32 %v3184_v1, %v3054_v0  ;;  %v3185_v6 = vld [vmem:[#allocation2 + $0x1e4] sm:$0xf0]  ;;  %v3059_v7 = vor.u32 %v3180_v2, %v3056_v4  ;;  %v3181_v9 = vld [vmem:[#allocation2 + $0x1cc] sm:$0xf]  ;;  %v3022_v11 = vld [vmem:[#allocation2 + $0x180] sm:$0xf] }
   0x9   :  { %v3063_v8 = vor.u32 %v3185_v6, %v3062_v5  ;;  %v3064_v10 = vld [vmem:[#allocation2 + $0x1e8] sm:$0xf0]  ;;  %v3176_v13 = vld [vmem:[#allocation2 + $0x19c] sm:$0xf0]  ;;  %v3172_v14 = vld [vmem:[#allocation2 + $0x184] sm:$0xf] }
   0xa   :  { %506 = vmatpush.bf16.msra.mxu0 %v3055_v3  ;;  %v3067_v12 = vor.u32 %v3181_v9, %v3064_v10  ;;  %v3024_v15 = vld [vmem:[#allocation2 + $0x1a0] sm:$0xf0]  ;;  %555 = vmatpush.bf16.msra.mxu1 %v3059_v7  ;;  %v3023_v16 = vor.u32 %v3176_v13, %v3022_v11  ;;  %v3030_v18 = vld [vmem:[#allocation2 + $0x188] sm:$0xf]  ;;  %v3173_v20 = vld [vmem:[#allocation2 + $0x18c] sm:$0xf] }
   0xb   :  { %604 = vmatpush.bf16.msra.mxu2 %v3063_v8  ;;  %v3027_v17 = vor.u32 %v3172_v14, %v3024_v15  ;;  %v3177_v19 = vld [vmem:[#allocation2 + $0x1a4] sm:$0xf0]  ;;  %v3032_v22 = vld [vmem:[#allocation2 + $0x1a8] sm:$0xf0]  ;;  %v2990_v23 = vld [vmem:[#allocation2 + $0x140] sm:$0xf] }
   0xc   :  { %653 = vmatpush.bf16.msra.mxu3 %v3067_v12  ;;  %v3031_v21 = vor.u32 %v3177_v19, %v3030_v18  ;;  %v3168_v24 = vld [vmem:[#allocation2 + $0x15c] sm:$0xf0]  ;;  %v3035_v25 = vor.u32 %v3173_v20, %v3032_v22  ;;  %v3164_v26 = vld [vmem:[#allocation2 + $0x144] sm:$0xf]  ;;  %v2998_v28 = vld [vmem:[#allocation2 + $0x148] sm:$0xf] }
   0xd   :  { %v2992_v27 = vld [vmem:[#allocation2 + $0x160] sm:$0xf0]  ;;  %v2991_v29 = vor.u32 %v3168_v24, %v2990_v23  ;;  %v3169_v30 = vld [vmem:[#allocation2 + $0x164] sm:$0xf0]  ;;  %v3165_v31 = vld [vmem:[#allocation2 + $0x14c] sm:$0xf] }
   0xe   :  { %507 = vmatpush.bf16.msra.mxu0 %v3023_v16  ;;  %v3000_v32 = vld [vmem:[#allocation2 + $0x168] sm:$0xf0]  ;;  %556 = vmatpush.bf16.msra.mxu1 %v3027_v17  ;;  %v2995_v33 = vor.u32 %v3164_v26, %v2992_v27  ;;  %v2999_v34 = vor.u32 %v3169_v30, %v2998_v28  ;;  %v2958_v35 = vld [vmem:[#allocation2 + $0x100] sm:$0xf]  ;;  %v3156_v37 = vld [vmem:[#allocation2 + $0x104] sm:$0xf] }
   0xf   :  { %605 = vmatpush.bf16.msra.mxu2 %v3031_v21  ;;  %v3160_v36 = vld [vmem:[#allocation2 + $0x11c] sm:$0xf0]  ;;  %v3003_v38 = vor.u32 %v3165_v31, %v3000_v32  ;;  %v2960_v39 = vld [vmem:[#allocation2 + $0x120] sm:$0xf0]  ;;  %v2966_v40 = vld [vmem:[#allocation2 + $0x108] sm:$0xf] }
  0x10   :  { %654 = vmatpush.bf16.msra.mxu3 %v3035_v25  ;;  %v3161_v41 = vld [vmem:[#allocation2 + $0x124] sm:$0xf0]  ;;  %v3157_v42 = vld [vmem:[#allocation2 + $0x10c] sm:$0xf]  ;;  %v2959_v44 = vor.u32 %v3160_v36, %v2958_v35  ;;  %v2963_v45 = vor.u32 %v3156_v37, %v2960_v39  ;;  %v2926_v47 = vld [vmem:[#allocation2 + $0xc0] sm:$0xf] }
  0x11   :  { %v2968_v43 = vld [vmem:[#allocation2 + $0x128] sm:$0xf0]  ;;  %v2967_v46 = vor.u32 %v3161_v41, %v2966_v40  ;;  %v3152_v48 = vld [vmem:[#allocation2 + $0xdc] sm:$0xf0]  ;;  %v3148_v49 = vld [vmem:[#allocation2 + $0xc4] sm:$0xf] }
  0x12   :  { %508 = vmatpush.bf16.msra.mxu0 %v2991_v29  ;;  %557 = vmatpush.bf16.msra.mxu1 %v2995_v33  ;;  %v2971_v50 = vor.u32 %v3157_v42, %v2968_v43  ;;  %v2928_v51 = vld [vmem:[#allocation2 + $0xe0] sm:$0xf0]  ;;  %v2934_v52 = vld [vmem:[#allocation2 + $0xc8] sm:$0xf]  ;;  %v3149_v54 = vld [vmem:[#allocation2 + $0xcc] sm:$0xf]  ;;  %v2927_v56 = vor.u32 %v3152_v48, %v2926_v47 }
  0x13   :  { %606 = vmatpush.bf16.msra.mxu2 %v2999_v34  ;;  %v3153_v53 = vld [vmem:[#allocation2 + $0xe4] sm:$0xf0]  ;;  %v2936_v55 = vld [vmem:[#allocation2 + $0xe8] sm:$0xf0]  ;;  %v2931_v57 = vor.u32 %v3148_v49, %v2928_v51  ;;  %v2894_v59 = vld [vmem:[#allocation2 + $0x80] sm:$0xf] }
  0x14   :  { %655 = vmatpush.bf16.msra.mxu3 %v3003_v38  ;;  %v2935_v58 = vor.u32 %v3153_v53, %v2934_v52  ;;  %v3144_v60 = vld [vmem:[#allocation2 + $0x9c] sm:$0xf0]  ;;  %v3140_v61 = vld [vmem:[#allocation2 + $0x84] sm:$0xf]  ;;  %v2939_v62 = vor.u32 %v3149_v54, %v2936_v55  ;;  %v2902_v0 = vld [vmem:[#allocation2 + $0x88] sm:$0xf] }
  0x15   :  { %v2896_v63 = vld [vmem:[#allocation2 + $0xa0] sm:$0xf0]  ;;  %v3145_v1 = vld [vmem:[#allocation2 + $0xa4] sm:$0xf0]  ;;  %v3141_v2 = vld [vmem:[#allocation2 + $0x8c] sm:$0xf]  ;;  %v2895_v4 = vor.u32 %v3144_v60, %v2894_v59 }
  0x16   :  { %509 = vmatpush.bf16.msra.mxu0 %v2959_v44  ;;  %558 = vmatpush.bf16.msra.mxu1 %v2963_v45  ;;  %v2904_v3 = vld [vmem:[#allocation2 + $0xa8] sm:$0xf0]  ;;  %v2899_v5 = vor.u32 %v3140_v61, %v2896_v63  ;;  %v2903_v6 = vor.u32 %v3145_v1, %v2902_v0  ;;  %v2862_v7 = vld [vmem:[#allocation2 + $0x40] sm:$0xf]  ;;  %v3132_v9 = vld [vmem:[#allocation2 + $0x44] sm:$0xf] }
  0x17   :  { %607 = vmatpush.bf16.msra.mxu2 %v2967_v46  ;;  %v3136_v8 = vld [vmem:[#allocation2 + $0x5c] sm:$0xf0]  ;;  %v2907_v10 = vor.u32 %v3141_v2, %v2904_v3  ;;  %v2864_v11 = vld [vmem:[#allocation2 + $0x60] sm:$0xf0]  ;;  %v2870_v12 = vld [vmem:[#allocation2 + $0x48] sm:$0xf] }
  0x18   :  { %656 = vmatpush.bf16.msra.mxu3 %v2971_v50  ;;  %v3137_v13 = vld [vmem:[#allocation2 + $0x64] sm:$0xf0]  ;;  %v3133_v14 = vld [vmem:[#allocation2 + $0x4c] sm:$0xf]  ;;  %v2863_v16 = vor.u32 %v3136_v8, %v2862_v7  ;;  %v2830_v17 = vld [vmem:[#allocation2] sm:$0xf]  ;;  %v2867_v19 = vor.u32 %v3132_v9, %v2864_v11 }
  0x19   :  { %v2872_v15 = vld [vmem:[#allocation2 + $0x68] sm:$0xf0]  ;;  %v3128_v18 = vld [vmem:[#allocation2 + $0x1c] sm:$0xf0]  ;;  %v2871_v20 = vor.u32 %v3137_v13, %v2870_v12  ;;  %v3124_v21 = vld [vmem:[#allocation2 + $0x4] sm:$0xf] }
  0x1a   :  { %510 = vmatpush.bf16.msra.mxu0 %v2927_v56  ;;  %559 = vmatpush.bf16.msra.mxu1 %v2931_v57  ;;  %v2832_v22 = vld [vmem:[#allocation2 + $0x20] sm:$0xf0]  ;;  %v2875_v23 = vor.u32 %v3133_v14, %v2872_v15  ;;  %v2838_v24 = vld [vmem:[#allocation2 + $0x8] sm:$0xf]  ;;  %v3125_v26 = vld [vmem:[#allocation2 + $0xc] sm:$0xf]  ;;  %v2831_v30 = vor.u32 %v3128_v18, %v2830_v17 }
  0x1b   :  { %608 = vmatpush.bf16.msra.mxu2 %v2935_v58  ;;  %v3129_v25 = vld [vmem:[#allocation2 + $0x24] sm:$0xf0]  ;;  %v2840_v27 = vld [vmem:[#allocation2 + $0x28] sm:$0xf0]  ;;  %v3182_v28 = vld [vmem:[#allocation2 + $0x1d4] sm:$0xf]  ;;  %v2835_v31 = vor.u32 %v3124_v21, %v2832_v22 }
  0x1c   :  { %657 = vmatpush.bf16.msra.mxu3 %v2939_v62  ;;  %v3072_v29 = vld [vmem:[#allocation2 + $0x1f0] sm:$0xf0]  ;;  %v2839_v32 = vor.u32 %v3129_v25, %v2838_v24  ;;  %v2843_v33 = vor.u32 %v3125_v26, %v2840_v27  ;;  %v3303_v35 = vld [vmem:[%s4511_s0] sm:$0xff]  ;;  %v3070_v41 = vld [vmem:[#allocation2 + $0x1d0] sm:$0xf]  ;;  %vm1291_vm0 = vcmask 523264  }
  0x1d   :  { %v3075_v34 = vor.u32 %v3182_v28, %v3072_v29  ;;  %v3174_v36 = vld [vmem:[#allocation2 + $0x194] sm:$0xf]  ;;  %v3186_v43 = vld [vmem:[#allocation2 + $0x1ec] sm:$0xf0]  ;;  %v3078_v44 = vld [vmem:[#allocation2 + $0x1d8] sm:$0xf] }
  0x1e   :  { %511 = vmatpush.bf16.msra.mxu0 %v2895_v4  ;;  %560 = vmatpush.bf16.msra.mxu1 %v2899_v5  ;;  %v3040_v37 = vld [vmem:[#allocation2 + $0x1b0] sm:$0xf0]  ;;  %v3187_v45 = vld [vmem:[#allocation2 + $0x1f4] sm:$0xf0]  ;;  %v3071_v46 = vor.u32 %v3186_v43, %v3070_v41  ;;  %v3183_v48 = vld [vmem:[#allocation2 + $0x1dc] sm:$0xf] }
  0x1f   :  { %609 = vmatpush.bf16.msra.mxu2 %v2903_v6  ;;  %v3043_v38 = vor.u32 %v3174_v36, %v3040_v37  ;;  %v3166_v39 = vld [vmem:[#allocation2 + $0x154] sm:$0xf]  ;;  %v3079_v47 = vor.u32 %v3187_v45, %v3078_v44  ;;  %v3080_v49 = vld [vmem:[#allocation2 + $0x1f8] sm:$0xf0]  ;;  %v3312_v51 = vld [vmem:[%s4511_s0 + $0x8] sm:$0xff]  ;;  %s2786_s23 = sshll.u32 %s4517_s6, 4  ;;  %s2787_s23 = int_to_ptr.hbm [resolvable:$true] %s2786_s23 }
  0x20   :  { %658 = vmatpush.bf16.msra.mxu3 %v2907_v10  ;;  %v3008_v40 = vld [vmem:[#allocation2 + $0x170] sm:$0xf0]  ;;  %v3083_v50 = vor.u32 %v3183_v48, %v3080_v49  ;;  %v3038_v54 = vld [vmem:[#allocation2 + $0x190] sm:$0xf]  ;;  %v3046_v57 = vld [vmem:[#allocation2 + $0x198] sm:$0xf] }
  0x21   :  { %v3011_v42 = vor.u32 %v3166_v39, %v3008_v40  ;;  %v3158_v52 = vld [vmem:[#allocation2 + $0x114] sm:$0xf]  ;;  %v3178_v56 = vld [vmem:[#allocation2 + $0x1ac] sm:$0xf0]  ;;  %v3179_v58 = vld [vmem:[#allocation2 + $0x1b4] sm:$0xf0] }
  0x22   :  { %512 = vmatpush.bf16.msra.mxu0 %v2863_v16  ;;  %561 = vmatpush.bf16.msra.mxu1 %v2867_v19  ;;  %v2976_v53 = vld [vmem:[#allocation2 + $0x130] sm:$0xf0]  ;;  %v3039_v59 = vor.u32 %v3178_v56, %v3038_v54  ;;  %v3047_v60 = vor.u32 %v3179_v58, %v3046_v57  ;;  %v3175_v61 = vld [vmem:[#allocation2 + $0x19c] sm:$0xf]  ;;  %v3006_v3 = vld [vmem:[#allocation2 + $0x150] sm:$0xf] }
  0x23   :  { %610 = vmatpush.bf16.msra.mxu2 %v2871_v20  ;;  %v2979_v55 = vor.u32 %v3158_v52, %v2976_v53  ;;  %v3048_v62 = vld [vmem:[#allocation2 + $0x1b8] sm:$0xf0]  ;;  %v3321_v0 = vld [vmem:[%s4511_s0 + $0x10] sm:$0xff]  ;;  %v3014_v6 = vld [vmem:[#allocation2 + $0x158] sm:$0xf] }
  0x24   :  { %659 = vmatpush.bf16.msra.mxu3 %v2875_v23  ;;  %v3051_v63 = vor.u32 %v3175_v61, %v3048_v62  ;;  %v3150_v1 = vld [vmem:[#allocation2 + $0xd4] sm:$0xf]  ;;  %v3170_v5 = vld [vmem:[#allocation2 + $0x16c] sm:$0xf0]  ;;  %v3171_v7 = vld [vmem:[#allocation2 + $0x174] sm:$0xf0] }
  0x25   :  { %v2944_v2 = vld [vmem:[#allocation2 + $0xf0] sm:$0xf0]  ;;  %v3007_v8 = vor.u32 %v3170_v5, %v3006_v3  ;;  %v3015_v9 = vor.u32 %v3171_v7, %v3014_v6  ;;  %v3167_v10 = vld [vmem:[#allocation2 + $0x15c] sm:$0xf]  ;;  %v2974_v16 = vld [vmem:[#allocation2 + $0x110] sm:$0xf] }
  0x26   :  { %513 = vmatpush.bf16.msra.mxu0 %v2831_v30  ;;  %562 = vmatpush.bf16.msra.mxu1 %v2835_v31  ;;  %v2947_v4 = vor.u32 %v3150_v1, %v2944_v2  ;;  %v3016_v11 = vld [vmem:[#allocation2 + $0x178] sm:$0xf0]  ;;  %v3142_v14 = vld [vmem:[#allocation2 + $0x94] sm:$0xf]  ;;  %v3162_v18 = vld [vmem:[#allocation2 + $0x12c] sm:$0xf0] }
  0x27   :  { %611 = vmatpush.bf16.msra.mxu2 %v2839_v32  ;;  %v3019_v12 = vor.u32 %v3167_v10, %v3016_v11  ;;  %v3330_v13 = vld [vmem:[%s4511_s0 + $0x18] sm:$0xff]  ;;  %v2912_v15 = vld [vmem:[#allocation2 + $0xb0] sm:$0xf0]  ;;  %v2975_v21 = vor.u32 %v3162_v18, %v2974_v16  ;;  %v3339_v26 = vld [vmem:[%s4511_s0 + $0x20] sm:$0xff] }
  0x28   :  { %660 = vmatpush.bf16.msra.mxu3 %v2843_v33  ;;  %v2915_v17 = vor.u32 %v3142_v14, %v2912_v15  ;;  %v2982_v19 = vld [vmem:[#allocation2 + $0x118] sm:$0xf]  ;;  %v3159_v23 = vld [vmem:[#allocation2 + $0x11c] sm:$0xf]  ;;  %v3134_v27 = vld [vmem:[#allocation2 + $0x54] sm:$0xf] }
  0x29   :  { %514 = vmatmul.bf16.vlgmr.msra.gmra.mxu0 %v3303_v35  ;;  %563 = vmatmul.bf16.vlgmr.msra.gmra.mxu1 %v3303_v35  ;;  %v3163_v20 = vld [vmem:[#allocation2 + $0x134] sm:$0xf0]  ;;  %v2984_v24 = vld [vmem:[#allocation2 + $0x138] sm:$0xf0]  ;;  %v2880_v28 = vld [vmem:[#allocation2 + $0x70] sm:$0xf0] }
  0x2a   :  { %751 = vmatpush.bf16.msrb.mxu1 %v3075_v34  ;;  %612 = vmatmul.bf16.vlgmr.msra.gmra.mxu2 %v3303_v35  ;;  %v2983_v22 = vor.u32 %v3163_v20, %v2982_v19  ;;  %v2987_v25 = vor.u32 %v3159_v23, %v2984_v24  ;;  %v2942_v29 = vld [vmem:[#allocation2 + $0xd0] sm:$0xf]  ;;  %v2883_v30 = vor.u32 %v3134_v27, %v2880_v28  ;;  %v2950_v32 = vld [vmem:[#allocation2 + $0xd8] sm:$0xf]  ;;  %v3151_v37 = vld [vmem:[#allocation2 + $0xdc] sm:$0xf] }
  0x2b   :  { %661 = vmatmul.bf16.vlgmr.msra.gmra.mxu3 %v3303_v35  ;;  %702 = vmatpush.bf16.msrb.mxu0 %v3071_v46  ;;  %v3154_v31 = vld [vmem:[#allocation2 + $0xec] sm:$0xf0]  ;;  %v3155_v33 = vld [vmem:[#allocation2 + $0xf4] sm:$0xf0]  ;;  %v3348_v40 = vld [vmem:[%s4511_s0 + $0x28] sm:$0xff] }
  0x2c   :  { %800 = vmatpush.bf16.msrb.mxu2 %v3079_v47  ;;  %849 = vmatpush.bf16.msrb.mxu3 %v3083_v50  ;;  %v2943_v34 = vor.u32 %v3154_v31, %v2942_v29  ;;  %v2951_v36 = vor.u32 %v3155_v33, %v2950_v32  ;;  %v3126_v41 = vld [vmem:[#allocation2 + $0x14] sm:$0xf]  ;;  %v2910_v43 = vld [vmem:[#allocation2 + $0x90] sm:$0xf]  ;;  %v2918_v46 = vld [vmem:[#allocation2 + $0x98] sm:$0xf] }
  0x2d   :  { %v3146_v45 = vld [vmem:[#allocation2 + $0xac] sm:$0xf0]  ;;  %v3147_v47 = vld [vmem:[#allocation2 + $0xb4] sm:$0xf0]  ;;  %v3143_v50 = vld [vmem:[#allocation2 + $0x9c] sm:$0xf] }
  0x2e   :  { %752 = vmatpush.bf16.msrb.mxu1 %v3043_v38  ;;  %v2952_v38 = vld [vmem:[#allocation2 + $0xf8] sm:$0xf0]  ;;  %v2911_v48 = vor.u32 %v3146_v45, %v2910_v43  ;;  %v2919_v49 = vor.u32 %v3147_v47, %v2918_v46  ;;  %v2878_v53 = vld [vmem:[#allocation2 + $0x50] sm:$0xf]  ;;  %v2886_v56 = vld [vmem:[#allocation2 + $0x58] sm:$0xf] }
  0x2f   :  { %703 = vmatpush.bf16.msrb.mxu0 %v3039_v59  ;;  %v2955_v39 = vor.u32 %v3151_v37, %v2952_v38  ;;  %v2920_v52 = vld [vmem:[#allocation2 + $0xb8] sm:$0xf0]  ;;  %v3139_v57 = vld [vmem:[#allocation2 + $0x74] sm:$0xf0]  ;;  %v2846_v1 = vld [vmem:[#allocation2 + $0x10] sm:$0xf] }
  0x30   :  { %801 = vmatpush.bf16.msrb.mxu2 %v3047_v60  ;;  %850 = vmatpush.bf16.msrb.mxu3 %v3051_v63  ;;  %v2923_v54 = vor.u32 %v3143_v50, %v2920_v52  ;;  %v2887_v59 = vor.u32 %v3139_v57, %v2886_v56  ;;  %v3135_v60 = vld [vmem:[#allocation2 + $0x5c] sm:$0xf]  ;;  %v3357_v63 = vld [vmem:[%s4511_s0 + $0x30] sm:$0xff]  ;;  %v2854_v3 = vld [vmem:[#allocation2 + $0x18] sm:$0xf] }
  0x31   :  { %v2888_v61 = vld [vmem:[#allocation2 + $0x78] sm:$0xf0]  ;;  %v3130_v2 = vld [vmem:[#allocation2 + $0x2c] sm:$0xf0]  ;;  %v3131_v5 = vld [vmem:[#allocation2 + $0x34] sm:$0xf0] }
  0x32   :  { %753 = vmatpush.bf16.msrb.mxu1 %v3011_v42  ;;  %v2848_v42 = vld [vmem:[#allocation2 + $0x30] sm:$0xf0]  ;;  %v2891_v62 = vor.u32 %v3135_v60, %v2888_v61  ;;  %v3127_v6 = vld [vmem:[#allocation2 + $0x1c] sm:$0xf]  ;;  %v3389_v14 = vld [vmem:[%s4513_s2] sm:$0xff] }
  0x33   :  { %704 = vmatpush.bf16.msrb.mxu0 %v3007_v8  ;;  %v2851_v44 = vor.u32 %v3126_v41, %v2848_v42  ;;  %v2856_v7 = vld [vmem:[#allocation2 + $0x38] sm:$0xf0]  ;;  %v2855_v8 = vor.u32 %v3131_v5, %v2854_v3  ;;  %v3396_v15 = vperm.slane %v3389_v14, 0  ;;  %v3399_v16 = vperm.slane %v3389_v14, 1  ;;  %v3417_v31 = vld [vmem:[%s4514_s3 + $0x28] sm:$0xff] }
  0x34   :  { %802 = vmatpush.bf16.msrb.mxu2 %v3015_v9  ;;  %851 = vmatpush.bf16.msrb.mxu3 %v3019_v12  ;;  %v2859_v9 = vor.u32 %v3127_v6, %v2856_v7  ;;  %v3366_v10 = vld [vmem:[%s4514_s3 + $0x38] sm:$0xff]  ;;  %v3384_v12 = vld [vmem:[%s4514_s3 + $0x30] sm:$0xff]  ;;  %v3407_v23 = vperm.slane %v3389_v14, 2  ;;  %v3411_v24 = vperm.slane %v3389_v14, 3 }
  0x35   :  { %v3375_v11 = vld [vmem:[%s4511_s0 + $0x38] sm:$0xff] }
  0x36   :  { %754 = vmatpush.bf16.msrb.mxu1 %v2979_v55  ;;  %v3138_v55 = vld [vmem:[#allocation2 + $0x6c] sm:$0xf0] }
  0x37   :  { %705 = vmatpush.bf16.msrb.mxu0 %v2975_v21  ;;  %v2879_v58 = vor.u32 %v3138_v55, %v2878_v53 }
  0x38   :  { %803 = vmatpush.bf16.msrb.mxu2 %v2983_v22  ;;  %852 = vmatpush.bf16.msrb.mxu3 %v2987_v25 }
  0x39   :  { %519 = vmatmul.bf16.gmra.mxu0 %v3312_v51  ;;  %568 = vmatmul.bf16.gmra.mxu1 %v3312_v51 }
  0x3a   :  { %617 = vmatmul.bf16.gmra.mxu2 %v3312_v51  ;;  %755 = vmatpush.bf16.msrb.mxu1 %v2947_v4  ;;  %v2847_v4 = vor.u32 %v3130_v2, %v2846_v1 }
  0x3b   :  { %666 = vmatmul.bf16.gmra.mxu3 %v3312_v51  ;;  %706 = vmatpush.bf16.msrb.mxu0 %v2943_v34 }
  0x3c   :  { %804 = vmatpush.bf16.msrb.mxu2 %v2951_v36  ;;  %853 = vmatpush.bf16.msrb.mxu3 %v2955_v39 }
  0x3e   :  { %756 = vmatpush.bf16.msrb.mxu1 %v2915_v17 }
  0x3f   :  { %707 = vmatpush.bf16.msrb.mxu0 %v2911_v48 }
  0x40   :  { %805 = vmatpush.bf16.msrb.mxu2 %v2919_v49  ;;  %854 = vmatpush.bf16.msrb.mxu3 %v2923_v54 }
  0x42   :  { %757 = vmatpush.bf16.msrb.mxu1 %v2883_v30 }
  0x43   :  { %708 = vmatpush.bf16.msrb.mxu0 %v2879_v58 }
  0x44   :  { %806 = vmatpush.bf16.msrb.mxu2 %v2887_v59  ;;  %855 = vmatpush.bf16.msrb.mxu3 %v2891_v62 }
  0x46   :  { %758 = vmatpush.bf16.msrb.mxu1 %v2851_v44 }
  0x47   :  { %709 = vmatpush.bf16.msrb.mxu0 %v2847_v4 }
  0x48   :  { %807 = vmatpush.bf16.msrb.mxu2 %v2855_v8  ;;  %856 = vmatpush.bf16.msrb.mxu3 %v2859_v9 }
  0x49   :  { %524 = vmatmul.bf16.gmra.mxu0 %v3321_v0  ;;  %573 = vmatmul.bf16.gmra.mxu1 %v3321_v0 }
  0x4a   :  { %622 = vmatmul.bf16.gmra.mxu2 %v3321_v0  ;;  %1405 = vmatpush.bf16.msra.mxu1 %v3366_v10 }
  0x4b   :  { %671 = vmatmul.bf16.gmra.mxu3 %v3321_v0  ;;  %1207 = vmatpush.bf16.msra.mxu0 %v3366_v10 }
  0x4c   :  { %1615 = vmatpush.bf16.msra.mxu2 %v3366_v10  ;;  %1809 = vmatpush.bf16.msra.mxu3 %v3366_v10 }
  0x4e   :  { %1406 = vmatpush.bf16.msra.mxu1 %v3384_v12 }
  0x4f   :  { %1208 = vmatpush.bf16.msra.mxu0 %v3384_v12 }
  0x50   :  { %1616 = vmatpush.bf16.msra.mxu2 %v3384_v12  ;;  %1810 = vmatpush.bf16.msra.mxu3 %v3384_v12 }
  0x52   :  { %1407 = vmatpush.bf16.msra.mxu1 %v3417_v31 }
  0x53   :  { %1209 = vmatpush.bf16.msra.mxu0 %v3417_v31 }
  0x54   :  { %1617 = vmatpush.bf16.msra.mxu2 %v3417_v31  ;;  %1811 = vmatpush.bf16.msra.mxu3 %v3417_v31 }
  0x59   :  { %529 = vmatmul.bf16.gmra.mxu0 %v3330_v13  ;;  %578 = vmatmul.bf16.gmra.mxu1 %v3330_v13 }
  0x5a   :  { %627 = vmatmul.bf16.gmra.mxu2 %v3330_v13 }
  0x5b   :  { %676 = vmatmul.bf16.gmra.mxu3 %v3330_v13 }
  0x69   :  { %534 = vmatmul.bf16.gmra.mxu0 %v3339_v26  ;;  %583 = vmatmul.bf16.gmra.mxu1 %v3339_v26 }
  0x6a   :  { %632 = vmatmul.bf16.gmra.mxu2 %v3339_v26 }
  0x6b   :  { %681 = vmatmul.bf16.gmra.mxu3 %v3339_v26 }
  0x79   :  { %539 = vmatmul.bf16.gmra.mxu0 %v3348_v40  ;;  %588 = vmatmul.bf16.gmra.mxu1 %v3348_v40 }
  0x7a   :  { %637 = vmatmul.bf16.gmra.mxu2 %v3348_v40 }
  0x7b   :  { %686 = vmatmul.bf16.gmra.mxu3 %v3348_v40 }
  0x89   :  { %544 = vmatmul.bf16.gmra.mxu0 %v3357_v63  ;;  %593 = vmatmul.bf16.gmra.mxu1 %v3357_v63 }
  0x8a   :  { %642 = vmatmul.bf16.gmra.mxu2 %v3357_v63 }
  0x8b   :  { %691 = vmatmul.bf16.gmra.mxu3 %v3357_v63 }
  0x99   :  { %549 = vmatmul.bf16.gmra.mxu0 %v3375_v11  ;;  %598 = vmatmul.bf16.gmra.mxu1 %v3375_v11 }
  0x9a   :  { %647 = vmatmul.bf16.gmra.mxu2 %v3375_v11 }
  0x9b   :  { %696 = vmatmul.bf16.gmra.mxu3 %v3375_v11 }
  0xa6   :  { %v515_v17 = vpop.f32.mrf.mxu0  ;;  %v564_v19 = vpop.f32.mrf.mxu1 }
  0xa7   :  { %v516_v18 = vadd.f32 %v515_v17, %v3396_v15  ;;  %v565_v20 = vadd.f32 %v564_v19, %v3399_v16  ;;  %v3442_v17 = vld [vmem:[%s4514_s3 + $0x20] sm:$0xff] }
  0xa8   :  { %1408 = vmatpush.bf16.msra.mxu1 %v3442_v17  ;;  %1210 = vmatpush.bf16.msra.mxu0 %v3442_v17 }
  0xa9   :  { %v898_v21 = vmax.f32 %v516_v18, 0.0  ;;  %710 = vmatmul.bf16.vlgmr.msrb.gmra.mxu0 %v3303_v35  ;;  %v899_v22 = vmax.f32 %v565_v20, 0.0  ;;  %759 = vmatmul.bf16.vlgmr.msrb.gmra.mxu1 %v3303_v35 }
  0xaa   :  { %808 = vmatmul.bf16.vlgmr.msrb.gmra.mxu2 %v3303_v35  ;;  %1812 = vmatpush.bf16.msra.mxu3 %v3442_v17 }
  0xab   :  { %857 = vmatmul.bf16.vlgmr.msrb.gmra.mxu3 %v3303_v35  ;;  %v1026_v25 = vpack.c.bf16 %v899_v22, %v898_v21  ;;  %1618 = vmatpush.bf16.msra.mxu2 %v3442_v17 }
  0xad   :  { %v613_v27 = vpop.f32.mrf.mxu2  ;;  %v1127_v43 = vunpack.c.l.b16 %v1026_v25  ;;  %v1373_v45 = vunpack.c.h.b16 %v1026_v25 }
  0xae   :  { %v614_v28 = vadd.f32 %v613_v27, %v3407_v23  ;;  %v662_v29 = vpop.f32.mrf.mxu3  ;;  %v517_v30 = vpop.f32.mrf.mxu0 }
  0xaf   :  { %v663_v32 = vadd.f32 %v662_v29, %v3411_v24  ;;  %v518_v33 = vadd.f32 %v517_v30, %v3396_v15  ;;  %v566_v34 = vpop.f32.mrf.mxu1 }
  0xb0   :  { %v900_v35 = vmax.f32 %v614_v28, 0.0  ;;  %v567_v36 = vadd.f32 %v566_v34, %v3399_v16 }
  0xb1   :  { %v901_v37 = vmax.f32 %v663_v32, 0.0  ;;  %v906_v38 = vmax.f32 %v518_v33, 0.0 }
  0xb2   :  { %v907_v39 = vmax.f32 %v567_v36, 0.0 }
  0xb3   :  { %v1027_v41 = vpack.c.bf16 %v901_v37, %v900_v35 }
  0xb4   :  { %v1030_v42 = vpack.c.bf16 %v907_v39, %v906_v38 }
  0xb5   :  { %v615_v44 = vpop.f32.mrf.mxu2  ;;  %v1583_v62 = vunpack.c.l.b16 %v1027_v41  ;;  %v1777_v1 = vunpack.c.h.b16 %v1027_v41 }
  0xb6   :  { %v1128_v46 = vunpack.c.l.b16 %v1030_v42  ;;  %v1374_v47 = vunpack.c.h.b16 %v1030_v42  ;;  %v616_v48 = vadd.f32 %v615_v44, %v3407_v23  ;;  %v664_v49 = vpop.f32.mrf.mxu3  ;;  %v520_v50 = vpop.f32.mrf.mxu0 }
  0xb7   :  { %v665_v52 = vadd.f32 %v664_v49, %v3411_v24  ;;  %v521_v53 = vadd.f32 %v520_v50, %v3396_v15  ;;  %v569_v54 = vpop.f32.mrf.mxu1 }
  0xb8   :  { %v3429_v55 = vpack.c.b16 %v1128_v46, %v1127_v43  ;;  %v3431_v56 = vpack.c.b16 %v1374_v47, %v1373_v45  ;;  %v908_v57 = vmax.f32 %v616_v48, 0.0  ;;  %v570_v58 = vadd.f32 %v569_v54, %v3399_v16 }
  0xb9   :  { %v909_v59 = vmax.f32 %v665_v52, 0.0  ;;  %v914_v60 = vmax.f32 %v521_v53, 0.0  ;;  %715 = vmatmul.bf16.gmra.mxu0 %v3312_v51  ;;  %764 = vmatmul.bf16.gmra.mxu1 %v3312_v51 }
  0xba   :  { %v915_v61 = vmax.f32 %v570_v58, 0.0  ;;  %813 = vmatmul.bf16.gmra.mxu2 %v3312_v51 }
  0xbb   :  { %v1031_v2 = vpack.c.bf16 %v909_v59, %v908_v57  ;;  %862 = vmatmul.bf16.gmra.mxu3 %v3312_v51 }
  0xbc   :  { %v1034_v3 = vpack.c.bf16 %v915_v61, %v914_v60 }
  0xbd   :  { %v1584_v4 = vunpack.c.l.b16 %v1031_v2  ;;  %v1778_v5 = vunpack.c.h.b16 %v1031_v2  ;;  %v618_v6 = vpop.f32.mrf.mxu2 }
  0xbe   :  { %v619_v7 = vadd.f32 %v618_v6, %v3407_v23  ;;  %v667_v8 = vpop.f32.mrf.mxu3  ;;  %v522_v9 = vpop.f32.mrf.mxu0  ;;  %v1129_v33 = vunpack.c.l.b16 %v1034_v3  ;;  %v1375_v35 = vunpack.c.h.b16 %v1034_v3  ;;  %v3471_v3 = vld [vmem:[%s4514_s3 + $0x18] sm:$0xff] }
  0xbf   :  { %v3444_v18 = vpack.c.b16 %v1584_v4, %v1583_v62  ;;  %v3446_v19 = vpack.c.b16 %v1778_v5, %v1777_v1  ;;  %v668_v20 = vadd.f32 %v667_v8, %v3411_v24  ;;  %v523_v51 = vadd.f32 %v522_v9, %v3396_v15  ;;  %v571_v21 = vpop.f32.mrf.mxu1  ;;  %1409 = vmatpush.bf16.msra.mxu1 %v3471_v3 }
  0xc0   :  { %v916_v22 = vmax.f32 %v619_v7, 0.0  ;;  %v572_v25 = vadd.f32 %v571_v21, %v3399_v16  ;;  %1211 = vmatpush.bf16.msra.mxu0 %v3471_v3  ;;  %1619 = vmatpush.bf16.msra.mxu2 %v3471_v3 }
  0xc1   :  { %v917_v27 = vmax.f32 %v668_v20, 0.0  ;;  %v922_v28 = vmax.f32 %v523_v51, 0.0  ;;  %1813 = vmatpush.bf16.msra.mxu3 %v3471_v3 }
  0xc2   :  { %v923_v29 = vmax.f32 %v572_v25, 0.0 }
  0xc3   :  { %v1035_v30 = vpack.c.bf16 %v917_v27, %v916_v22 }
  0xc4   :  { %v1038_v32 = vpack.c.bf16 %v923_v29, %v922_v28 }
  0xc5   :  { %v620_v34 = vpop.f32.mrf.mxu2  ;;  %v1585_v53 = vunpack.c.l.b16 %v1035_v30  ;;  %v1779_v54 = vunpack.c.h.b16 %v1035_v30 }
  0xc6   :  { %v621_v36 = vadd.f32 %v620_v34, %v3407_v23  ;;  %v669_v37 = vpop.f32.mrf.mxu3  ;;  %v525_v38 = vpop.f32.mrf.mxu0  ;;  %v1130_v39 = vunpack.c.l.b16 %v1038_v32  ;;  %v1376_v41 = vunpack.c.h.b16 %v1038_v32 }
  0xc7   :  { %v670_v42 = vadd.f32 %v669_v37, %v3411_v24  ;;  %v526_v43 = vadd.f32 %v525_v38, %v3396_v15  ;;  %v574_v44 = vpop.f32.mrf.mxu1 }
  0xc8   :  { %v924_v45 = vmax.f32 %v621_v36, 0.0  ;;  %v575_v46 = vadd.f32 %v574_v44, %v3399_v16  ;;  %v3459_v47 = vpack.c.b16 %v1130_v39, %v1129_v33  ;;  %v3461_v48 = vpack.c.b16 %v1376_v41, %v1375_v35 }
  0xc9   :  { %v925_v49 = vmax.f32 %v670_v42, 0.0  ;;  %v930_v50 = vmax.f32 %v526_v43, 0.0  ;;  %720 = vmatmul.bf16.gmra.mxu0 %v3321_v0  ;;  %769 = vmatmul.bf16.gmra.mxu1 %v3321_v0 }
  0xca   :  { %v931_v52 = vmax.f32 %v575_v46, 0.0  ;;  %818 = vmatmul.bf16.gmra.mxu2 %v3321_v0 }
  0xcb   :  { %v1039_v57 = vpack.c.bf16 %v925_v49, %v924_v45  ;;  %867 = vmatmul.bf16.gmra.mxu3 %v3321_v0 }
  0xcc   :  { %v1042_v58 = vpack.c.bf16 %v931_v52, %v930_v50 }
  0xcd   :  { %v623_v59 = vpop.f32.mrf.mxu2  ;;  %v1586_v60 = vunpack.c.l.b16 %v1039_v57  ;;  %v1780_v61 = vunpack.c.h.b16 %v1039_v57 }
  0xce   :  { %v624_v62 = vadd.f32 %v623_v59, %v3407_v23  ;;  %v672_v1 = vpop.f32.mrf.mxu3  ;;  %v527_v2 = vpop.f32.mrf.mxu0  ;;  %v1131_v27 = vunpack.c.l.b16 %v1042_v58  ;;  %v1377_v29 = vunpack.c.h.b16 %v1042_v58 }
  0xcf   :  { %v673_v4 = vadd.f32 %v672_v1, %v3411_v24  ;;  %v528_v5 = vadd.f32 %v527_v2, %v3396_v15  ;;  %v576_v6 = vpop.f32.mrf.mxu1  ;;  %v3475_v7 = vpack.c.b16 %v1586_v60, %v1585_v53  ;;  %v3477_v0 = vpack.c.b16 %v1780_v61, %v1779_v54 }
  0xd0   :  { %v932_v8 = vmax.f32 %v624_v62, 0.0  ;;  %v577_v9 = vadd.f32 %v576_v6, %v3399_v16  ;;  %v3500_v62 = vld [vmem:[%s4514_s3 + $0x10] sm:$0xff] }
  0xd1   :  { %v933_v20 = vmax.f32 %v673_v4, 0.0  ;;  %v938_v51 = vmax.f32 %v528_v5, 0.0  ;;  %1410 = vmatpush.bf16.msra.mxu1 %v3500_v62  ;;  %1212 = vmatpush.bf16.msra.mxu0 %v3500_v62 }
  0xd2   :  { %v939_v21 = vmax.f32 %v577_v9, 0.0  ;;  %1620 = vmatpush.bf16.msra.mxu2 %v3500_v62  ;;  %1814 = vmatpush.bf16.msra.mxu3 %v3500_v62 }
  0xd3   :  { %v1043_v22 = vpack.c.bf16 %v933_v20, %v932_v8 }
  0xd4   :  { %v1046_v25 = vpack.c.bf16 %v939_v21, %v938_v51 }
  0xd5   :  { %v625_v28 = vpop.f32.mrf.mxu2  ;;  %v1587_v49 = vunpack.c.l.b16 %v1043_v22  ;;  %v1781_v50 = vunpack.c.h.b16 %v1043_v22 }
  0xd6   :  { %v626_v30 = vadd.f32 %v625_v28, %v3407_v23  ;;  %v674_v32 = vpop.f32.mrf.mxu3  ;;  %v530_v33 = vpop.f32.mrf.mxu0  ;;  %v1132_v34 = vunpack.c.l.b16 %v1046_v25  ;;  %v1378_v35 = vunpack.c.h.b16 %v1046_v25 }
  0xd7   :  { %v675_v36 = vadd.f32 %v674_v32, %v3411_v24  ;;  %v531_v37 = vadd.f32 %v530_v33, %v3396_v15  ;;  %v579_v38 = vpop.f32.mrf.mxu1 }
  0xd8   :  { %v940_v39 = vmax.f32 %v626_v30, 0.0  ;;  %v580_v41 = vadd.f32 %v579_v38, %v3399_v16  ;;  %v3488_v42 = vpack.c.b16 %v1132_v34, %v1131_v27  ;;  %v3490_v43 = vpack.c.b16 %v1378_v35, %v1377_v29 }
  0xd9   :  { %v941_v44 = vmax.f32 %v675_v36, 0.0  ;;  %v946_v45 = vmax.f32 %v531_v37, 0.0  ;;  %725 = vmatmul.bf16.gmra.mxu0 %v3330_v13  ;;  %774 = vmatmul.bf16.gmra.mxu1 %v3330_v13 }
  0xda   :  { %v947_v46 = vmax.f32 %v580_v41, 0.0  ;;  %823 = vmatmul.bf16.gmra.mxu2 %v3330_v13 }
  0xdb   :  { %v1047_v52 = vpack.c.bf16 %v941_v44, %v940_v39  ;;  %872 = vmatmul.bf16.gmra.mxu3 %v3330_v13 }
  0xdc   :  { %v1050_v53 = vpack.c.bf16 %v947_v46, %v946_v45 }
  0xdd   :  { %v628_v54 = vpop.f32.mrf.mxu2  ;;  %v1588_v57 = vunpack.c.l.b16 %v1047_v52  ;;  %v1782_v58 = vunpack.c.h.b16 %v1047_v52 }
  0xde   :  { %v629_v59 = vadd.f32 %v628_v54, %v3407_v23  ;;  %v677_v60 = vpop.f32.mrf.mxu3  ;;  %v532_v61 = vpop.f32.mrf.mxu0  ;;  %v1133_v25 = vunpack.c.l.b16 %v1050_v53  ;;  %v1379_v28 = vunpack.c.h.b16 %v1050_v53 }
  0xdf   :  { %v678_v1 = vadd.f32 %v677_v60, %v3411_v24  ;;  %v533_v2 = vadd.f32 %v532_v61, %v3396_v15  ;;  %v581_v4 = vpop.f32.mrf.mxu1  ;;  %v3504_v5 = vpack.c.b16 %v1588_v57, %v1587_v49  ;;  %v3506_v13 = vpack.c.b16 %v1782_v58, %v1781_v50 }
  0xe0   :  { %v948_v6 = vmax.f32 %v629_v59, 0.0  ;;  %v582_v8 = vadd.f32 %v581_v4, %v3399_v16 }
  0xe1   :  { %v949_v9 = vmax.f32 %v678_v1, 0.0  ;;  %v954_v20 = vmax.f32 %v533_v2, 0.0  ;;  %v3529_v2 = vld [vmem:[%s4514_s3 + $0x8] sm:$0xff] }
  0xe2   :  { %v955_v51 = vmax.f32 %v582_v8, 0.0  ;;  %1411 = vmatpush.bf16.msra.mxu1 %v3529_v2  ;;  %1213 = vmatpush.bf16.msra.mxu0 %v3529_v2 }
  0xe3   :  { %v1051_v21 = vpack.c.bf16 %v949_v9, %v948_v6  ;;  %1621 = vmatpush.bf16.msra.mxu2 %v3529_v2  ;;  %1815 = vmatpush.bf16.msra.mxu3 %v3529_v2 }
  0xe4   :  { %v1054_v22 = vpack.c.bf16 %v955_v51, %v954_v20 }
  0xe5   :  { %v630_v27 = vpop.f32.mrf.mxu2  ;;  %v1589_v50 = vunpack.c.l.b16 %v1051_v21  ;;  %v1783_v52 = vunpack.c.h.b16 %v1051_v21 }
  0xe6   :  { %v631_v29 = vadd.f32 %v630_v27, %v3407_v23  ;;  %v679_v30 = vpop.f32.mrf.mxu3  ;;  %v535_v32 = vpop.f32.mrf.mxu0  ;;  %v1134_v33 = vunpack.c.l.b16 %v1054_v22  ;;  %v1380_v34 = vunpack.c.h.b16 %v1054_v22 }
  0xe7   :  { %v680_v35 = vadd.f32 %v679_v30, %v3411_v24  ;;  %v536_v36 = vadd.f32 %v535_v32, %v3396_v15  ;;  %v584_v37 = vpop.f32.mrf.mxu1 }
  0xe8   :  { %v956_v38 = vmax.f32 %v631_v29, 0.0  ;;  %v585_v39 = vadd.f32 %v584_v37, %v3399_v16  ;;  %v3517_v41 = vpack.c.b16 %v1134_v33, %v1133_v25  ;;  %v3519_v44 = vpack.c.b16 %v1380_v34, %v1379_v28 }
  0xe9   :  { %v957_v45 = vmax.f32 %v680_v35, 0.0  ;;  %v962_v46 = vmax.f32 %v536_v36, 0.0  ;;  %730 = vmatmul.bf16.gmra.mxu0 %v3339_v26  ;;  %779 = vmatmul.bf16.gmra.mxu1 %v3339_v26 }
  0xea   :  { %v963_v49 = vmax.f32 %v585_v39, 0.0  ;;  %828 = vmatmul.bf16.gmra.mxu2 %v3339_v26 }
  0xeb   :  { %v1055_v53 = vpack.c.bf16 %v957_v45, %v956_v38  ;;  %877 = vmatmul.bf16.gmra.mxu3 %v3339_v26 }
  0xec   :  { %v1058_v54 = vpack.c.bf16 %v963_v49, %v962_v46 }
  0xed   :  { %v633_v57 = vpop.f32.mrf.mxu2  ;;  %v1590_v58 = vunpack.c.l.b16 %v1055_v53  ;;  %v1784_v59 = vunpack.c.h.b16 %v1055_v53 }
  0xee   :  { %v634_v60 = vadd.f32 %v633_v57, %v3407_v23  ;;  %v682_v61 = vpop.f32.mrf.mxu3  ;;  %v537_v1 = vpop.f32.mrf.mxu0  ;;  %v1135_v29 = vunpack.c.l.b16 %v1058_v54  ;;  %v1381_v32 = vunpack.c.h.b16 %v1058_v54 }
  0xef   :  { %v683_v4 = vadd.f32 %v682_v61, %v3411_v24  ;;  %v538_v6 = vadd.f32 %v537_v1, %v3396_v15  ;;  %v586_v8 = vpop.f32.mrf.mxu1  ;;  %v3533_v9 = vpack.c.b16 %v1590_v58, %v1589_v50  ;;  %v3535_v26 = vpack.c.b16 %v1784_v59, %v1783_v52 }
  0xf0   :  { %v964_v20 = vmax.f32 %v634_v60, 0.0  ;;  %v587_v51 = vadd.f32 %v586_v8, %v3399_v16 }
  0xf1   :  { %v965_v21 = vmax.f32 %v683_v4, 0.0  ;;  %v970_v22 = vmax.f32 %v538_v6, 0.0 }
  0xf2   :  { %v971_v25 = vmax.f32 %v587_v51, 0.0 }
  0xf3   :  { %v1059_v27 = vpack.c.bf16 %v965_v21, %v964_v20  ;;  %v3558_v21 = vld [vmem:[%s4514_s3] sm:$0xff] }
  0xf4   :  { %v1062_v28 = vpack.c.bf16 %v971_v25, %v970_v22  ;;  %1412 = vmatpush.bf16.msra.mxu1 %v3558_v21  ;;  %1214 = vmatpush.bf16.msra.mxu0 %v3558_v21 }
  0xf5   :  { %v635_v30 = vpop.f32.mrf.mxu2  ;;  %v1591_v58 = vunpack.c.l.b16 %v1059_v27  ;;  %v1785_v59 = vunpack.c.h.b16 %v1059_v27  ;;  %1622 = vmatpush.bf16.msra.mxu2 %v3558_v21  ;;  %1816 = vmatpush.bf16.msra.mxu3 %v3558_v21 }
  0xf6   :  { %v636_v33 = vadd.f32 %v635_v30, %v3407_v23  ;;  %v684_v34 = vpop.f32.mrf.mxu3  ;;  %v540_v35 = vpop.f32.mrf.mxu0  ;;  %v1136_v36 = vunpack.c.l.b16 %v1062_v28  ;;  %v1382_v37 = vunpack.c.h.b16 %v1062_v28 }
  0xf7   :  { %v685_v38 = vadd.f32 %v684_v34, %v3411_v24  ;;  %v541_v39 = vadd.f32 %v540_v35, %v3396_v15  ;;  %v589_v45 = vpop.f32.mrf.mxu1 }
  0xf8   :  { %v972_v46 = vmax.f32 %v636_v33, 0.0  ;;  %v590_v49 = vadd.f32 %v589_v45, %v3399_v16  ;;  %v3546_v50 = vpack.c.b16 %v1136_v36, %v1135_v29  ;;  %v3548_v52 = vpack.c.b16 %v1382_v37, %v1381_v32  ;;  %2213 = vmatpush.bf16.msrb.mxu1 %v3366_v10  ;;  %2019 = vmatpush.bf16.msrb.mxu0 %v3366_v10 }
  0xf9   :  { %v973_v53 = vmax.f32 %v685_v38, 0.0  ;;  %v978_v54 = vmax.f32 %v541_v39, 0.0  ;;  %735 = vmatmul.bf16.gmra.mxu0 %v3348_v40  ;;  %784 = vmatmul.bf16.gmra.mxu1 %v3348_v40 }
  0xfa   :  { %v979_v57 = vmax.f32 %v590_v49, 0.0  ;;  %833 = vmatmul.bf16.gmra.mxu2 %v3348_v40  ;;  %2617 = vmatpush.bf16.msrb.mxu3 %v3366_v10 }
  0xfb   :  { %v1063_v60 = vpack.c.bf16 %v973_v53, %v972_v46  ;;  %882 = vmatmul.bf16.gmra.mxu3 %v3348_v40  ;;  %2423 = vmatpush.bf16.msrb.mxu2 %v3366_v10 }
  0xfc   :  { %v1066_v61 = vpack.c.bf16 %v979_v57, %v978_v54  ;;  %2214 = vmatpush.bf16.msrb.mxu1 %v3384_v12  ;;  %2020 = vmatpush.bf16.msrb.mxu0 %v3384_v12 }
  0xfd   :  { %v638_v1 = vpop.f32.mrf.mxu2  ;;  %v1592_v4 = vunpack.c.l.b16 %v1063_v60  ;;  %v1786_v6 = vunpack.c.h.b16 %v1063_v60 }
  0xfe   :  { %v639_v8 = vadd.f32 %v638_v1, %v3407_v23  ;;  %v687_v20 = vpop.f32.mrf.mxu3  ;;  %v542_v51 = vpop.f32.mrf.mxu0  ;;  %v1137_v37 = vunpack.c.l.b16 %v1066_v61  ;;  %v1383_v39 = vunpack.c.h.b16 %v1066_v61  ;;  %2618 = vmatpush.bf16.msrb.mxu3 %v3384_v12 }
  0xff   :  { %v688_v22 = vadd.f32 %v687_v20, %v3411_v24  ;;  %v543_v25 = vadd.f32 %v542_v51, %v3396_v15  ;;  %v591_v27 = vpop.f32.mrf.mxu1  ;;  %v3562_v28 = vpack.c.b16 %v1592_v4, %v1591_v58  ;;  %v3564_v40 = vpack.c.b16 %v1786_v6, %v1785_v59  ;;  %2424 = vmatpush.bf16.msrb.mxu2 %v3384_v12 }
 0x100   :  { %v980_v29 = vmax.f32 %v639_v8, 0.0  ;;  %v592_v30 = vadd.f32 %v591_v27, %v3399_v16  ;;  %2215 = vmatpush.bf16.msrb.mxu1 %v3417_v31  ;;  %2021 = vmatpush.bf16.msrb.mxu0 %v3417_v31 }
 0x101   :  { %v981_v32 = vmax.f32 %v688_v22, 0.0  ;;  %v986_v33 = vmax.f32 %v543_v25, 0.0 }
 0x102   :  { %v987_v34 = vmax.f32 %v592_v30, 0.0  ;;  %2619 = vmatpush.bf16.msrb.mxu3 %v3417_v31 }
 0x103   :  { %v1067_v35 = vpack.c.bf16 %v981_v32, %v980_v29  ;;  %2425 = vmatpush.bf16.msrb.mxu2 %v3417_v31 }
 0x104   :  { %v1070_v36 = vpack.c.bf16 %v987_v34, %v986_v33  ;;  %2216 = vmatpush.bf16.msrb.mxu1 %v3442_v17  ;;  %2022 = vmatpush.bf16.msrb.mxu0 %v3442_v17 }
 0x105   :  { %v640_v38 = vpop.f32.mrf.mxu2  ;;  %v1593_v20 = vunpack.c.l.b16 %v1067_v35  ;;  %v1787_v51 = vunpack.c.h.b16 %v1067_v35 }
 0x106   :  { %v641_v45 = vadd.f32 %v640_v38, %v3407_v23  ;;  %v689_v46 = vpop.f32.mrf.mxu3  ;;  %v545_v49 = vpop.f32.mrf.mxu0  ;;  %v1138_v53 = vunpack.c.l.b16 %v1070_v36  ;;  %v1384_v54 = vunpack.c.h.b16 %v1070_v36  ;;  %2620 = vmatpush.bf16.msrb.mxu3 %v3442_v17 }
 0x107   :  { %v690_v57 = vadd.f32 %v689_v46, %v3411_v24  ;;  %v546_v58 = vadd.f32 %v545_v49, %v3396_v15  ;;  %v594_v59 = vpop.f32.mrf.mxu1  ;;  %2426 = vmatpush.bf16.msrb.mxu2 %v3442_v17 }
 0x108   :  { %v988_v10 = vmax.f32 %v641_v45, 0.0  ;;  %v595_v60 = vadd.f32 %v594_v59, %v3399_v16  ;;  %v3583_v61 = vpack.c.b16 %v1138_v53, %v1137_v37  ;;  %v3585_v1 = vpack.c.b16 %v1384_v54, %v1383_v39  ;;  %2217 = vmatpush.bf16.msrb.mxu1 %v3471_v3  ;;  %2023 = vmatpush.bf16.msrb.mxu0 %v3471_v3 }
 0x109   :  { %v989_v4 = vmax.f32 %v690_v57, 0.0  ;;  %v994_v6 = vmax.f32 %v546_v58, 0.0  ;;  %740 = vmatmul.bf16.gmra.mxu0 %v3357_v63  ;;  %789 = vmatmul.bf16.gmra.mxu1 %v3357_v63 }
 0x10a   :  { %v995_v8 = vmax.f32 %v595_v60, 0.0  ;;  %838 = vmatmul.bf16.gmra.mxu2 %v3357_v63  ;;  %2621 = vmatpush.bf16.msrb.mxu3 %v3471_v3 }
 0x10b   :  { %v1071_v22 = vpack.c.bf16 %v989_v4, %v988_v10  ;;  %887 = vmatmul.bf16.gmra.mxu3 %v3357_v63  ;;  %2427 = vmatpush.bf16.msrb.mxu2 %v3471_v3 }
 0x10c   :  { %v1074_v12 = vpack.c.bf16 %v995_v8, %v994_v6  ;;  %2218 = vmatpush.bf16.msrb.mxu1 %v3500_v62  ;;  %2024 = vmatpush.bf16.msrb.mxu0 %v3500_v62 }
 0x10d   :  { %v643_v25 = vpop.f32.mrf.mxu2  ;;  %v1594_v27 = vunpack.c.l.b16 %v1071_v22  ;;  %v1788_v29 = vunpack.c.h.b16 %v1071_v22 }
 0x10e   :  { %v644_v30 = vadd.f32 %v643_v25, %v3407_v23  ;;  %v692_v32 = vpop.f32.mrf.mxu3  ;;  %v547_v33 = vpop.f32.mrf.mxu0  ;;  %v1139_v54 = vunpack.c.l.b16 %v1074_v12  ;;  %v1385_v58 = vunpack.c.h.b16 %v1074_v12  ;;  %2622 = vmatpush.bf16.msrb.mxu3 %v3500_v62 }
 0x10f   :  { %v693_v34 = vadd.f32 %v692_v32, %v3411_v24  ;;  %v548_v63 = vadd.f32 %v547_v33, %v3396_v15  ;;  %v596_v35 = vpop.f32.mrf.mxu1  ;;  %v3599_v36 = vpack.c.b16 %v1594_v27, %v1593_v20  ;;  %v3601_v37 = vpack.c.b16 %v1788_v29, %v1787_v51  ;;  %2428 = vmatpush.bf16.msrb.mxu2 %v3500_v62 }
 0x110   :  { %v996_v38 = vmax.f32 %v644_v30, 0.0  ;;  %v597_v39 = vadd.f32 %v596_v35, %v3399_v16  ;;  %2219 = vmatpush.bf16.msrb.mxu1 %v3529_v2  ;;  %2025 = vmatpush.bf16.msrb.mxu0 %v3529_v2 }
 0x111   :  { %v997_v31 = vmax.f32 %v693_v34, 0.0  ;;  %v1002_v45 = vmax.f32 %v548_v63, 0.0 }
 0x112   :  { %v1003_v46 = vmax.f32 %v597_v39, 0.0  ;;  %2623 = vmatpush.bf16.msrb.mxu3 %v3529_v2 }
 0x113   :  { %v1075_v49 = vpack.c.bf16 %v997_v31, %v996_v38  ;;  %2429 = vmatpush.bf16.msrb.mxu2 %v3529_v2 }
 0x114   :  { %v1078_v53 = vpack.c.bf16 %v1003_v46, %v1002_v45  ;;  %2220 = vmatpush.bf16.msrb.mxu1 %v3558_v21  ;;  %2026 = vmatpush.bf16.msrb.mxu0 %v3558_v21 }
 0x115   :  { %v645_v57 = vpop.f32.mrf.mxu2  ;;  %v1595_v30 = vunpack.c.l.b16 %v1075_v49  ;;  %v1789_v32 = vunpack.c.h.b16 %v1075_v49 }
 0x116   :  { %v646_v59 = vadd.f32 %v645_v57, %v3407_v23  ;;  %v694_v10 = vpop.f32.mrf.mxu3  ;;  %v550_v60 = vpop.f32.mrf.mxu0  ;;  %v1140_v4 = vunpack.c.l.b16 %v1078_v53  ;;  %v1386_v17 = vunpack.c.h.b16 %v1078_v53  ;;  %2624 = vmatpush.bf16.msrb.mxu3 %v3558_v21 }
 0x117   :  { %v695_v6 = vadd.f32 %v694_v10, %v3411_v24  ;;  %v551_v8 = vadd.f32 %v550_v60, %v3396_v15  ;;  %v599_v20 = vpop.f32.mrf.mxu1  ;;  %2430 = vmatpush.bf16.msrb.mxu2 %v3558_v21  ;;  %v3644_v10 = vperm.slane %v3389_v14, 4 }
 0x118   :  { %v1004_v51 = vmax.f32 %v646_v59, 0.0  ;;  %v600_v22 = vadd.f32 %v599_v20, %v3399_v16  ;;  %v3616_v25 = vpack.c.b16 %v1140_v4, %v1139_v54  ;;  %v3618_v3 = vpack.c.b16 %v1386_v17, %v1385_v58 }
 0x119   :  { %v1005_v12 = vmax.f32 %v695_v6, 0.0  ;;  %v1010_v27 = vmax.f32 %v551_v8, 0.0  ;;  %745 = vmatmul.bf16.gmra.mxu0 %v3375_v11  ;;  %794 = vmatmul.bf16.gmra.mxu1 %v3375_v11  ;;  %v3647_v4 = vperm.slane %v3389_v14, 5 }
 0x11a   :  { %v1011_v29 = vmax.f32 %v600_v22, 0.0  ;;  %843 = vmatmul.bf16.gmra.mxu2 %v3375_v11 }
 0x11b   :  { %v1079_v33 = vpack.c.bf16 %v1005_v12, %v1004_v51  ;;  %892 = vmatmul.bf16.gmra.mxu3 %v3375_v11 }
 0x11c   :  { %v1082_v34 = vpack.c.bf16 %v1011_v29, %v1010_v27 }
 0x11d   :  { %v648_v63 = vpop.f32.mrf.mxu2  ;;  %v1596_v35 = vunpack.c.l.b16 %v1079_v33  ;;  %v1790_v62 = vunpack.c.h.b16 %v1079_v33 }
 0x11e   :  { %v649_v38 = vadd.f32 %v648_v63, %v3407_v23  ;;  %v697_v39 = vpop.f32.mrf.mxu3  ;;  %v552_v31 = vpop.f32.mrf.mxu0  ;;  %v1141_v17 = vunpack.c.l.b16 %v1082_v34 }
 0x11f   :  { %v698_v45 = vadd.f32 %v697_v39, %v3411_v24  ;;  %v553_v11 = vadd.f32 %v552_v31, %v3396_v15  ;;  %v601_v46 = vpop.f32.mrf.mxu1  ;;  %v3634_v49 = vpack.c.b16 %v1596_v35, %v1595_v30  ;;  %v3636_v53 = vpack.c.b16 %v1790_v62, %v1789_v32 }
 0x120   :  { %v1012_v54 = vmax.f32 %v649_v38, 0.0  ;;  %v602_v57 = vadd.f32 %v601_v46, %v3399_v16  ;;  %v1387_v16 = vunpack.c.h.b16 %v1082_v34  ;;  %v3665_v31 = vperm.slane %v3389_v14, 7 }
 0x121   :  { %v1013_v2 = vmax.f32 %v698_v45, 0.0  ;;  %v1018_v58 = vmax.f32 %v553_v11, 0.0 }
 0x122   :  { %v1019_v59 = vmax.f32 %v602_v57, 0.0 }
 0x123   :  { %v1083_v15 = vpack.c.bf16 %v1013_v2, %v1012_v54 }
 0x124   :  { %v1086_v60 = vpack.c.bf16 %v1019_v59, %v1018_v58 }
 0x125   :  { %v650_v6 = vpop.f32.mrf.mxu2  ;;  %v1597_v62 = vunpack.c.l.b16 %v1083_v15  ;;  %v1791_v38 = vunpack.c.h.b16 %v1083_v15 }
 0x126   :  { %v651_v8 = vadd.f32 %v650_v6, %v3407_v23  ;;  %v699_v20 = vpop.f32.mrf.mxu3  ;;  %v711_v51 = vpop.f32.mrf.mxu0  ;;  %v1142_v22 = vunpack.c.l.b16 %v1086_v60  ;;  %v1388_v12 = vunpack.c.h.b16 %v1086_v60 }
 0x127   :  { %v700_v21 = vadd.f32 %v699_v20, %v3411_v24  ;;  %v712_v27 = vadd.f32 %v711_v51, %v3644_v10  ;;  %v760_v29 = vpop.f32.mrf.mxu1  ;;  %v3661_v24 = vperm.slane %v3389_v14, 6 }
 0x128   :  { %v1020_v30 = vmax.f32 %v651_v8, 0.0  ;;  %v761_v32 = vadd.f32 %v760_v29, %v3647_v4  ;;  %v3653_v33 = vpack.c.b16 %v1142_v22, %v1141_v17  ;;  %v3655_v63 = vpack.c.b16 %v1388_v12, %v1387_v16 }
 0x129   :  { %v1021_v35 = vmax.f32 %v700_v21, 0.0  ;;  %v902_v34 = vmax.f32 %v712_v27, 0.0  ;;  %1215 = vmatmul.bf16.vlgmr.msra.gmra.mxu0 %v3429_v55  ;;  %1413 = vmatmul.bf16.vlgmr.msra.gmra.mxu1 %v3431_v56 }
 0x12a   :  { %v903_v23 = vmax.f32 %v761_v32, 0.0  ;;  %1623 = vmatmul.bf16.vlgmr.msra.gmra.mxu2 %v3444_v18 }
 0x12b   :  { %v1087_v39 = vpack.c.bf16 %v1021_v35, %v1020_v30  ;;  %1817 = vmatmul.bf16.vlgmr.msra.gmra.mxu3 %v3446_v19 }
 0x12c   :  { %v1028_v45 = vpack.c.bf16 %v903_v23, %v902_v34 }
 0x12d   :  { %v809_v11 = vpop.f32.mrf.mxu2  ;;  %v1598_v46 = vunpack.c.l.b16 %v1087_v39  ;;  %v1792_v55 = vunpack.c.h.b16 %v1087_v39 }
 0x12e   :  { %v810_v54 = vadd.f32 %v809_v11, %v3661_v24  ;;  %v858_v56 = vpop.f32.mrf.mxu3  ;;  %v713_v57 = vpop.f32.mrf.mxu0  ;;  %v1987_v20 = vunpack.c.l.b16 %v1028_v45  ;;  %v2181_v22 = vunpack.c.h.b16 %v1028_v45 }
 0x12f   :  { %v859_v18 = vadd.f32 %v858_v56, %v3665_v31  ;;  %v714_v2 = vadd.f32 %v713_v57, %v3644_v10  ;;  %v762_v58 = vpop.f32.mrf.mxu1  ;;  %v3670_v59 = vpack.c.b16 %v1598_v46, %v1597_v62  ;;  %v3672_v15 = vpack.c.b16 %v1792_v55, %v1791_v38 }
 0x130   :  { %v904_v19 = vmax.f32 %v810_v54, 0.0  ;;  %v763_v14 = vadd.f32 %v762_v58, %v3647_v4 }
 0x131   :  { %v905_v60 = vmax.f32 %v859_v18, 0.0  ;;  %v910_v17 = vmax.f32 %v714_v2, 0.0 }
 0x132   :  { %v911_v6 = vmax.f32 %v763_v14, 0.0 }
 0x133   :  { %v1029_v16 = vpack.c.bf16 %v905_v60, %v904_v19 }
 0x134   :  { %v1032_v8 = vpack.c.bf16 %v911_v6, %v910_v17 }
 0x135   :  { %v811_v51 = vpop.f32.mrf.mxu2  ;;  %v2391_v55 = vunpack.c.l.b16 %v1029_v16  ;;  %v2585_v54 = vunpack.c.h.b16 %v1029_v16 }
 0x136   :  { %v1988_v12 = vunpack.c.l.b16 %v1032_v8  ;;  %v2182_v21 = vunpack.c.h.b16 %v1032_v8  ;;  %v812_v27 = vadd.f32 %v811_v51, %v3661_v24  ;;  %v860_v29 = vpop.f32.mrf.mxu3  ;;  %v716_v30 = vpop.f32.mrf.mxu0 }
 0x137   :  { %v861_v32 = vadd.f32 %v860_v29, %v3665_v31  ;;  %v717_v35 = vadd.f32 %v716_v30, %v3644_v10  ;;  %v765_v34 = vpop.f32.mrf.mxu1 }
 0x138   :  { %v3678_v23 = vpack.c.b16 %v1988_v12, %v1987_v20  ;;  %v3680_v62 = vpack.c.b16 %v2182_v21, %v2181_v22  ;;  %v912_v38 = vmax.f32 %v812_v27, 0.0  ;;  %v766_v39 = vadd.f32 %v765_v34, %v3647_v4 }
 0x139   :  { %v913_v11 = vmax.f32 %v861_v32, 0.0  ;;  %v918_v45 = vmax.f32 %v717_v35, 0.0  ;;  %1220 = vmatmul.bf16.gmra.mxu0 %v3459_v47  ;;  %1418 = vmatmul.bf16.gmra.mxu1 %v3461_v48 }
 0x13a   :  { %v919_v46 = vmax.f32 %v766_v39, 0.0  ;;  %1628 = vmatmul.bf16.gmra.mxu2 %v3475_v7 }
 0x13b   :  { %v1033_v56 = vpack.c.bf16 %v913_v11, %v912_v38  ;;  %1822 = vmatmul.bf16.gmra.mxu3 %v3477_v0 }
 0x13c   :  { %v1036_v57 = vpack.c.bf16 %v919_v46, %v918_v45 }
 0x13d   :  { %v2392_v18 = vunpack.c.l.b16 %v1033_v56  ;;  %v2586_v2 = vunpack.c.h.b16 %v1033_v56  ;;  %v814_v58 = vpop.f32.mrf.mxu2 }
 0x13e   :  { %v815_v19 = vadd.f32 %v814_v58, %v3661_v24  ;;  %v863_v14 = vpop.f32.mrf.mxu3  ;;  %v718_v60 = vpop.f32.mrf.mxu0  ;;  %v1989_v21 = vunpack.c.l.b16 %v1036_v57  ;;  %v2183_v29 = vunpack.c.h.b16 %v1036_v57 }
 0x13f   :  { %v3688_v17 = vpack.c.b16 %v2392_v18, %v2391_v55  ;;  %v3690_v47 = vpack.c.b16 %v2586_v2, %v2585_v54  ;;  %v864_v48 = vadd.f32 %v863_v14, %v3665_v31  ;;  %v719_v7 = vadd.f32 %v718_v60, %v3644_v10  ;;  %v767_v6 = vpop.f32.mrf.mxu1 }
 0x140   :  { %v920_v16 = vmax.f32 %v815_v19, 0.0  ;;  %v768_v0 = vadd.f32 %v767_v6, %v3647_v4 }
 0x141   :  { %v921_v8 = vmax.f32 %v864_v48, 0.0  ;;  %v926_v20 = vmax.f32 %v719_v7, 0.0 }
 0x142   :  { %v927_v51 = vmax.f32 %v768_v0, 0.0 }
 0x143   :  { %v1037_v22 = vpack.c.bf16 %v921_v8, %v920_v16 }
 0x144   :  { %v1040_v12 = vpack.c.bf16 %v927_v51, %v926_v20 }
 0x145   :  { %v816_v27 = vpop.f32.mrf.mxu2  ;;  %v2393_v58 = vunpack.c.l.b16 %v1037_v22  ;;  %v2587_v19 = vunpack.c.h.b16 %v1037_v22 }
 0x146   :  { %v817_v30 = vadd.f32 %v816_v27, %v3661_v24  ;;  %v865_v32 = vpop.f32.mrf.mxu3  ;;  %v721_v35 = vpop.f32.mrf.mxu0  ;;  %v1990_v34 = vunpack.c.l.b16 %v1040_v12  ;;  %v2184_v38 = vunpack.c.h.b16 %v1040_v12 }
 0x147   :  { %v866_v39 = vadd.f32 %v865_v32, %v3665_v31  ;;  %v722_v11 = vadd.f32 %v721_v35, %v3644_v10  ;;  %v770_v45 = vpop.f32.mrf.mxu1 }
 0x148   :  { %v928_v46 = vmax.f32 %v817_v30, 0.0  ;;  %v771_v55 = vadd.f32 %v770_v45, %v3647_v4  ;;  %v3699_v54 = vpack.c.b16 %v1990_v34, %v1989_v21  ;;  %v3701_v56 = vpack.c.b16 %v2184_v38, %v2183_v29 }
 0x149   :  { %v929_v18 = vmax.f32 %v866_v39, 0.0  ;;  %v934_v57 = vmax.f32 %v722_v11, 0.0  ;;  %1225 = vmatmul.bf16.gmra.mxu0 %v3488_v42  ;;  %1423 = vmatmul.bf16.gmra.mxu1 %v3490_v43 }
 0x14a   :  { %v935_v2 = vmax.f32 %v771_v55, 0.0  ;;  %1633 = vmatmul.bf16.gmra.mxu2 %v3504_v5 }
 0x14b   :  { %v1041_v14 = vpack.c.bf16 %v929_v18, %v928_v46  ;;  %1827 = vmatmul.bf16.gmra.mxu3 %v3506_v13 }
 0x14c   :  { %v1044_v60 = vpack.c.bf16 %v935_v2, %v934_v57 }
 0x14d   :  { %v819_v48 = vpop.f32.mrf.mxu2  ;;  %v2394_v7 = vunpack.c.l.b16 %v1041_v14  ;;  %v2588_v6 = vunpack.c.h.b16 %v1041_v14 }
 0x14e   :  { %v820_v16 = vadd.f32 %v819_v48, %v3661_v24  ;;  %v868_v0 = vpop.f32.mrf.mxu3  ;;  %v723_v8 = vpop.f32.mrf.mxu0  ;;  %v1991_v32 = vunpack.c.l.b16 %v1044_v60  ;;  %v2185_v34 = vunpack.c.h.b16 %v1044_v60 }
 0x14f   :  { %v869_v42 = vadd.f32 %v868_v0, %v3665_v31  ;;  %v724_v20 = vadd.f32 %v723_v8, %v3644_v10  ;;  %v772_v43 = vpop.f32.mrf.mxu1  ;;  %v3710_v51 = vpack.c.b16 %v2394_v7, %v2393_v58  ;;  %v3712_v5 = vpack.c.b16 %v2588_v6, %v2587_v19 }
 0x150   :  { %v936_v22 = vmax.f32 %v820_v16, 0.0  ;;  %v773_v13 = vadd.f32 %v772_v43, %v3647_v4 }
 0x151   :  { %v937_v12 = vmax.f32 %v869_v42, 0.0  ;;  %v942_v21 = vmax.f32 %v724_v20, 0.0 }
 0x152   :  { %v943_v27 = vmax.f32 %v773_v13, 0.0 }
 0x153   :  { %v1045_v29 = vpack.c.bf16 %v937_v12, %v936_v22 }
 0x154   :  { %v1048_v30 = vpack.c.bf16 %v943_v27, %v942_v21 }
 0x155   :  { %v821_v35 = vpop.f32.mrf.mxu2  ;;  %v2395_v6 = vunpack.c.l.b16 %v1045_v29  ;;  %v2589_v16 = vunpack.c.h.b16 %v1045_v29 }
 0x156   :  { %v822_v38 = vadd.f32 %v821_v35, %v3661_v24  ;;  %v870_v39 = vpop.f32.mrf.mxu3  ;;  %v726_v11 = vpop.f32.mrf.mxu0  ;;  %v1992_v45 = vunpack.c.l.b16 %v1048_v30  ;;  %v2186_v46 = vunpack.c.h.b16 %v1048_v30 }
 0x157   :  { %v871_v55 = vadd.f32 %v870_v39, %v3665_v31  ;;  %v727_v18 = vadd.f32 %v726_v11, %v3644_v10  ;;  %v775_v57 = vpop.f32.mrf.mxu1 }
 0x158   :  { %v944_v2 = vmax.f32 %v822_v38, 0.0  ;;  %v776_v58 = vadd.f32 %v775_v57, %v3647_v4  ;;  %v3719_v19 = vpack.c.b16 %v1992_v45, %v1991_v32  ;;  %v3721_v14 = vpack.c.b16 %v2186_v46, %v2185_v34 }
 0x159   :  { %v945_v48 = vmax.f32 %v871_v55, 0.0  ;;  %v950_v60 = vmax.f32 %v727_v18, 0.0  ;;  %1230 = vmatmul.bf16.gmra.mxu0 %v3517_v41  ;;  %1428 = vmatmul.bf16.gmra.mxu1 %v3519_v44 }
 0x15a   :  { %v951_v7 = vmax.f32 %v776_v58, 0.0  ;;  %1638 = vmatmul.bf16.gmra.mxu2 %v3533_v9 }
 0x15b   :  { %v1049_v0 = vpack.c.bf16 %v945_v48, %v944_v2  ;;  %1832 = vmatmul.bf16.gmra.mxu3 %v3535_v26 }
 0x15c   :  { %v1052_v8 = vpack.c.bf16 %v951_v7, %v950_v60 }
 0x15d   :  { %v824_v42 = vpop.f32.mrf.mxu2  ;;  %v2396_v20 = vunpack.c.l.b16 %v1049_v0  ;;  %v2590_v43 = vunpack.c.h.b16 %v1049_v0 }
 0x15e   :  { %v825_v22 = vadd.f32 %v824_v42, %v3661_v24  ;;  %v873_v13 = vpop.f32.mrf.mxu3  ;;  %v728_v12 = vpop.f32.mrf.mxu0  ;;  %v1993_v39 = vunpack.c.l.b16 %v1052_v8  ;;  %v2187_v45 = vunpack.c.h.b16 %v1052_v8 }
 0x15f   :  { %v874_v41 = vadd.f32 %v873_v13, %v3665_v31  ;;  %v729_v21 = vadd.f32 %v728_v12, %v3644_v10  ;;  %v777_v44 = vpop.f32.mrf.mxu1  ;;  %v3730_v27 = vpack.c.b16 %v2396_v20, %v2395_v6  ;;  %v3732_v9 = vpack.c.b16 %v2590_v43, %v2589_v16 }
 0x160   :  { %v952_v29 = vmax.f32 %v825_v22, 0.0  ;;  %v778_v26 = vadd.f32 %v777_v44, %v3647_v4 }
 0x161   :  { %v953_v30 = vmax.f32 %v874_v41, 0.0  ;;  %v958_v32 = vmax.f32 %v729_v21, 0.0 }
 0x162   :  { %v959_v35 = vmax.f32 %v778_v26, 0.0 }
 0x163   :  { %v1053_v34 = vpack.c.bf16 %v953_v30, %v952_v29 }
 0x164   :  { %v1056_v38 = vpack.c.bf16 %v959_v35, %v958_v32 }
 0x165   :  { %v826_v11 = vpop.f32.mrf.mxu2  ;;  %v2397_v43 = vunpack.c.l.b16 %v1053_v34  ;;  %v2591_v22 = vunpack.c.h.b16 %v1053_v34 }
 0x166   :  { %v827_v46 = vadd.f32 %v826_v11, %v3661_v24  ;;  %v875_v55 = vpop.f32.mrf.mxu3  ;;  %v731_v18 = vpop.f32.mrf.mxu0  ;;  %v1994_v57 = vunpack.c.l.b16 %v1056_v38  ;;  %v2188_v2 = vunpack.c.h.b16 %v1056_v38 }
 0x167   :  { %v876_v58 = vadd.f32 %v875_v55, %v3665_v31  ;;  %v732_v48 = vadd.f32 %v731_v18, %v3644_v10  ;;  %v780_v60 = vpop.f32.mrf.mxu1 }
 0x168   :  { %v960_v7 = vmax.f32 %v827_v46, 0.0  ;;  %v781_v6 = vadd.f32 %v780_v60, %v3647_v4  ;;  %v3739_v16 = vpack.c.b16 %v1994_v57, %v1993_v39  ;;  %v3741_v0 = vpack.c.b16 %v2188_v2, %v2187_v45 }
 0x169   :  { %v961_v42 = vmax.f32 %v876_v58, 0.0  ;;  %v966_v8 = vmax.f32 %v732_v48, 0.0  ;;  %1235 = vmatmul.bf16.gmra.mxu0 %v3546_v50  ;;  %1433 = vmatmul.bf16.gmra.mxu1 %v3548_v52 }
 0x16a   :  { %v967_v20 = vmax.f32 %v781_v6, 0.0  ;;  %1643 = vmatmul.bf16.gmra.mxu2 %v3562_v28 }
 0x16b   :  { %v1057_v13 = vpack.c.bf16 %v961_v42, %v960_v7  ;;  %1837 = vmatmul.bf16.gmra.mxu3 %v3564_v40 }
 0x16c   :  { %v1060_v12 = vpack.c.bf16 %v967_v20, %v966_v8 }
 0x16d   :  { %v829_v41 = vpop.f32.mrf.mxu2  ;;  %v2398_v21 = vunpack.c.l.b16 %v1057_v13  ;;  %v2592_v44 = vunpack.c.h.b16 %v1057_v13 }
 0x16e   :  { %v830_v29 = vadd.f32 %v829_v41, %v3661_v24  ;;  %v878_v26 = vpop.f32.mrf.mxu3  ;;  %v733_v30 = vpop.f32.mrf.mxu0  ;;  %v1995_v55 = vunpack.c.l.b16 %v1060_v12  ;;  %v2189_v57 = vunpack.c.h.b16 %v1060_v12 }
 0x16f   :  { %v879_v50 = vadd.f32 %v878_v26, %v3665_v31  ;;  %v734_v32 = vadd.f32 %v733_v30, %v3644_v10  ;;  %v782_v52 = vpop.f32.mrf.mxu1  ;;  %v3750_v35 = vpack.c.b16 %v2398_v21, %v2397_v43  ;;  %v3752_v28 = vpack.c.b16 %v2592_v44, %v2591_v22 }
 0x170   :  { %v968_v34 = vmax.f32 %v830_v29, 0.0  ;;  %v783_v40 = vadd.f32 %v782_v52, %v3647_v4 }
 0x171   :  { %v969_v38 = vmax.f32 %v879_v50, 0.0  ;;  %v974_v39 = vmax.f32 %v734_v32, 0.0 }
 0x172   :  { %v975_v11 = vmax.f32 %v783_v40, 0.0 }
 0x173   :  { %v1061_v45 = vpack.c.bf16 %v969_v38, %v968_v34 }
 0x174   :  { %v1064_v46 = vpack.c.bf16 %v975_v11, %v974_v39 }
 0x175   :  { %v831_v18 = vpop.f32.mrf.mxu2  ;;  %v2399_v44 = vunpack.c.l.b16 %v1061_v45  ;;  %v2593_v29 = vunpack.c.h.b16 %v1061_v45 }
 0x176   :  { %v832_v2 = vadd.f32 %v831_v18, %v3661_v24  ;;  %v880_v58 = vpop.f32.mrf.mxu3  ;;  %v736_v48 = vpop.f32.mrf.mxu0  ;;  %v1996_v60 = vunpack.c.l.b16 %v1064_v46  ;;  %v2190_v7 = vunpack.c.h.b16 %v1064_v46 }
 0x177   :  { %v881_v6 = vadd.f32 %v880_v58, %v3665_v31  ;;  %v737_v42 = vadd.f32 %v736_v48, %v3644_v10  ;;  %v785_v8 = vpop.f32.mrf.mxu1 }
 0x178   :  { %v976_v20 = vmax.f32 %v832_v2, 0.0  ;;  %v786_v43 = vadd.f32 %v785_v8, %v3647_v4  ;;  %v3759_v22 = vpack.c.b16 %v1996_v60, %v1995_v55  ;;  %v3761_v13 = vpack.c.b16 %v2190_v7, %v2189_v57 }
 0x179   :  { %v977_v41 = vmax.f32 %v881_v6, 0.0  ;;  %v982_v12 = vmax.f32 %v737_v42, 0.0  ;;  %1240 = vmatmul.bf16.gmra.mxu0 %v3583_v61  ;;  %1438 = vmatmul.bf16.gmra.mxu1 %v3585_v1 }
 0x17a   :  { %v983_v21 = vmax.f32 %v786_v43, 0.0  ;;  %1648 = vmatmul.bf16.gmra.mxu2 %v3599_v36 }
 0x17b   :  { %v1065_v26 = vpack.c.bf16 %v977_v41, %v976_v20  ;;  %1842 = vmatmul.bf16.gmra.mxu3 %v3601_v37 }
 0x17c   :  { %v1068_v30 = vpack.c.bf16 %v983_v21, %v982_v12 }
 0x17d   :  { %v834_v50 = vpop.f32.mrf.mxu2  ;;  %v2400_v32 = vunpack.c.l.b16 %v1065_v26  ;;  %v2594_v52 = vunpack.c.h.b16 %v1065_v26 }
 0x17e   :  { %v835_v34 = vadd.f32 %v834_v50, %v3661_v24  ;;  %v883_v40 = vpop.f32.mrf.mxu3  ;;  %v738_v38 = vpop.f32.mrf.mxu0  ;;  %v1997_v58 = vunpack.c.l.b16 %v1068_v30  ;;  %v2191_v60 = vunpack.c.h.b16 %v1068_v30 }
 0x17f   :  { %v884_v61 = vadd.f32 %v883_v40, %v3665_v31  ;;  %v739_v39 = vadd.f32 %v738_v38, %v3644_v10  ;;  %v787_v1 = vpop.f32.mrf.mxu1  ;;  %v3770_v11 = vpack.c.b16 %v2400_v32, %v2399_v44  ;;  %v3772_v36 = vpack.c.b16 %v2594_v52, %v2593_v29 }
 0x180   :  { %v984_v45 = vmax.f32 %v835_v34, 0.0  ;;  %v788_v37 = vadd.f32 %v787_v1, %v3647_v4 }
 0x181   :  { %v985_v46 = vmax.f32 %v884_v61, 0.0  ;;  %v990_v55 = vmax.f32 %v739_v39, 0.0 }
 0x182   :  { %v991_v18 = vmax.f32 %v788_v37, 0.0 }
 0x183   :  { %v1069_v57 = vpack.c.bf16 %v985_v46, %v984_v45 }
 0x184   :  { %v1072_v2 = vpack.c.bf16 %v991_v18, %v990_v55 }
 0x185   :  { %v836_v48 = vpop.f32.mrf.mxu2  ;;  %v2401_v52 = vunpack.c.l.b16 %v1069_v57  ;;  %v2595_v34 = vunpack.c.h.b16 %v1069_v57 }
 0x186   :  { %v837_v7 = vadd.f32 %v836_v48, %v3661_v24  ;;  %v885_v6 = vpop.f32.mrf.mxu3  ;;  %v741_v42 = vpop.f32.mrf.mxu0  ;;  %v1998_v8 = vunpack.c.l.b16 %v1072_v2  ;;  %v2192_v20 = vunpack.c.h.b16 %v1072_v2 }
 0x187   :  { %v886_v43 = vadd.f32 %v885_v6, %v3665_v31  ;;  %v742_v41 = vadd.f32 %v741_v42, %v3644_v10  ;;  %v790_v12 = vpop.f32.mrf.mxu1 }
 0x188   :  { %v992_v21 = vmax.f32 %v837_v7, 0.0  ;;  %v791_v44 = vadd.f32 %v790_v12, %v3647_v4  ;;  %v3779_v29 = vpack.c.b16 %v1998_v8, %v1997_v58  ;;  %v3781_v26 = vpack.c.b16 %v2192_v20, %v2191_v60 }
 0x189   :  { %v993_v50 = vmax.f32 %v886_v43, 0.0  ;;  %v998_v30 = vmax.f32 %v742_v41, 0.0  ;;  %1245 = vmatmul.bf16.gmra.mxu0 %v3616_v25  ;;  %1443 = vmatmul.bf16.gmra.mxu1 %v3618_v3 }
 0x18a   :  { %v999_v32 = vmax.f32 %v791_v44, 0.0  ;;  %1653 = vmatmul.bf16.gmra.mxu2 %v3634_v49 }
 0x18b   :  { %v1073_v40 = vpack.c.bf16 %v993_v50, %v992_v21  ;;  %1847 = vmatmul.bf16.gmra.mxu3 %v3636_v53 }
 0x18c   :  { %v1076_v38 = vpack.c.bf16 %v999_v32, %v998_v30 }
 0x18d   :  { %v839_v61 = vpop.f32.mrf.mxu2  ;;  %v2402_v39 = vunpack.c.l.b16 %v1073_v40  ;;  %v2596_v1 = vunpack.c.h.b16 %v1073_v40 }
 0x18e   :  { %v840_v45 = vadd.f32 %v839_v61, %v3661_v24  ;;  %v888_v37 = vpop.f32.mrf.mxu3  ;;  %v743_v46 = vpop.f32.mrf.mxu0  ;;  %v1999_v6 = vunpack.c.l.b16 %v1076_v38  ;;  %v2193_v8 = vunpack.c.h.b16 %v1076_v38 }
 0x18f   :  { %v889_v25 = vadd.f32 %v888_v37, %v3665_v31  ;;  %v744_v55 = vadd.f32 %v743_v46, %v3644_v10  ;;  %v792_v3 = vpop.f32.mrf.mxu1  ;;  %v3790_v18 = vpack.c.b16 %v2402_v39, %v2401_v52  ;;  %v3792_v49 = vpack.c.b16 %v2596_v1, %v2595_v34 }
 0x190   :  { %v1000_v57 = vmax.f32 %v840_v45, 0.0  ;;  %v793_v53 = vadd.f32 %v792_v3, %v3647_v4 }
 0x191   :  { %v1001_v2 = vmax.f32 %v889_v25, 0.0  ;;  %v1006_v58 = vmax.f32 %v744_v55, 0.0 }
 0x192   :  { %v1007_v48 = vmax.f32 %v793_v53, 0.0 }
 0x193   :  { %v1077_v60 = vpack.c.bf16 %v1001_v2, %v1000_v57 }
 0x194   :  { %v1080_v7 = vpack.c.bf16 %v1007_v48, %v1006_v58 }
 0x195   :  { %v841_v42 = vpop.f32.mrf.mxu2  ;;  %v2403_v1 = vunpack.c.l.b16 %v1077_v60  ;;  %v2597_v45 = vunpack.c.h.b16 %v1077_v60 }
 0x196   :  { %v842_v20 = vadd.f32 %v841_v42, %v3661_v24  ;;  %v890_v43 = vpop.f32.mrf.mxu3  ;;  %v746_v41 = vpop.f32.mrf.mxu0  ;;  %v2000_v12 = vunpack.c.l.b16 %v1080_v7  ;;  %v2194_v21 = vunpack.c.h.b16 %v1080_v7 }
 0x197   :  { %v891_v44 = vadd.f32 %v890_v43, %v3665_v31  ;;  %v747_v50 = vadd.f32 %v746_v41, %v3644_v10  ;;  %v795_v30 = vpop.f32.mrf.mxu1 }
 0x198   :  { %v1008_v32 = vmax.f32 %v842_v20, 0.0  ;;  %v796_v52 = vadd.f32 %v795_v30, %v3647_v4  ;;  %v3799_v34 = vpack.c.b16 %v2000_v12, %v1999_v6  ;;  %v3801_v40 = vpack.c.b16 %v2194_v21, %v2193_v8  ;;  %v3818_v20 = vld [vmem:[%s4515_s4] ss:$0 sm:$0xff] }
 0x199   :  { %v1009_v61 = vmax.f32 %v891_v44, 0.0  ;;  %v1014_v38 = vmax.f32 %v747_v50, 0.0  ;;  %1250 = vmatmul.bf16.gmra.mxu0 %v3653_v33  ;;  %1448 = vmatmul.bf16.gmra.mxu1 %v3655_v63 }
 0x19a   :  { %v1015_v39 = vmax.f32 %v796_v52, 0.0  ;;  %1658 = vmatmul.bf16.gmra.mxu2 %v3670_v59 }
 0x19b   :  { %v1081_v37 = vpack.c.bf16 %v1009_v61, %v1008_v32  ;;  %1852 = vmatmul.bf16.gmra.mxu3 %v3672_v15 }
 0x19c   :  { %v1084_v46 = vpack.c.bf16 %v1015_v39, %v1014_v38  ;;  %v3826_v38 = vld [vmem:[%s4516_s5] ss:$0 sm:$0xff] }
 0x19d   :  { %v844_v25 = vpop.f32.mrf.mxu2  ;;  %v2404_v55 = vunpack.c.l.b16 %v1081_v37  ;;  %v2598_v3 = vunpack.c.h.b16 %v1081_v37 }
 0x19e   :  { %v845_v57 = vadd.f32 %v844_v25, %v3661_v24  ;;  %v893_v53 = vpop.f32.mrf.mxu3  ;;  %v748_v2 = vpop.f32.mrf.mxu0  ;;  %v2001_v41 = vunpack.c.l.b16 %v1084_v46  ;;  %v2195_v12 = vunpack.c.h.b16 %v1084_v46 }
 0x19f   :  { %v894_v33 = vadd.f32 %v893_v53, %v3665_v31  ;;  %v749_v58 = vadd.f32 %v748_v2, %v3644_v10  ;;  %v797_v63 = vpop.f32.mrf.mxu1  ;;  %v3810_v48 = vpack.c.b16 %v2404_v55, %v2403_v1  ;;  %v3812_v59 = vpack.c.b16 %v2598_v3, %v2597_v45 }
 0x1a0   :  { %v1016_v60 = vmax.f32 %v845_v57, 0.0  ;;  %v798_v15 = vadd.f32 %v797_v63, %v3647_v4 }
 0x1a1   :  { %v1017_v7 = vmax.f32 %v894_v33, 0.0  ;;  %v1022_v6 = vmax.f32 %v749_v58, 0.0 }
 0x1a2   :  { %v1023_v42 = vmax.f32 %v798_v15, 0.0 }
 0x1a3   :  { %v1085_v8 = vpack.c.bf16 %v1017_v7, %v1016_v60 }
 0x1a4   :  { %v1088_v43 = vpack.c.bf16 %v1023_v42, %v1022_v6 }
 0x1a5   :  { %v846_v10 = vpop.f32.mrf.mxu2  ;;  %v2405_v25 = vunpack.c.l.b16 %v1085_v8  ;;  %v2599_v55 = vunpack.c.h.b16 %v1085_v8 }
 0x1a6   :  { %v847_v21 = vadd.f32 %v846_v10, %v3661_v24  ;;  %v895_v44 = vpop.f32.mrf.mxu3  ;;  %v1216_v50 = vpop.f32.mrf.mxu0  ;;  %v2002_v30 = vunpack.c.l.b16 %v1088_v43  ;;  %v2196_v32 = vunpack.c.h.b16 %v1088_v43 }
 0x1a7   :  { %v896_v4 = vadd.f32 %v895_v44, %v3665_v31  ;;  %v1217_v52 = vadd.f32 %v3818_v20, %v1216_v50  ;;  %v1414_v61 = vpop.f32.mrf.mxu1 }
 0x1a8   :  { %v1024_v39 = vmax.f32 %v847_v21, 0.0  ;;  %v1415_v1 = vadd.f32 %v3818_v20, %v1414_v61  ;;  %v3829_v45 = vpack.c.b16 %v2002_v30, %v2001_v41  ;;  %v3831_v24 = vpack.c.b16 %v2196_v32, %v2195_v12 }
 0x1a9   :  { %v1025_v37 = vmax.f32 %v896_v4, 0.0  ;;  %v1256_v46 = vmax.f32 %v1217_v52, 0.0  ;;  %2027 = vmatmul.bf16.vlgmr.msrb.gmra.mxu0 %v3678_v23  ;;  %2221 = vmatmul.bf16.vlgmr.msrb.gmra.mxu1 %v3680_v62 }
 0x1aa   :  { %v1454_v31 = vmax.f32 %v1415_v1, 0.0  ;;  %2431 = vmatmul.bf16.vlgmr.msrb.gmra.mxu2 %v3688_v17 }
 0x1ab   :  { %v1089_v3 = vpack.c.bf16 %v1025_v37, %v1024_v39  ;;  %2625 = vmatmul.bf16.vlgmr.msrb.gmra.mxu3 %v3690_v47  ;;  %v1275_v57 = vmul.f32 %v3826_v38, %v1256_v46 }
 0x1ac   :  { %v1470_v53 = vmul.f32 %v3826_v38, %v1454_v31 }
 0x1ad   :  { %v1624_v2 = vpop.f32.mrf.mxu2  ;;  %v1292_v33 = vsel %vm1291_vm0, %v1275_v57, 0.0  ;;  %v2406_v58 = vunpack.c.l.b16 %v1089_v3  ;;  %v2600_v23 = vunpack.c.h.b16 %v1089_v3 }
 0x1ae   :  { %v1625_v63 = vadd.f32 %v3818_v20, %v1624_v2  ;;  %v1818_v62 = vpop.f32.mrf.mxu3  ;;  %v1486_v17 = vsel %vm1291_vm0, %v1470_v53, 0.0  ;;  %v1218_v60 = vpop.f32.mrf.mxu0  ;;  %1293 = vadd.xlane.f32.xlu0 %v1292_v33 }
 0x1af   :  { %v1819_v15 = vadd.f32 %v3818_v20, %v1818_v62  ;;  %v1416_v7 = vpop.f32.mrf.mxu1  ;;  %1487 = vadd.xlane.f32.xlu2 %v1486_v17  ;;  %v3843_v47 = vpack.c.b16 %v2406_v58, %v2405_v25  ;;  %v3845_v6 = vpack.c.b16 %v2600_v23, %v2599_v55  ;;  %v1219_v43 = vadd.f32 %v3818_v20, %v1218_v60 }
 0x1b0   :  { %v1664_v42 = vmax.f32 %v1625_v63, 0.0  ;;  %v1417_v39 = vadd.f32 %v3818_v20, %v1416_v7 }
 0x1b1   :  { %v1858_v8 = vmax.f32 %v1819_v15, 0.0  ;;  %v1257_v12 = vmax.f32 %v1219_v43, 0.0 }
 0x1b2   :  { %v1680_v41 = vmul.f32 %v3826_v38, %v1664_v42  ;;  %v1455_v3 = vmax.f32 %v1417_v39, 0.0 }
 0x1b3   :  { %v1874_v10 = vmul.f32 %v3826_v38, %v1858_v8  ;;  %v1276_v46 = vmul.f32 %v3826_v38, %v1257_v12 }
 0x1b4   :  { %v1696_v44 = vsel %vm1291_vm0, %v1680_v41, 0.0  ;;  %v1471_v63 = vmul.f32 %v3826_v38, %v1455_v3 }
 0x1b5   :  { %v1626_v21 = vpop.f32.mrf.mxu2  ;;  %v1890_v30 = vsel %vm1291_vm0, %v1874_v10, 0.0 }
 0x1b6   :  { %v1820_v50 = vpop.f32.mrf.mxu3  ;;  %v1221_v32 = vpop.f32.mrf.mxu0  ;;  %1697 = vadd.xlane.f32.xlu0 %v1696_v44  ;;  %v1627_v62 = vadd.f32 %v3818_v20, %v1626_v21  ;;  %v1489_v7 = vsel %vm1291_vm0, %v1471_v63, 0.0 }
 0x1b7   :  { %v1821_v4 = vadd.f32 %v3818_v20, %v1820_v50  ;;  %v1419_v52 = vpop.f32.mrf.mxu1  ;;  %1891 = vadd.xlane.f32.xlu2 %v1890_v30  ;;  %v1222_v37 = vadd.f32 %v3818_v20, %v1221_v32 }
 0x1b8   :  { %v1420_v61 = vadd.f32 %v3818_v20, %v1419_v52  ;;  %v1665_v42 = vmax.f32 %v1627_v62, 0.0 }
 0x1b9   :  { %v1859_v1 = vmax.f32 %v1821_v4, 0.0  ;;  %2032 = vmatmul.bf16.gmra.mxu0 %v3699_v54  ;;  %2226 = vmatmul.bf16.gmra.mxu1 %v3701_v56  ;;  %v1258_v57 = vmax.f32 %v1222_v37, 0.0  ;;  %v1295_v54 = vsel %vm1291_vm0, %v1276_v46, 0.0 }
 0x1ba   :  { %v1456_v31 = vmax.f32 %v1420_v61, 0.0  ;;  %2436 = vmatmul.bf16.gmra.mxu2 %v3710_v51  ;;  %v1681_v32 = vmul.f32 %v3826_v38, %v1665_v42 }
 0x1bb   :  { %2630 = vmatmul.bf16.gmra.mxu3 %v3712_v5  ;;  %v1875_v25 = vmul.f32 %v3826_v38, %v1859_v1  ;;  %v1277_v23 = vmul.f32 %v3826_v38, %v1258_v57 }
 0x1bc   :  { %v1472_v55 = vmul.f32 %v3826_v38, %v1456_v31 }
 0x1bd   :  { %v1893_v53 = vsel %vm1291_vm0, %v1875_v25, 0.0  ;;  %v1629_v2 = vpop.f32.mrf.mxu2  ;;  %v1298_v15 = vsel %vm1291_vm0, %v1277_v23, 0.0 }
 0x1be   :  { %v1823_v33 = vpop.f32.mrf.mxu3  ;;  %1894 = vadd.xlane.f32.xlu1 %v1893_v53  ;;  %v1492_v58 = vsel %vm1291_vm0, %v1472_v55, 0.0  ;;  %v1223_v56 = vpop.f32.mrf.mxu0  ;;  %1296 = vadd.xlane.f32.xlu0 %v1295_v54  ;;  %v1630_v30 = vadd.f32 %v3818_v20, %v1629_v2 }
 0x1bf   :  { %v1421_v51 = vpop.f32.mrf.mxu1  ;;  %1493 = vadd.xlane.f32.xlu2 %v1492_v58  ;;  %v1824_v5 = vadd.f32 %v3818_v20, %v1823_v33  ;;  %v1224_v12 = vadd.f32 %v3818_v20, %v1223_v56 }
 0x1c0   :  { %v1666_v37 = vmax.f32 %v1630_v30, 0.0  ;;  %v1422_v57 = vadd.f32 %v3818_v20, %v1421_v51 }
 0x1c1   :  { %v1860_v17 = vmax.f32 %v1824_v5, 0.0  ;;  %v1259_v52 = vmax.f32 %v1224_v12, 0.0 }
 0x1c2   :  { %v1682_v53 = vmul.f32 %v3826_v38, %v1666_v37  ;;  %v1457_v5 = vmax.f32 %v1422_v57, 0.0 }
 0x1c3   :  { %v1876_v21 = vmul.f32 %v3826_v38, %v1860_v17  ;;  %v1278_v55 = vmul.f32 %v3826_v38, %v1259_v52 }
 0x1c4   :  { %v1702_v62 = vsel %vm1291_vm0, %v1682_v53, 0.0 }
 0x1c5   :  { %v1631_v60 = vpop.f32.mrf.mxu2  ;;  %v1896_v1 = vsel %vm1291_vm0, %v1876_v21, 0.0  ;;  %v1301_v58 = vsel %vm1291_vm0, %v1278_v55, 0.0 }
 0x1c6   :  { %v1825_v8 = vpop.f32.mrf.mxu3  ;;  %1299 = vadd.xlane.f32.xlu1 %v1298_v15  ;;  %v1226_v43 = vpop.f32.mrf.mxu0  ;;  %1490 = vadd.xlane.f32.xlu0 %v1489_v7 }
 0x1c7   :  { %v1227_v41 = vadd.f32 %v3818_v20, %v1226_v43  ;;  %v1424_v10 = vpop.f32.mrf.mxu1  ;;  %v1473_v43 = vmul.f32 %v3826_v38, %v1457_v5 }
 0x1c8   :  { %v1425_v50 = vadd.f32 %v3818_v20, %v1424_v10 }
 0x1c9   :  { %v1260_v44 = vmax.f32 %v1227_v41, 0.0  ;;  %2037 = vmatmul.bf16.gmra.mxu0 %v3719_v19  ;;  %2231 = vmatmul.bf16.gmra.mxu1 %v3721_v14  ;;  %v1699_v14 = vsel %vm1291_vm0, %v1681_v32, 0.0 }
 0x1ca   :  { %2441 = vmatmul.bf16.gmra.mxu2 %v3730_v27  ;;  %v1458_v61 = vmax.f32 %v1425_v50, 0.0 }
 0x1cb   :  { %2635 = vmatmul.bf16.gmra.mxu3 %v3732_v9  ;;  %v1279_v4 = vmul.f32 %v3826_v38, %v1260_v44  ;;  %v1826_v9 = vadd.f32 %v3818_v20, %v1825_v8  ;;  %v1632_v8 = vadd.f32 %v3818_v20, %v1631_v60 }
 0x1cc   :  { %v1474_v3 = vmul.f32 %v3826_v38, %v1458_v61 }
 0x1cd   :  { %v1634_v39 = vpop.f32.mrf.mxu2  ;;  %v1304_v19 = vsel %vm1291_vm0, %v1279_v4, 0.0  ;;  %v1861_v2 = vmax.f32 %v1826_v9, 0.0  ;;  %v1667_v50 = vmax.f32 %v1632_v8, 0.0 }
 0x1ce   :  { %v1828_v46 = vpop.f32.mrf.mxu3  ;;  %1897 = vadd.xlane.f32.xlu1 %v1896_v1  ;;  %v1228_v31 = vpop.f32.mrf.mxu0  ;;  %1305 = vadd.xlane.f32.xlu2 %v1304_v19  ;;  %v1498_v56 = vsel %vm1291_vm0, %v1474_v3, 0.0  ;;  %v1635_v4 = vadd.f32 %v3818_v20, %v1634_v39 }
 0x1cf   :  { %v3886_v27 = vpop.f32.mrf.mxu1  ;;  %1700 = vadd.xlane.f32.xlu0 %v1699_v14  ;;  %v1229_v25 = vadd.f32 %v3818_v20, %v1228_v31  ;;  %v1829_v51 = vadd.f32 %v3818_v20, %v1828_v46  ;;  %v1877_v7 = vmul.f32 %v3826_v38, %v1861_v2  ;;  %v1683_v52 = vmul.f32 %v3826_v38, %v1667_v50 }
 0x1d0   :  { %v1668_v46 = vmax.f32 %v1635_v4, 0.0  ;;  %v1427_v2 = vadd.f32 %v3818_v20, %v3886_v27 }
 0x1d1   :  { %v1261_v54 = vmax.f32 %v1229_v25, 0.0  ;;  %v1862_v41 = vmax.f32 %v1829_v51, 0.0  ;;  %v1705_v9 = vsel %vm1291_vm0, %v1683_v52, 0.0 }
 0x1d3   :  { %v1280_v42 = vmul.f32 %v3826_v38, %v1261_v54  ;;  %v1878_v30 = vmul.f32 %v3826_v38, %v1862_v41  ;;  %v1684_v54 = vmul.f32 %v3826_v38, %v1668_v46 }
 0x1d5   :  { %v3894_v33 = vpop.f32.mrf.mxu2  ;;  %v1307_v44 = vsel %vm1291_vm0, %v1280_v42, 0.0  ;;  %v1902_v19 = vsel %vm1291_vm0, %v1878_v30, 0.0 }
 0x1d6   :  { %v1830_v23 = vpop.f32.mrf.mxu3  ;;  %1302 = vadd.xlane.f32.xlu1 %v1301_v58  ;;  %v3898_v63 = vpop.f32.mrf.mxu0  ;;  %1499 = vadd.xlane.f32.xlu2 %v1498_v56  ;;  %v1637_v42 = vadd.f32 %v3818_v20, %v3894_v33 }
 0x1d7   :  { %v1429_v17 = vpop.f32.mrf.mxu1  ;;  %1703 = vadd.xlane.f32.xlu0 %v1702_v62 }
 0x1d8   :  { %v1430_v15 = vadd.f32 %v3818_v20, %v1429_v17  ;;  %v1459_v17 = vmax.f32 %v1427_v2, 0.0 }
 0x1d9   :  { %2042 = vmatmul.bf16.gmra.mxu0 %v3739_v16  ;;  %2236 = vmatmul.bf16.gmra.mxu1 %v3741_v0  ;;  %v1899_v16 = vsel %vm1291_vm0, %v1877_v7, 0.0  ;;  %v1495_v0 = vsel %vm1291_vm0, %v1473_v43, 0.0 }
 0x1da   :  { %2446 = vmatmul.bf16.gmra.mxu2 %v3750_v35  ;;  %v1460_v10 = vmax.f32 %v1430_v15, 0.0  ;;  %v1475_v8 = vmul.f32 %v3826_v38, %v1459_v17 }
 0x1db   :  { %2640 = vmatmul.bf16.gmra.mxu3 %v3752_v28  ;;  %v1831_v28 = vadd.f32 %v3818_v20, %v1830_v23 }
 0x1dc   :  { %v1476_v32 = vmul.f32 %v3826_v38, %v1460_v10 }
 0x1dd   :  { %v3911_v12 = vpop.f32.mrf.mxu2  ;;  %v1863_v61 = vmax.f32 %v1831_v28, 0.0 }
 0x1de   :  { %v1833_v21 = vpop.f32.mrf.mxu3  ;;  %1900 = vadd.xlane.f32.xlu1 %v1899_v16  ;;  %v1233_v60 = vpop.f32.mrf.mxu0  ;;  %1308 = vadd.xlane.f32.xlu2 %v1307_v44  ;;  %v1504_v37 = vsel %vm1291_vm0, %v1476_v32, 0.0  ;;  %v1669_v44 = vmax.f32 %v1637_v42, 0.0  ;;  %v1232_v32 = vadd.f32 %v3818_v20, %v3898_v63 }
 0x1df   :  { %v3916_v35 = vpop.f32.mrf.mxu1  ;;  %1496 = vadd.xlane.f32.xlu0 %v1495_v0  ;;  %v1834_v39 = vadd.f32 %v3818_v20, %v1833_v21  ;;  %v1879_v53 = vmul.f32 %v3826_v38, %v1863_v61 }
 0x1e0   :  { %v1685_v52 = vmul.f32 %v3826_v38, %v1669_v44  ;;  %v1262_v46 = vmax.f32 %v1232_v32, 0.0 }
 0x1e1   :  { %v1864_v56 = vmax.f32 %v1834_v39, 0.0  ;;  %v1640_v39 = vadd.f32 %v3818_v20, %v3911_v12 }
 0x1e3   :  { %v1880_v15 = vmul.f32 %v3826_v38, %v1864_v56  ;;  %v1670_v56 = vmax.f32 %v1640_v39, 0.0 }
 0x1e5   :  { %v3923_v1 = vpop.f32.mrf.mxu2  ;;  %v1908_v10 = vsel %vm1291_vm0, %v1880_v15, 0.0 }
 0x1e6   :  { %v1835_v31 = vpop.f32.mrf.mxu3  ;;  %1903 = vadd.xlane.f32.xlu1 %v1902_v19  ;;  %v1236_v14 = vpop.f32.mrf.mxu0  ;;  %1505 = vadd.xlane.f32.xlu2 %v1504_v37 }
 0x1e7   :  { %v1237_v25 = vadd.f32 %v3818_v20, %v1236_v14  ;;  %v1434_v55 = vpop.f32.mrf.mxu1  ;;  %1706 = vadd.xlane.f32.xlu0 %v1705_v9  ;;  %v1836_v28 = vadd.f32 %v3818_v20, %v1835_v31 }
 0x1e8   :  { %v1435_v57 = vadd.f32 %v3818_v20, %v1434_v55 }
 0x1e9   :  { %v1264_v3 = vmax.f32 %v1237_v25, 0.0  ;;  %2047 = vmatmul.bf16.gmra.mxu0 %v3759_v22  ;;  %2241 = vmatmul.bf16.gmra.mxu1 %v3761_v13  ;;  %v1905_v22 = vsel %vm1291_vm0, %v1879_v53, 0.0  ;;  %v1865_v19 = vmax.f32 %v1836_v28, 0.0 }
 0x1ea   :  { %2451 = vmatmul.bf16.gmra.mxu2 %v3770_v11  ;;  %v1462_v5 = vmax.f32 %v1435_v57, 0.0  ;;  %v1708_v11 = vsel %vm1291_vm0, %v1684_v54, 0.0  ;;  %v1281_v57 = vmul.f32 %v3826_v38, %v1262_v46 }
 0x1eb   :  { %2645 = vmatmul.bf16.gmra.mxu3 %v3772_v36  ;;  %v1283_v58 = vmul.f32 %v3826_v38, %v1264_v3  ;;  %v1234_v36 = vadd.f32 %v3818_v20, %v1233_v60  ;;  %v1501_v60 = vsel %vm1291_vm0, %v1475_v8, 0.0  ;;  %v1881_v55 = vmul.f32 %v3826_v38, %v1865_v19 }
 0x1ec   :  { %v1478_v7 = vmul.f32 %v3826_v38, %v1462_v5  ;;  %v1310_v12 = vsel %vm1291_vm0, %v1281_v57, 0.0  ;;  %v1686_v8 = vmul.f32 %v3826_v38, %v1670_v56 }
 0x1ed   :  { %v3940_v23 = vpop.f32.mrf.mxu2  ;;  %v1316_v62 = vsel %vm1291_vm0, %v1283_v58, 0.0  ;;  %v1263_v43 = vmax.f32 %v1234_v36, 0.0  ;;  %v1911_v58 = vsel %vm1291_vm0, %v1881_v55, 0.0 }
 0x1ee   :  { %v1838_v27 = vpop.f32.mrf.mxu3  ;;  %1906 = vadd.xlane.f32.xlu1 %v1905_v22  ;;  %v3944_v13 = vpop.f32.mrf.mxu0  ;;  %1317 = vadd.xlane.f32.xlu2 %v1316_v62  ;;  %v1510_v16 = vsel %vm1291_vm0, %v1478_v7, 0.0 }
 0x1ef   :  { %v3947_v51 = vpop.f32.mrf.mxu1  ;;  %1709 = vadd.xlane.f32.xlu0 %v1708_v11  ;;  %v1282_v30 = vmul.f32 %v3826_v38, %v1263_v43  ;;  %v1432_v11 = vadd.f32 %v3818_v20, %v3916_v35 }
 0x1f5   :  { %v3955_v41 = vpop.f32.mrf.mxu2 }
 0x1f6   :  { %v1840_v50 = vpop.f32.mrf.mxu3  ;;  %1909 = vadd.xlane.f32.xlu1 %v1908_v10  ;;  %v3959_v21 = vpop.f32.mrf.mxu0  ;;  %1511 = vadd.xlane.f32.xlu2 %v1510_v16  ;;  %v1461_v10 = vmax.f32 %v1432_v11, 0.0 }
 0x1f7   :  { %v1439_v0 = vpop.f32.mrf.mxu1  ;;  %1502 = vadd.xlane.f32.xlu0 %v1501_v60  ;;  %v1841_v36 = vadd.f32 %v3818_v20, %v1840_v50 }
 0x1f8   :  { %v1440_v33 = vadd.f32 %v3818_v20, %v1439_v0  ;;  %v1242_v0 = vadd.f32 %v3818_v20, %v3959_v21  ;;  %v1477_v32 = vmul.f32 %v3826_v38, %v1461_v10 }
 0x1f9   :  { %2052 = vmatmul.bf16.gmra.mxu0 %v3779_v29  ;;  %2246 = vmatmul.bf16.gmra.mxu1 %v3781_v26  ;;  %v1313_v29 = vsel %vm1291_vm0, %v1282_v30, 0.0  ;;  %v1711_v26 = vsel %vm1291_vm0, %v1685_v52, 0.0  ;;  %v1867_v43 = vmax.f32 %v1841_v36, 0.0 }
 0x1fa   :  { %v1464_v4 = vmax.f32 %v1440_v33, 0.0  ;;  %2456 = vmatmul.bf16.gmra.mxu2 %v3790_v18  ;;  %v1266_v52 = vmax.f32 %v1242_v0, 0.0  ;;  %v1507_v21 = vsel %vm1291_vm0, %v1477_v32, 0.0 }
 0x1fb   :  { %2650 = vmatmul.bf16.gmra.mxu3 %v3792_v49  ;;  %v1839_v49 = vadd.f32 %v3818_v20, %v1838_v27  ;;  %v1883_v33 = vmul.f32 %v3826_v38, %v1867_v43 }
 0x1fc   :  { %v1480_v61 = vmul.f32 %v3826_v38, %v1464_v4 }
 0x1fd   :  { %v3973_v37 = vpop.f32.mrf.mxu2  ;;  %v1866_v2 = vmax.f32 %v1839_v49, 0.0  ;;  %v1645_v49 = vadd.f32 %v3818_v20, %v3940_v23 }
 0x1fe   :  { %v1843_v31 = vpop.f32.mrf.mxu3  ;;  %1314 = vadd.xlane.f32.xlu1 %v1313_v29  ;;  %v1243_v63 = vpop.f32.mrf.mxu0  ;;  %v1516_v14 = vsel %vm1291_vm0, %v1480_v61, 0.0  ;;  %v1917_v61 = vsel %vm1291_vm0, %v1883_v33, 0.0 }
 0x1ff   :  { %v1844_v18 = vadd.f32 %v3818_v20, %v1843_v31  ;;  %v3979_v9 = vpop.f32.mrf.mxu1  ;;  %1517 = vadd.xlane.f32.xlu2 %v1516_v14  ;;  %1712 = vadd.xlane.f32.xlu0 %v1711_v26  ;;  %v1244_v3 = vadd.f32 %v3818_v20, %v1243_v63  ;;  %v1882_v15 = vmul.f32 %v3826_v38, %v1866_v2 }
 0x200   :  { %v1285_v26 = vmul.f32 %v3826_v38, %v1266_v52 }
 0x201   :  { %v1868_v25 = vmax.f32 %v1844_v18, 0.0  ;;  %v1267_v5 = vmax.f32 %v1244_v3, 0.0  ;;  %v1914_v35 = vsel %vm1291_vm0, %v1882_v15, 0.0  ;;  %v1672_v3 = vmax.f32 %v1645_v49, 0.0 }
 0x203   :  { %v1884_v53 = vmul.f32 %v3826_v38, %v1868_v25  ;;  %v1286_v42 = vmul.f32 %v3826_v38, %v1267_v5  ;;  %v1239_v5 = vadd.f32 %v3818_v20, %v3944_v13 }
 0x205   :  { %v3988_v54 = vpop.f32.mrf.mxu2  ;;  %v1920_v17 = vsel %vm1291_vm0, %v1884_v53, 0.0  ;;  %v1325_v50 = vsel %vm1291_vm0, %v1286_v42, 0.0  ;;  %v1265_v15 = vmax.f32 %v1239_v5, 0.0 }
 0x206   :  { %v1845_v22 = vpop.f32.mrf.mxu3  ;;  %1912 = vadd.xlane.f32.xlu1 %v1911_v58  ;;  %v3991_v62 = vpop.f32.mrf.mxu0 }
 0x207   :  { %v1444_v27 = vpop.f32.mrf.mxu1  ;;  %1921 = vadd.xlane.f32.xlu2 %v1920_v17  ;;  %1311 = vadd.xlane.f32.xlu0 %v1310_v12  ;;  %v1846_v63 = vadd.f32 %v3818_v20, %v1845_v22  ;;  %v1688_v12 = vmul.f32 %v3826_v38, %v1672_v3 }
 0x208   :  { %v1445_v7 = vadd.f32 %v3818_v20, %v1444_v27 }
 0x209   :  { %2057 = vmatmul.bf16.gmra.mxu0 %v3799_v34  ;;  %2251 = vmatmul.bf16.gmra.mxu1 %v3801_v40  ;;  %v1714_v40 = vsel %vm1291_vm0, %v1686_v8, 0.0  ;;  %v1869_v39 = vmax.f32 %v1846_v63, 0.0  ;;  %v1720_v43 = vsel %vm1291_vm0, %v1688_v12, 0.0 }
 0x20a   :  { %2461 = vmatmul.bf16.gmra.mxu2 %v3810_v48  ;;  %v1466_v16 = vmax.f32 %v1445_v7, 0.0 }
 0x20b   :  { %2655 = vmatmul.bf16.gmra.mxu3 %v3812_v59  ;;  %v1642_v59 = vadd.f32 %v3818_v20, %v3923_v1  ;;  %v1885_v56 = vmul.f32 %v3826_v38, %v1869_v39 }
 0x20c   :  { %v1482_v30 = vmul.f32 %v3826_v38, %v1466_v16 }
 0x20d   :  { %v4009_v60 = vpop.f32.mrf.mxu2  ;;  %v1671_v4 = vmax.f32 %v1642_v59, 0.0  ;;  %v1923_v36 = vsel %vm1291_vm0, %v1885_v56, 0.0  ;;  %v1284_v59 = vmul.f32 %v3826_v38, %v1265_v15 }
 0x20e   :  { %v1848_v34 = vpop.f32.mrf.mxu3  ;;  %1915 = vadd.xlane.f32.xlu1 %v1914_v35  ;;  %v1248_v44 = vpop.f32.mrf.mxu0  ;;  %v1522_v46 = vsel %vm1291_vm0, %v1482_v30, 0.0 }
 0x20f   :  { %v4011_v48 = vpop.f32.mrf.mxu1  ;;  %1326 = vadd.xlane.f32.xlu2 %v1325_v50  ;;  %1715 = vadd.xlane.f32.xlu0 %v1714_v40  ;;  %v1849_v28 = vadd.f32 %v3818_v20, %v1848_v34  ;;  %v1687_v18 = vmul.f32 %v3826_v38, %v1671_v4 }
 0x211   :  { %v1870_v19 = vmax.f32 %v1849_v28, 0.0  ;;  %v1717_v58 = vsel %vm1291_vm0, %v1687_v18, 0.0 }
 0x213   :  { %v1886_v55 = vmul.f32 %v3826_v38, %v1870_v19 }
 0x215   :  { %v4027_v14 = vpop.f32.mrf.mxu2  ;;  %v1926_v23 = vsel %vm1291_vm0, %v1886_v55, 0.0 }
 0x216   :  { %v4022_v29 = vpop.f32.mrf.mxu3  ;;  %1918 = vadd.xlane.f32.xlu1 %v1917_v61  ;;  %v1251_v1 = vpop.f32.mrf.mxu0  ;;  %v1319_v61 = vsel %vm1291_vm0, %v1284_v59, 0.0 }
 0x217   :  { %v1449_v31 = vpop.f32.mrf.mxu1  ;;  %1523 = vadd.xlane.f32.xlu2 %v1522_v46  ;;  %1508 = vadd.xlane.f32.xlu0 %v1507_v21  ;;  %v1252_v25 = vadd.f32 %v3818_v20, %v1251_v1  ;;  %v1647_v21 = vadd.f32 %v3818_v20, %v3955_v41 }
 0x218   :  { %v1450_v22 = vadd.f32 %v3818_v20, %v1449_v31 }
 0x219   :  { %2062 = vmatmul.bf16.gmra.mxu0 %v3829_v45  ;;  %2256 = vmatmul.bf16.gmra.mxu1 %v3831_v24  ;;  %v1322_v45 = vsel %vm1291_vm0, %v1285_v26, 0.0  ;;  %v1270_v57 = vmax.f32 %v1252_v25, 0.0  ;;  %v1673_v25 = vmax.f32 %v1647_v21, 0.0 }
 0x21a   :  { %2466 = vmatmul.bf16.gmra.mxu2 %v3843_v47  ;;  %v1249_v47 = vadd.f32 %v3818_v20, %v1248_v44  ;;  %v1468_v7 = vmax.f32 %v1450_v22, 0.0  ;;  %v1437_v44 = vadd.f32 %v3818_v20, %v3947_v51 }
 0x21b   :  { %2660 = vmatmul.bf16.gmra.mxu3 %v3845_v6  ;;  %v1289_v17 = vmul.f32 %v3826_v38, %v1270_v57  ;;  %v1689_v5 = vmul.f32 %v3826_v38, %v1673_v25 }
 0x21c   :  { %v1269_v11 = vmax.f32 %v1249_v47, 0.0  ;;  %v1484_v40 = vmul.f32 %v3826_v38, %v1468_v7  ;;  %v1463_v30 = vmax.f32 %v1437_v44, 0.0 }
 0x21d   :  { %v1659_v27 = vpop.f32.mrf.mxu2  ;;  %v1334_v8 = vsel %vm1291_vm0, %v1289_v17, 0.0 }
 0x21e   :  { %v1853_v53 = vpop.f32.mrf.mxu3  ;;  %1323 = vadd.xlane.f32.xlu1 %v1322_v45  ;;  %v4040_v2 = vpop.f32.mrf.mxu0  ;;  %v1660_v10 = vadd.f32 %v3818_v20, %v1659_v27  ;;  %v1288_v34 = vmul.f32 %v3826_v38, %v1269_v11  ;;  %v1528_v52 = vsel %vm1291_vm0, %v1484_v40, 0.0  ;;  %v1479_v26 = vmul.f32 %v3826_v38, %v1463_v30 }
 0x21f   :  { %v4044_v24 = vpop.f32.mrf.mxu1  ;;  %1927 = vadd.xlane.f32.xlu2 %v1926_v23  ;;  %1718 = vadd.xlane.f32.xlu0 %v1717_v58  ;;  %v1854_v19 = vadd.f32 %v3818_v20, %v1853_v53  ;;  %v1650_v58 = vadd.f32 %v3818_v20, %v3973_v37  ;;  %v1442_v37 = vadd.f32 %v3818_v20, %v3979_v9 }
 0x220   :  { %v1678_v0 = vmax.f32 %v1660_v10, 0.0  ;;  %v1331_v28 = vsel %vm1291_vm0, %v1288_v34, 0.0  ;;  %v1513_v3 = vsel %vm1291_vm0, %v1479_v26, 0.0  ;;  %v1652_v9 = vadd.f32 %v3818_v20, %v3988_v54 }
 0x221   :  { %v4047_v6 = vpop.xlane.xlu0 %1293  ;;  %v1872_v18 = vmax.f32 %v1854_v19, 0.0  ;;  %v1674_v17 = vmax.f32 %v1650_v58, 0.0  ;;  %v1247_v54 = vadd.f32 %v3818_v20, %v3991_v62  ;;  %v1655_v62 = vadd.f32 %v3818_v20, %v4009_v60 }
 0x222   :  { %v1694_v46 = vmul.f32 %v3826_v38, %v1678_v0 }
 0x223   :  { %v1888_v23 = vmul.f32 %v3826_v38, %v1872_v18  ;;  %v1268_v18 = vmax.f32 %v1247_v54, 0.0 }
 0x224   :  { %v1738_v49 = vsel %vm1291_vm0, %v1694_v46, 0.0 }
 0x225   :  { %v4069_v33 = vpop.f32.mrf.mxu2  ;;  %v1932_v22 = vsel %vm1291_vm0, %v1888_v23, 0.0  ;;  %v1287_v23 = vmul.f32 %v3826_v38, %v1268_v18 }
 0x226   :  { %1924 = vadd.xlane.f32.xlu1 %v1923_v36  ;;  %v2028_v42 = vpop.f32.mrf.mxu0  ;;  %v1855_v35 = vpop.f32.mrf.mxu3  ;;  %v1723_v36 = vsel %vm1291_vm0, %v1689_v5, 0.0 }
 0x227   :  { %v4058_v13 = vpop.f32.mrf.mxu1  ;;  %1335 = vadd.xlane.f32.xlu2 %v1334_v8  ;;  %1721 = vadd.xlane.f32.xlu0 %v1720_v43  ;;  %v1856_v50 = vadd.f32 %v3818_v20, %v1855_v35  ;;  %v2029_v31 = vadd.f32 %v3818_v20, %v2028_v42  ;;  %v1690_v43 = vmul.f32 %v3826_v38, %v1674_v17  ;;  %v1465_v35 = vmax.f32 %v1442_v37, 0.0 }
 0x229   :  { %v4061_v16 = vpop.xlane.xlu0 %1697  ;;  %v1873_v32 = vmax.f32 %v1856_v50, 0.0  ;;  %v2068_v55 = vmax.f32 %v2029_v31, 0.0  ;;  %v1726_v44 = vsel %vm1291_vm0, %v1690_v43, 0.0  ;;  %v1481_v30 = vmul.f32 %v3826_v38, %v1465_v35 }
 0x22b   :  { %v1889_v63 = vmul.f32 %v3826_v38, %v1873_v32  ;;  %v2084_v56 = vmul.f32 %v3826_v38, %v2068_v55  ;;  %v1675_v32 = vmax.f32 %v1652_v9, 0.0 }
 0x22d   :  { %v1935_v45 = vsel %vm1291_vm0, %v1889_v63, 0.0  ;;  %v2432_v57 = vpop.f32.mrf.mxu2  ;;  %v2100_v11 = vsel %vm1291_vm0, %v2084_v56, 0.0  ;;  %v1691_v26 = vmul.f32 %v3826_v38, %v1675_v32 }
 0x22e   :  { %1332 = vadd.xlane.f32.xlu1 %v1331_v28  ;;  %v2030_v4 = vpop.f32.mrf.mxu0  ;;  %v2433_v47 = vadd.f32 %v3818_v20, %v2432_v57 }
 0x22f   :  { %v4074_v51 = vpop.f32.mrf.mxu1  ;;  %1529 = vadd.xlane.f32.xlu2 %v1528_v52  ;;  %1320 = vadd.xlane.f32.xlu0 %v1319_v61  ;;  %v2031_v7 = vadd.f32 %v3818_v20, %v2030_v4  ;;  %v1519_v61 = vsel %vm1291_vm0, %v1481_v30, 0.0  ;;  %v1729_v55 = vsel %vm1291_vm0, %v1691_v26, 0.0 }
 0x230   :  { %v2472_v12 = vmax.f32 %v2433_v47, 0.0  ;;  %v1676_v47 = vmax.f32 %v1655_v62, 0.0 }
 0x231   :  { %v4077_v1 = vpop.xlane.xlu0 %1296  ;;  %v2069_v10 = vmax.f32 %v2031_v7, 0.0 }
 0x232   :  { %v2488_v8 = vmul.f32 %v3826_v38, %v2472_v12 }
 0x233   :  { %v2085_v28 = vmul.f32 %v3826_v38, %v2069_v10 }
 0x234   :  { %v2504_v34 = vsel %vm1291_vm0, %v2488_v8, 0.0 }
 0x235   :  { %v2103_v52 = vsel %vm1291_vm0, %v2085_v28, 0.0 }
 0x236   :  { %1739 = vadd.xlane.f32.xlu1 %v1738_v49  ;;  %v2033_v39 = vpop.f32.mrf.mxu0 }
 0x237   :  { %v4088_v53 = vpop.f32.mrf.mxu1  ;;  %1936 = vadd.xlane.f32.xlu2 %v1935_v45  ;;  %1514 = vadd.xlane.f32.xlu0 %v1513_v3  ;;  %v2034_v59 = vadd.f32 %v3818_v20, %v2033_v39 }
 0x239   :  { %v4090_v41 = vpop.xlane.xlu0 %1490  ;;  %v2070_v4 = vmax.f32 %v2034_v59, 0.0 }
 0x23b   :  { %v2086_v63 = vmul.f32 %v3826_v38, %v2070_v4 }
 0x23d   :  { %v2106_v25 = vsel %vm1291_vm0, %v2086_v63, 0.0  ;;  %v1851_v63 = vadd.f32 %v3818_v20, %v4022_v29  ;;  %v1254_v29 = vadd.f32 %v3818_v20, %v4040_v2  ;;  %v4193_v2 = vld [vmem:[%s4515_s4] ss:$0 sm:$0xff] }
 0x23e   :  { %1933 = vadd.xlane.f32.xlu1 %v1932_v22  ;;  %v2035_v27 = vpop.f32.mrf.mxu0  ;;  %v1328_v22 = vsel %vm1291_vm0, %v1287_v23, 0.0 }
 0x23f   :  { %v4101_v15 = vpop.f32.mrf.mxu1  ;;  %2101 = vadd.xlane.f32.xlu2 %v2100_v11  ;;  %1724 = vadd.xlane.f32.xlu0 %v1723_v36  ;;  %v2036_v21 = vadd.f32 %v3818_v20, %v2035_v27  ;;  %v1692_v11 = vmul.f32 %v3826_v38, %v1676_v47  ;;  %v1447_v36 = vadd.f32 %v3818_v20, %v4011_v48 }
 0x240   :  { %v1657_v48 = vadd.f32 %v3818_v20, %v4027_v14 }
 0x241   :  { %v2071_v49 = vmax.f32 %v2036_v21, 0.0  ;;  %v1732_v43 = vsel %vm1291_vm0, %v1692_v11, 0.0  ;;  %v1467_v35 = vmax.f32 %v1447_v36, 0.0 }
 0x242   :  { %v4106_v42 = vpop.xlane.xlu0 %1700 }
 0x243   :  { %v2087_v57 = vmul.f32 %v3826_v38, %v2071_v49  ;;  %v1483_v59 = vmul.f32 %v3826_v38, %v1467_v35 }
 0x245   :  { %v2109_v5 = vsel %vm1291_vm0, %v2087_v57, 0.0  ;;  %v1525_v54 = vsel %vm1291_vm0, %v1483_v59, 0.0 }
 0x246   :  { %v2038_v50 = vpop.f32.mrf.mxu0 }
 0x247   :  { %v4112_v40 = vpop.f32.mrf.mxu1  ;;  %2505 = vadd.xlane.f32.xlu2 %v2504_v34  ;;  %1727 = vadd.xlane.f32.xlu0 %v1726_v44  ;;  %v2039_v45 = vadd.f32 %v3818_v20, %v2038_v50 }
 0x249   :  { %v2072_v56 = vmax.f32 %v2039_v45, 0.0 }
 0x24a   :  { %v4117_v0 = vpop.xlane.xlu0 %1703 }
 0x24b   :  { %v2088_v27 = vmul.f32 %v3826_v38, %v2072_v56 }
 0x24d   :  { %v2112_v8 = vsel %vm1291_vm0, %v2088_v27, 0.0 }
 0x24e   :  { %v2040_v46 = vpop.f32.mrf.mxu0 }
 0x24f   :  { %v4123_v19 = vpop.f32.mrf.mxu1  ;;  %2104 = vadd.xlane.f32.xlu2 %v2103_v52  ;;  %1520 = vadd.xlane.f32.xlu0 %v1519_v61  ;;  %v2041_v60 = vadd.f32 %v3818_v20, %v2040_v46  ;;  %v1677_v61 = vmax.f32 %v1657_v48, 0.0 }
 0x251   :  { %v2073_v7 = vmax.f32 %v2041_v60, 0.0  ;;  %v1693_v26 = vmul.f32 %v3826_v38, %v1677_v61  ;;  %v4184_v60 = vpop.xlane.xlu1 %1894 }
 0x252   :  { %v4128_v31 = vpop.xlane.xlu0 %1496 }
 0x253   :  { %v2089_v9 = vmul.f32 %v3826_v38, %v2073_v7  ;;  %v1735_v62 = vsel %vm1291_vm0, %v1693_v26, 0.0 }
 0x255   :  { %v2115_v4 = vsel %vm1291_vm0, %v2089_v9, 0.0  ;;  %v1662_v9 = vadd.f32 %v4193_v2, %v4069_v33  ;;  %v2223_v33 = vadd.f32 %v4193_v2, %v4058_v13 }
 0x256   :  { %v2043_v58 = vpop.f32.mrf.mxu0 }
 0x257   :  { %v4134_v39 = vpop.f32.mrf.mxu1  ;;  %2107 = vadd.xlane.f32.xlu2 %v2106_v25  ;;  %1730 = vadd.xlane.f32.xlu0 %v1729_v55  ;;  %v2044_v44 = vadd.f32 %v3818_v20, %v2043_v58  ;;  %v1871_v55 = vmax.f32 %v1851_v63, 0.0 }
 0x259   :  { %v2074_v32 = vmax.f32 %v2044_v44, 0.0  ;;  %v1887_v58 = vmul.f32 %v3826_v38, %v1871_v55 }
 0x25a   :  { %v4139_v3 = vpop.xlane.xlu0 %1706 }
 0x25b   :  { %v2090_v21 = vmul.f32 %v3826_v38, %v2074_v32 }
 0x25d   :  { %v2118_v25 = vsel %vm1291_vm0, %v2090_v21, 0.0 }
 0x25e   :  { %v2045_v37 = vpop.f32.mrf.mxu0 }
 0x25f   :  { %v4145_v17 = vpop.f32.mrf.mxu1  ;;  %2110 = vadd.xlane.f32.xlu2 %v2109_v5  ;;  %1329 = vadd.xlane.f32.xlu0 %v1328_v22  ;;  %v2046_v14 = vadd.f32 %v3818_v20, %v2045_v37  ;;  %v1271_v5 = vmax.f32 %v1254_v29, 0.0  ;;  %v1929_v22 = vsel %vm1291_vm0, %v1887_v58, 0.0  ;;  %v1452_v37 = vadd.f32 %v4193_v2, %v4044_v24  ;;  %v4208_v24 = vld [vmem:[%s4516_s5] ss:$0 sm:$0xff] }
 0x261   :  { %v2075_v18 = vmax.f32 %v2046_v14, 0.0 }
 0x262   :  { %v4148_v12 = vpop.xlane.xlu0 %1709 }
 0x263   :  { %v2091_v23 = vmul.f32 %v3826_v38, %v2075_v18 }
 0x265   :  { %v2121_v56 = vsel %vm1291_vm0, %v2091_v23, 0.0  ;;  %v2225_v23 = vadd.f32 %v4193_v2, %v4074_v51  ;;  %v2228_v51 = vadd.f32 %v4193_v2, %v4088_v53 }
 0x266   :  { %v2048_v46 = vpop.f32.mrf.mxu0 }
 0x267   :  { %v2242_v10 = vpop.f32.mrf.mxu1  ;;  %2113 = vadd.xlane.f32.xlu2 %v2112_v8  ;;  %1733 = vadd.xlane.f32.xlu0 %v1732_v43  ;;  %v2049_v57 = vadd.f32 %v3818_v20, %v2048_v46  ;;  %v1290_v8 = vmul.f32 %v3826_v38, %v1271_v5 }
 0x268   :  { %v2243_v34 = vadd.f32 %v3818_v20, %v2242_v10  ;;  %v1469_v10 = vmax.f32 %v1452_v37, 0.0 }
 0x269   :  { %v2076_v47 = vmax.f32 %v2049_v57, 0.0 }
 0x26a   :  { %v2270_v50 = vmax.f32 %v2243_v34, 0.0  ;;  %v4162_v28 = vpop.xlane.xlu0 %1502  ;;  %v4200_v34 = vpop.xlane.xlu1 %1299  ;;  %v1485_v48 = vmul.f32 %v4208_v24, %v1469_v10 }
 0x26b   :  { %v2092_v36 = vmul.f32 %v3826_v38, %v2076_v47 }
 0x26c   :  { %v2286_v30 = vmul.f32 %v3826_v38, %v2270_v50  ;;  %v1531_v61 = vsel %vm1291_vm0, %v1485_v48, 0.0 }
 0x26d   :  { %v2124_v35 = vsel %vm1291_vm0, %v2092_v36, 0.0 }
 0x26e   :  { %v2318_v52 = vsel %vm1291_vm0, %v2286_v30, 0.0  ;;  %v2050_v45 = vpop.f32.mrf.mxu0  ;;  %v4214_v30 = vpop.xlane.xlu2 %1487 }
 0x26f   :  { %2116 = vadd.xlane.f32.xlu2 %v2115_v4  ;;  %2319 = vadd.xlane.f32.xlu1 %v2318_v52  ;;  %v2051_v11 = vadd.f32 %v3818_v20, %v2050_v45  ;;  %v1337_v20 = vsel %vm1291_vm0, %v1290_v8, 0.0  ;;  %v1679_v52 = vmax.f32 %v1662_v9, 0.0 }
 0x270   :  { %1526 = vadd.xlane.f32.xlu0 %v1525_v54 }
 0x271   :  { %v2077_v43 = vmax.f32 %v2051_v11, 0.0  ;;  %v1695_v14 = vmul.f32 %v4208_v24, %v1679_v52 }
 0x272   :  { %v4173_v49 = vpop.xlane.xlu0 %1712  ;;  %v4223_v21 = vpop.xlane.xlu1 %1897 }
 0x273   :  { %v2093_v38 = vmul.f32 %v4208_v24, %v2077_v43  ;;  %v2264_v43 = vmax.f32 %v2228_v51, 0.0 }
 0x275   :  { %v2127_v4 = vsel %vm1291_vm0, %v2093_v38, 0.0  ;;  %v2230_v38 = vadd.f32 %v4193_v2, %v4101_v15  ;;  %v2280_v53 = vmul.f32 %v4208_v24, %v2264_v43 }
 0x276   :  { %v2053_v7 = vpop.f32.mrf.mxu0  ;;  %v4229_v45 = vpop.xlane.xlu2 %1891 }
 0x277   :  { %2119 = vadd.xlane.f32.xlu2 %v2118_v25  ;;  %v2054_v44 = vadd.f32 %v4193_v2, %v2053_v7  ;;  %v2262_v25 = vmax.f32 %v2223_v33, 0.0  ;;  %v2265_v9 = vmax.f32 %v2230_v38, 0.0  ;;  %v2300_v48 = vsel %vm1291_vm0, %v2280_v53, 0.0 }
 0x278   :  { %1736 = vadd.xlane.f32.xlu0 %v1735_v62  ;;  %v1741_v62 = vsel %vm1291_vm0, %v1695_v14, 0.0 }
 0x279   :  { %v2078_v32 = vmax.f32 %v2054_v44, 0.0  ;;  %v2278_v29 = vmul.f32 %v4208_v24, %v2262_v25 }
 0x27a   :  { %v4186_v27 = vpop.xlane.xlu0 %1311  ;;  %v1303_v58 = vpop.xlane.xlu1 %1302 }
 0x27b   :  { %v2094_v54 = vmul.f32 %v4208_v24, %v2078_v32  ;;  %v2294_v11 = vsel %vm1291_vm0, %v2278_v29, 0.0 }
 0x27d   :  { %v2130_v18 = vsel %vm1291_vm0, %v2094_v54, 0.0 }
 0x27e   :  { %v2055_v59 = vpop.f32.mrf.mxu0  ;;  %v4240_v36 = vpop.xlane.xlu2 %1493 }
 0x27f   :  { %2122 = vadd.xlane.f32.xlu2 %v2121_v56  ;;  %v2056_v46 = vadd.f32 %v4193_v2, %v2055_v59 }
 0x280   :  { %1930 = vadd.xlane.f32.xlu0 %v1929_v22  ;;  %v2263_v22 = vmax.f32 %v2225_v23, 0.0  ;;  %v2240_v23 = vadd.f32 %v4193_v2, %v4145_v17 }
 0x281   :  { %v2079_v26 = vmax.f32 %v2056_v46, 0.0 }
 0x282   :  { %v4203_v50 = vpop.xlane.xlu0 %1715  ;;  %v2279_v7 = vmul.f32 %v4208_v24, %v2263_v22  ;;  %v4248_v10 = vpop.xlane.xlu1 %1900 }
 0x283   :  { %v2095_v13 = vmul.f32 %v4208_v24, %v2079_v26 }
 0x285   :  { %v2133_v5 = vsel %vm1291_vm0, %v2095_v13, 0.0  ;;  %v2244_v13 = vpop.f32.mrf.mxu1 }
 0x286   :  { %v2058_v55 = vpop.f32.mrf.mxu0  ;;  %v1306_v44 = vpop.xlane.xlu2 %1305 }
 0x287   :  { %2125 = vadd.xlane.f32.xlu2 %v2124_v35  ;;  %v2059_v57 = vadd.f32 %v4193_v2, %v2058_v55  ;;  %v2297_v35 = vsel %vm1291_vm0, %v2279_v7, 0.0 }
 0x288   :  { %1338 = vadd.xlane.f32.xlu0 %v1337_v20 }
 0x289   :  { %v2080_v47 = vmax.f32 %v2059_v57, 0.0 }
 0x28a   :  { %v4225_v63 = vpop.xlane.xlu0 %1508  ;;  %v4258_v59 = vpop.xlane.xlu1 %1903 }
 0x28b   :  { %v2096_v37 = vmul.f32 %v4208_v24, %v2080_v47 }
 0x28d   :  { %v2136_v8 = vsel %vm1291_vm0, %v2096_v37, 0.0  ;;  %v2247_v51 = vpop.f32.mrf.mxu1 }
 0x28e   :  { %v4265_v52 = vpop.xlane.xlu2 %1499 }
 0x28f   :  { %2128 = vadd.xlane.f32.xlu2 %v2127_v4  ;;  %v2233_v4 = vadd.f32 %v4193_v2, %v4112_v40 }
 0x290   :  { %1532 = vadd.xlane.f32.xlu0 %v1531_v61 }
 0x291   :  { %v2266_v15 = vmax.f32 %v2233_v4, 0.0 }
 0x292   :  { %v4236_v56 = vpop.xlane.xlu0 %1718  ;;  %v4272_v54 = vpop.xlane.xlu1 %1906 }
 0x293   :  { %v2282_v46 = vmul.f32 %v4208_v24, %v2266_v15 }
 0x295   :  { %v2306_v26 = vsel %vm1291_vm0, %v2282_v46, 0.0  ;;  %v2249_v38 = vpop.f32.mrf.mxu1 }
 0x296   :  { %v1309_v40 = vpop.xlane.xlu2 %1308 }
 0x297   :  { %2131 = vadd.xlane.f32.xlu2 %v2130_v18  ;;  %v2238_v18 = vadd.f32 %v4193_v2, %v4134_v39  ;;  %v2269_v39 = vmax.f32 %v2240_v23, 0.0 }
 0x298   :  { %1742 = vadd.xlane.f32.xlu0 %v1741_v62 }
 0x299   :  { %v2268_v55 = vmax.f32 %v2238_v18, 0.0  ;;  %v2285_v37 = vmul.f32 %v4208_v24, %v2269_v39 }
 0x29a   :  { %v4250_v20 = vpop.xlane.xlu0 %1721  ;;  %v4280_v25 = vpop.xlane.xlu1 %1909 }
 0x29b   :  { %v2284_v29 = vmul.f32 %v4208_v24, %v2268_v55  ;;  %v2315_v17 = vsel %vm1291_vm0, %v2285_v37, 0.0  ;;  %v2060_v55 = vpop.f32.mrf.mxu0 }
 0x29e   :  { %v4285_v57 = vpop.xlane.xlu2 %1505 }
 0x29f   :  { %2134 = vadd.xlane.f32.xlu2 %v2133_v5 }
 0x2a0   :  { %2295 = vadd.xlane.f32.xlu0 %v2294_v11  ;;  %v2245_v11 = vadd.f32 %v4193_v2, %v2244_v13 }
 0x2a2   :  { %v4260_v32 = vpop.xlane.xlu0 %1320  ;;  %v1315_v47 = vpop.xlane.xlu1 %1314  ;;  %v2271_v7 = vmax.f32 %v2245_v11, 0.0 }
 0x2a6   :  { %v1318_v22 = vpop.xlane.xlu2 %1317 }
 0x2a7   :  { %2137 = vadd.xlane.f32.xlu2 %v2136_v8 }
 0x2a8   :  { %2298 = vadd.xlane.f32.xlu0 %v2297_v35  ;;  %v2287_v35 = vmul.f32 %v4208_v24, %v2271_v7 }
 0x2a9   :  { %1340 = vxpose.xlu1.b32.start [1/16] (narrow) %v4047_v6, 8  ;;  %v2281_v6 = vmul.f32 %v4208_v24, %v2265_v9 }
 0x2aa   :  { %v4274_v33 = vpop.xlane.xlu0 %1514  ;;  %v4299_v8 = vpop.xlane.xlu1 %1912  ;;  %v2321_v9 = vsel %vm1291_vm0, %v2287_v35, 0.0 }
 0x2ab   :  { %v2303_v61 = vsel %vm1291_vm0, %v2281_v6, 0.0 }
 0x2b0   :  { %2301 = vadd.xlane.f32.xlu0 %v2300_v48 }
 0x2b1   :  { %1341 = vxpose.xlu1.b32.cont [2/16] (narrow) %v4077_v1, 8  ;;  %v2235_v1 = vadd.f32 %v4193_v2, %v4123_v19 }
 0x2b2   :  { %v4282_v19 = vpop.xlane.xlu0 %1724  ;;  %v4311_v48 = vpop.xlane.xlu1 %1915 }
 0x2b3   :  { %v2267_v14 = vmax.f32 %v2235_v1, 0.0  ;;  %v2252_v1 = vpop.f32.mrf.mxu1 }
 0x2b8   :  { %2304 = vadd.xlane.f32.xlu0 %v2303_v61 }
 0x2b9   :  { %1342 = vxpose.xlu1.b32.cont [3/16] (narrow) %v4200_v34, 8  ;;  %v2283_v34 = vmul.f32 %v4208_v24, %v2267_v14 }
 0x2ba   :  { %v4291_v5 = vpop.xlane.xlu0 %1727 }
 0x2bb   :  { %v2309_v62 = vsel %vm1291_vm0, %v2283_v34, 0.0  ;;  %v2254_v13 = vpop.f32.mrf.mxu1 }
 0x2c0   :  { %2307 = vadd.xlane.f32.xlu0 %v2306_v26 }
 0x2c1   :  { %1343 = vxpose.xlu1.b32.cont [4/16] (narrow) %v1303_v58, 8  ;;  %v2312_v58 = vsel %vm1291_vm0, %v2284_v29, 0.0 }
 0x2c2   :  { %v4301_v43 = vpop.xlane.xlu0 %1520 }
 0x2c8   :  { %2310 = vadd.xlane.f32.xlu0 %v2309_v62 }
 0x2c9   :  { %1344 = vxpose.xlu1.b32.cont [5/16] (narrow) %v1306_v44, 8  ;;  %v4305_v44 = vpop.xlane.xlu2 %1511 }
 0x2ca   :  { %v4313_v4 = vpop.xlane.xlu0 %1730 }
 0x2d0   :  { %2313 = vadd.xlane.f32.xlu0 %v2312_v58  ;;  %1534 = vxpose.xlu2.b32.start [1/16] (narrow) %v4214_v30, 8  ;;  %v2248_v30 = vadd.f32 %v4193_v2, %v2247_v51  ;;  %v2257_v51 = vpop.f32.mrf.mxu1 }
 0x2d1   :  { %1345 = vxpose.xlu1.b32.cont [6/16] (narrow) %v1309_v40, 8  ;;  %v4315_v6 = vpop.xlane.xlu2 %1517  ;;  %v4321_v40 = vpop.xlane.xlu1 %1918 }
 0x2d2   :  { %v2272_v53 = vmax.f32 %v2248_v30, 0.0  ;;  %v1330_v14 = vpop.xlane.xlu0 %1329 }
 0x2d8   :  { %2316 = vadd.xlane.f32.xlu0 %v2315_v17  ;;  %1535 = vxpose.xlu2.b32.cont [2/16] (narrow) %v4090_v41, 8  ;;  %v2250_v41 = vadd.f32 %v4193_v2, %v2249_v38  ;;  %v2258_v17 = vadd.f32 %v4193_v2, %v2257_v51 }
 0x2d9   :  { %1346 = vxpose.xlu1.b32.cont [7/16] (narrow) %v4186_v27, 8  ;;  %v2288_v27 = vmul.f32 %v4208_v24, %v2272_v53  ;;  %v4324_v34 = vpop.xlane.xlu2 %1921  ;;  %v1324_v39 = vpop.xlane.xlu1 %1323 }
 0x2da   :  { %v2273_v15 = vmax.f32 %v2250_v41, 0.0  ;;  %v4331_v58 = vpop.xlane.xlu0 %1733  ;;  %v2276_v38 = vmax.f32 %v2258_v17, 0.0 }
 0x2db   :  { %v2324_v61 = vsel %vm1291_vm0, %v2288_v27, 0.0 }
 0x2dc   :  { %v2289_v46 = vmul.f32 %v4208_v24, %v2273_v15  ;;  %v4350_v15 = vpop.f32.mrf.mxu3 }
 0x2de   :  { %v2327_v18 = vsel %vm1291_vm0, %v2289_v46, 0.0  ;;  %v2259_v46 = vpop.f32.mrf.mxu1 }
 0x2e0   :  { %2322 = vadd.xlane.f32.xlu0 %v2321_v9  ;;  %1536 = vxpose.xlu2.b32.cont [3/16] (narrow) %v4240_v36, 8  ;;  %v2253_v36 = vadd.f32 %v4193_v2, %v2252_v1 }
 0x2e1   :  { %1347 = vxpose.xlu1.b32.cont [8/16] (narrow) %v1315_v47, 8  ;;  %v1327_v47 = vpop.xlane.xlu2 %1326  ;;  %v4342_v35 = vpop.xlane.xlu1 %1924 }
 0x2e2   :  { %v2274_v26 = vmax.f32 %v2253_v36, 0.0 }
 0x2e3   :  { %v1527_v7 = vpop.xlane.xlu0 %1526 }
 0x2e4   :  { %v2290_v62 = vmul.f32 %v4208_v24, %v2274_v26 }
 0x2e6   :  { %v2330_v29 = vsel %vm1291_vm0, %v2290_v62, 0.0  ;;  %v2628_v62 = vpop.f32.mrf.mxu3 }
 0x2e8   :  { %2325 = vadd.xlane.f32.xlu0 %v2324_v61  ;;  %1537 = vxpose.xlu2.b32.cont [4/16] (narrow) %v4128_v31, 8  ;;  %v2061_v31 = vadd.f32 %v4193_v2, %v2060_v55 }
 0x2e9   :  { %1348 = vxpose.xlu1.b32.cont [9/16] (narrow) %v1318_v22, 8  ;;  %v4336_v22 = vpop.f32.mrf.mxu0  ;;  %v1524_v30 = vpop.xlane.xlu2 %1523 }
 0x2ea   :  { %v2081_v23 = vmax.f32 %v2061_v31, 0.0  ;;  %v1333_v26 = vpop.xlane.xlu1 %1332 }
 0x2eb   :  { %v4348_v27 = vpop.xlane.xlu0 %1736 }
 0x2f0   :  { %2328 = vadd.xlane.f32.xlu0 %v2327_v18  ;;  %1538 = vxpose.xlu2.b32.cont [5/16] (narrow) %v4265_v52, 8  ;;  %v2255_v52 = vadd.f32 %v4193_v2, %v2254_v13 }
 0x2f1   :  { %1349 = vxpose.xlu1.b32.cont [10/16] (narrow) %v4260_v32, 8  ;;  %v2097_v32 = vmul.f32 %v4208_v24, %v2081_v23  ;;  %v2065_v9 = vpop.f32.mrf.mxu0  ;;  %v1928_v61 = vpop.xlane.xlu2 %1927  ;;  %v2629_v23 = vadd.f32 %v4193_v2, %v2628_v62 }
 0x2f2   :  { %v2275_v11 = vmax.f32 %v2255_v52, 0.0  ;;  %v2066_v41 = vadd.f32 %v4193_v2, %v2065_v9 }
 0x2f3   :  { %v2139_v37 = vsel %vm1291_vm0, %v2097_v32, 0.0  ;;  %v1931_v18 = vpop.xlane.xlu0 %1930 }
 0x2f4   :  { %v2083_v1 = vmax.f32 %v2066_v41, 0.0 }
 0x2f8   :  { %2331 = vadd.xlane.f32.xlu0 %v2330_v29  ;;  %1539 = vxpose.xlu2.b32.cont [6/16] (narrow) %v4162_v28, 8  ;;  %v2291_v28 = vmul.f32 %v4208_v24, %v2275_v11 }
 0x2f9   :  { %1350 = vxpose.xlu1.b32.cont [11/16] (narrow) %v1324_v39, 8  ;;  %v1336_v13 = vpop.xlane.xlu2 %1335 }
 0x2fa   :  { %v2333_v53 = vsel %vm1291_vm0, %v2291_v28, 0.0 }
 0x300   :  { %2140 = vadd.xlane.f32.xlu0 %v2139_v37  ;;  %1540 = vxpose.xlu2.b32.cont [7/16] (narrow) %v4285_v57, 8  ;;  %v2292_v57 = vmul.f32 %v4208_v24, %v2276_v38 }
 0x301   :  { %1351 = vxpose.xlu1.b32.cont [12/16] (narrow) %v1327_v47, 8  ;;  %v1339_v47 = vpop.xlane.xlu0 %1338 }
 0x302   :  { %v2336_v36 = vsel %vm1291_vm0, %v2292_v57, 0.0 }
 0x308   :  { %2334 = vadd.xlane.f32.xlu0 %v2333_v53  ;;  %1541 = vxpose.xlu2.b32.cont [8/16] (narrow) %v4225_v63, 8  ;;  %v2260_v63 = vadd.f32 %v4193_v2, %v2259_v46 }
 0x309   :  { %1352 = vxpose.xlu1.b32.cont [13/16] (narrow) %v1330_v14, 8  ;;  %v2099_v14 = vmul.f32 %v4208_v24, %v2083_v1 }
 0x30a   :  { %v2277_v55 = vmax.f32 %v2260_v63, 0.0 }
 0x30b   :  { %v2145_v31 = vsel %vm1291_vm0, %v2099_v14, 0.0 }
 0x30c   :  { %v2293_v29 = vmul.f32 %v4208_v24, %v2277_v55 }
 0x30e   :  { %v2339_v39 = vsel %vm1291_vm0, %v2293_v29, 0.0 }
 0x310   :  { %2337 = vadd.xlane.f32.xlu0 %v2336_v36  ;;  %1542 = vxpose.xlu2.b32.cont [9/16] (narrow) %v4305_v44, 8  ;;  %v2667_v44 = vmax.f32 %v2629_v23, 0.0 }
 0x311   :  { %1353 = vxpose.xlu1.b32.cont [14/16] (narrow) %v1333_v26, 8 }
 0x312   :  { %v2683_v52 = vmul.f32 %v4208_v24, %v2667_v44 }
 0x314   :  { %v2701_v32 = vsel %vm1291_vm0, %v2683_v52, 0.0 }
 0x318   :  { %2146 = vadd.xlane.f32.xlu0 %v2145_v31  ;;  %1543 = vxpose.xlu2.b32.cont [10/16] (narrow) %v4274_v33, 8  ;;  %v1530_v33 = vpop.xlane.xlu2 %1529 }
 0x319   :  { %1354 = vxpose.xlu1.b32.cont [15/16] (narrow) %v1336_v13, 8 }
 0x320   :  { %2340 = vadd.xlane.f32.xlu0 %v2339_v39  ;;  %1544 = vxpose.xlu2.b32.cont [11/16] (narrow) %v4315_v6, 8  ;;  %v1533_v6 = vpop.xlane.xlu0 %1532 }
 0x321   :  { %1355 = vxpose.xlu1.b32.end [16/16] (narrow) %v1339_v47, 8 }
 0x328   :  { %2702 = vadd.xlane.f32.xlu0 %v2701_v32  ;;  %1545 = vxpose.xlu2.b32.cont [12/16] (narrow) %v4301_v43, 8 }
 0x329   :  { %1938 = vxpose.xlu1.b32.start [1/16] (narrow) %v4229_v45, 8 }
 0x330   :  { %1546 = vxpose.xlu2.b32.cont [13/16] (narrow) %v1524_v30, 8 }
 0x331   :  { %1939 = vxpose.xlu1.b32.cont [2/16] (narrow) %v4184_v60, 8  ;;  %v1937_v60 = vpop.xlane.xlu2 %1936 }
 0x338   :  { %1547 = vxpose.xlu2.b32.cont [14/16] (narrow) %v1527_v7, 8 }
 0x339   :  { %1940 = vxpose.xlu1.b32.cont [3/16] (narrow) %v4223_v21, 8 }
 0x340   :  { %1548 = vxpose.xlu2.b32.cont [15/16] (narrow) %v1530_v33, 8 }
 0x341   :  { %1941 = vxpose.xlu1.b32.cont [4/16] (narrow) %v4248_v10, 8  ;;  %v2064_v10 = vadd.f32 %v4193_v2, %v4336_v22 }
 0x348   :  { %1549 = vxpose.xlu2.b32.end [16/16] (narrow) %v1533_v6, 8 }
 0x349   :  { %1942 = vxpose.xlu1.b32.cont [5/16] (narrow) %v4258_v59, 8  ;;  %v2082_v59 = vmax.f32 %v2064_v10, 0.0 }
 0x351   :  { %1744 = vxpose.xlu0.b32.start [1/16] (narrow) %v4061_v16, 8  ;;  %1943 = vxpose.xlu1.b32.cont [6/16] (narrow) %v4272_v54, 8  ;;  %v2102_v16 = vpop.xlane.xlu2 %2101 }
 0x359   :  { %1745 = vxpose.xlu0.b32.cont [2/16] (narrow) %v4106_v42, 8  ;;  %1944 = vxpose.xlu1.b32.cont [7/16] (narrow) %v4280_v25, 8  ;;  %v4384_v42 = vpop.xlane.xlu2 %2505  ;;  %v2098_v25 = vmul.f32 %v4208_v24, %v2082_v59 }
 0x361   :  { %1746 = vxpose.xlu0.b32.cont [3/16] (narrow) %v4117_v0, 8  ;;  %1945 = vxpose.xlu1.b32.cont [8/16] (narrow) %v4299_v8, 8  ;;  %v2105_v0 = vpop.xlane.xlu2 %2104 }
 0x369   :  { %1747 = vxpose.xlu0.b32.cont [4/16] (narrow) %v4139_v3, 8  ;;  %1946 = vxpose.xlu1.b32.cont [9/16] (narrow) %v4311_v48, 8  ;;  %v1740_v3 = vpop.xlane.xlu1 %1739 }
 0x371   :  { %1748 = vxpose.xlu0.b32.cont [5/16] (narrow) %v4148_v12, 8  ;;  %1947 = vxpose.xlu1.b32.cont [10/16] (narrow) %v4321_v40, 8  ;;  %v2108_v12 = vpop.xlane.xlu2 %2107  ;;  %v1934_v21 = vpop.xlane.xlu1 %1933 }
 0x379   :  { %1749 = vxpose.xlu0.b32.cont [6/16] (narrow) %v4173_v49, 8  ;;  %1948 = vxpose.xlu1.b32.cont [11/16] (narrow) %v4324_v34, 8  ;;  %v1743_v49 = vpop.xlane.xlu0 %1742  ;;  %v2111_v45 = vpop.xlane.xlu2 %2110 }
 0x37a   :  { %v2434_v34 = vpop.f32.mrf.mxu2  ;;  %v2320_v29 = vpop.xlane.xlu1 %2319 }
 0x381   :  { %1750 = vxpose.xlu0.b32.cont [7/16] (narrow) %v4203_v50, 8  ;;  %1949 = vxpose.xlu1.b32.cont [12/16] (narrow) %v4342_v35, 8  ;;  %v2296_v50 = vpop.xlane.xlu0 %2295  ;;  %v2435_v35 = vadd.f32 %v4193_v2, %v2434_v34 }
 0x382   :  { %v2437_v11 = vpop.f32.mrf.mxu2 }
 0x383   :  { %v2473_v38 = vmax.f32 %v2435_v35, 0.0  ;;  %v2438_v41 = vadd.f32 %v4193_v2, %v2437_v11 }
 0x385   :  { %v2489_v57 = vmul.f32 %v4208_v24, %v2473_v38 }
 0x387   :  { %v2507_v1 = vsel %vm1291_vm0, %v2489_v57, 0.0 }
 0x389   :  { %1751 = vxpose.xlu0.b32.cont [8/16] (narrow) %v4236_v56, 8  ;;  %1950 = vxpose.xlu1.b32.cont [13/16] (narrow) %v1928_v61, 8  ;;  %v2114_v56 = vpop.xlane.xlu2 %2113  ;;  %v2474_v61 = vmax.f32 %v2438_v41, 0.0 }
 0x38a   :  { %v2439_v7 = vpop.f32.mrf.mxu2 }
 0x38b   :  { %v2440_v26 = vadd.f32 %v4193_v2, %v2439_v7  ;;  %v2490_v63 = vmul.f32 %v4208_v24, %v2474_v61  ;;  %v1356_v7 = vpop.trf.xlu1 }
 0x38c   :  { %1372 = vst [vmem:[#allocation5] sm:$0x1] %v1356_v7 }
 0x38d   :  { %v2510_v55 = vsel %vm1291_vm0, %v2490_v63, 0.0  ;;  %v2631_v63 = vpop.f32.mrf.mxu3 }
 0x391   :  { %1752 = vxpose.xlu0.b32.cont [9/16] (narrow) %v4250_v20, 8  ;;  %1951 = vxpose.xlu1.b32.cont [14/16] (narrow) %v1931_v18, 8  ;;  %v2299_v20 = vpop.xlane.xlu0 %2298  ;;  %v2117_v54 = vpop.xlane.xlu2 %2116  ;;  %v2475_v18 = vmax.f32 %v2440_v26, 0.0 }
 0x392   :  { %v2442_v30 = vpop.f32.mrf.mxu2 }
 0x393   :  { %v2443_v31 = vadd.f32 %v4193_v2, %v2442_v30  ;;  %v2491_v13 = vmul.f32 %v4208_v24, %v2475_v18 }
 0x395   :  { %v2476_v23 = vmax.f32 %v2443_v31, 0.0  ;;  %v2513_v44 = vsel %vm1291_vm0, %v2491_v13, 0.0 }
 0x397   :  { %v2492_v52 = vmul.f32 %v4208_v24, %v2476_v23 }
 0x399   :  { %1753 = vxpose.xlu0.b32.cont [10/16] (narrow) %v4282_v19, 8  ;;  %1952 = vxpose.xlu1.b32.cont [15/16] (narrow) %v1934_v21, 8  ;;  %v2142_v19 = vsel %vm1291_vm0, %v2098_v25, 0.0  ;;  %v2120_v8 = vpop.xlane.xlu2 %2119  ;;  %v2516_v6 = vsel %vm1291_vm0, %v2492_v52, 0.0 }
 0x3a1   :  { %1754 = vxpose.xlu0.b32.cont [11/16] (narrow) %v4291_v5, 8  ;;  %1953 = vxpose.xlu1.b32.end [16/16] (narrow) %v1937_v60, 8  ;;  %v2302_v5 = vpop.xlane.xlu0 %2301  ;;  %v4397_v48 = vpop.xlane.xlu2 %2122 }
 0x3a9   :  { %1755 = vxpose.xlu0.b32.cont [12/16] (narrow) %v4313_v4, 8  ;;  %v2305_v43 = vpop.xlane.xlu0 %2304  ;;  %v4399_v40 = vpop.xlane.xlu2 %2125 }
 0x3b1   :  { %1756 = vxpose.xlu0.b32.cont [13/16] (narrow) %v4331_v58, 8  ;;  %v2308_v4 = vpop.xlane.xlu0 %2307  ;;  %v4401_v22 = vpop.xlane.xlu2 %2128 }
 0x3b9   :  { %1757 = vxpose.xlu0.b32.cont [14/16] (narrow) %v4348_v27, 8  ;;  %2143 = vadd.xlane.f32.xlu2 %v2142_v19  ;;  %v2311_v58 = vpop.xlane.xlu0 %2310  ;;  %v4403_v51 = vpop.xlane.xlu2 %2131 }
 0x3ba   :  { %v2444_v27 = vpop.f32.mrf.mxu2 }
 0x3bb   :  { %v2445_v47 = vadd.f32 %v4193_v2, %v2444_v27 }
 0x3bd   :  { %v2477_v33 = vmax.f32 %v2445_v47, 0.0 }
 0x3c1   :  { %1758 = vxpose.xlu0.b32.cont [15/16] (narrow) %v1740_v3, 8  ;;  %v2314_v37 = vpop.xlane.xlu0 %2313  ;;  %v4405_v28 = vpop.xlane.xlu2 %2134 }
 0x3c2   :  { %v2447_v14 = vpop.f32.mrf.mxu2 }
 0x3c9   :  { %1759 = vxpose.xlu0.b32.end [16/16] (narrow) %v1743_v49, 8  ;;  %v2317_v17 = vpop.xlane.xlu0 %2316  ;;  %v4408_v9 = vpop.xlane.xlu2 %2137 }
 0x3ca   :  { %v2449_v39 = vpop.f32.mrf.mxu2 }
 0x3cb   :  { %v2450_v49 = vadd.f32 %v4193_v2, %v2449_v39 }
 0x3cd   :  { %v1954_v41 = vpop.trf.xlu1 }
 0x3ce   :  { %1970 = vst [vmem:[#allocation5 + $0x3] sm:$0x1] %v1954_v41 }
 0x3d1   :  { %2342 = vxpose.xlu0.b32.start [1/16] (narrow) %v2296_v50, 8  ;;  %v2323_v53 = vpop.xlane.xlu0 %2322  ;;  %v1550_v46 = vpop.trf.xlu2 }
 0x3d2   :  { %1566 = vst [vmem:[#allocation5 + $0x1] sm:$0x1] %v1550_v46  ;;  %v2452_v60 = vpop.f32.mrf.mxu2 }
 0x3d9   :  { %2343 = vxpose.xlu0.b32.cont [2/16] (narrow) %v2299_v20, 8  ;;  %v2326_v36 = vpop.xlane.xlu0 %2325  ;;  %v2453_v20 = vadd.f32 %v4193_v2, %v2452_v60 }
 0x3da   :  { %v2454_v50 = vpop.f32.mrf.mxu2 }
 0x3db   :  { %v2480_v19 = vmax.f32 %v2453_v20, 0.0 }
 0x3e1   :  { %2344 = vxpose.xlu0.b32.cont [3/16] (narrow) %v2302_v5, 8  ;;  %v2329_v62 = vpop.xlane.xlu0 %2328 }
 0x3e2   :  { %2148 = vxpose.xlu2.b32.start [1/16] (narrow) %v2102_v16, 8  ;;  %v2448_v16 = vadd.f32 %v4193_v2, %v2447_v14  ;;  %v2457_v25 = vpop.f32.mrf.mxu2 }
 0x3e4   :  { %v2478_v3 = vmax.f32 %v2448_v16, 0.0 }
 0x3e9   :  { %2345 = vxpose.xlu0.b32.cont [4/16] (narrow) %v2305_v43, 8  ;;  %v2332_v32 = vpop.xlane.xlu0 %2331 }
 0x3ea   :  { %2149 = vxpose.xlu2.b32.cont [2/16] (narrow) %v2105_v0, 8  ;;  %v2493_v0 = vmul.f32 %v4208_v24, %v2477_v33  ;;  %v2459_v34 = vpop.f32.mrf.mxu2 }
 0x3eb   :  { %v2460_v30 = vadd.f32 %v4193_v2, %v2459_v34 }
 0x3ec   :  { %v2519_v21 = vsel %vm1291_vm0, %v2493_v0, 0.0 }
 0x3f1   :  { %2346 = vxpose.xlu0.b32.cont [5/16] (narrow) %v2308_v4, 8 }
 0x3f2   :  { %2150 = vxpose.xlu2.b32.cont [3/16] (narrow) %v2108_v12, 8  ;;  %v2141_v12 = vpop.xlane.xlu0 %2140 }
 0x3f9   :  { %2347 = vxpose.xlu0.b32.cont [6/16] (narrow) %v2311_v58, 8  ;;  %v2458_v58 = vadd.f32 %v4193_v2, %v2457_v25 }
 0x3fa   :  { %2151 = vxpose.xlu2.b32.cont [4/16] (narrow) %v2111_v45, 8  ;;  %v2494_v45 = vmul.f32 %v4208_v24, %v2478_v3  ;;  %v2335_v59 = vpop.xlane.xlu0 %2334 }
 0x3fc   :  { %v2522_v10 = vsel %vm1291_vm0, %v2494_v45, 0.0 }
 0x401   :  { %2348 = vxpose.xlu0.b32.cont [7/16] (narrow) %v2314_v37, 8  ;;  %2508 = vadd.xlane.f32.xlu1 %v2507_v1  ;;  %v2482_v37 = vmax.f32 %v2458_v58, 0.0 }
 0x402   :  { %2152 = vxpose.xlu2.b32.cont [5/16] (narrow) %v2114_v56, 8  ;;  %v2479_v56 = vmax.f32 %v2450_v49, 0.0  ;;  %v2338_v43 = vpop.xlane.xlu0 %2337 }
 0x403   :  { %v2498_v35 = vmul.f32 %v4208_v24, %v2482_v37 }
 0x409   :  { %2349 = vxpose.xlu0.b32.cont [8/16] (narrow) %v2317_v17, 8  ;;  %2511 = vadd.xlane.f32.xlu1 %v2510_v55  ;;  %v2462_v17 = vpop.f32.mrf.mxu2 }
 0x40a   :  { %2153 = vxpose.xlu2.b32.cont [6/16] (narrow) %v2117_v54, 8  ;;  %v2495_v54 = vmul.f32 %v4208_v24, %v2479_v56  ;;  %v2147_v11 = vpop.xlane.xlu0 %2146  ;;  %v2463_v57 = vadd.f32 %v4193_v2, %v2462_v17 }
 0x40c   :  { %v2525_v5 = vsel %vm1291_vm0, %v2495_v54, 0.0  ;;  %v2484_v61 = vmax.f32 %v2463_v57, 0.0 }
 0x40e   :  { %v2500_v26 = vmul.f32 %v4208_v24, %v2484_v61 }
 0x410   :  { %v2540_v55 = vsel %vm1291_vm0, %v2500_v26, 0.0 }
 0x411   :  { %2350 = vxpose.xlu0.b32.cont [9/16] (narrow) %v2320_v29, 8  ;;  %2514 = vadd.xlane.f32.xlu1 %v2513_v44  ;;  %v2464_v27 = vpop.f32.mrf.mxu2  ;;  %v2633_v29 = vpop.f32.mrf.mxu3 }
 0x412   :  { %2154 = vxpose.xlu2.b32.cont [7/16] (narrow) %v2120_v8, 8  ;;  %v2455_v8 = vadd.f32 %v4193_v2, %v2454_v50  ;;  %v2341_v38 = vpop.xlane.xlu0 %2340  ;;  %v2465_v46 = vadd.f32 %v4193_v2, %v2464_v27  ;;  %v2634_v50 = vadd.f32 %v4193_v2, %v2633_v29 }
 0x414   :  { %v2481_v4 = vmax.f32 %v2455_v8, 0.0  ;;  %v2485_v18 = vmax.f32 %v2465_v46, 0.0 }
 0x419   :  { %2351 = vxpose.xlu0.b32.cont [10/16] (narrow) %v2323_v53, 8  ;;  %2517 = vadd.xlane.f32.xlu1 %v2516_v6  ;;  %v2534_v53 = vsel %vm1291_vm0, %v2498_v35, 0.0  ;;  %v2467_v14 = vpop.f32.mrf.mxu2  ;;  %v2636_v33 = vpop.f32.mrf.mxu3  ;;  %v2627_v6 = vadd.f32 %v4193_v2, %v4350_v15 }
 0x41a   :  { %2155 = vxpose.xlu2.b32.cont [8/16] (narrow) %v4397_v48, 8  ;;  %v2496_v48 = vmul.f32 %v4208_v24, %v2480_v19  ;;  %v2468_v31 = vadd.f32 %v4193_v2, %v2467_v14  ;;  %v2637_v54 = vadd.f32 %v4193_v2, %v2636_v33 }
 0x41b   :  { %v2666_v16 = vmax.f32 %v2627_v6, 0.0 }
 0x41c   :  { %v2486_v13 = vmax.f32 %v2468_v31, 0.0 }
 0x41e   :  { %v2502_v47 = vmul.f32 %v4208_v24, %v2486_v13 }
 0x421   :  { %2352 = vxpose.xlu0.b32.cont [11/16] (narrow) %v2326_v36, 8  ;;  %2520 = vadd.xlane.f32.xlu1 %v2519_v21  ;;  %v2469_v44 = vpop.f32.mrf.mxu2  ;;  %v2638_v21 = vpop.f32.mrf.mxu3 }
 0x422   :  { %2156 = vxpose.xlu2.b32.cont [9/16] (narrow) %v4399_v40, 8  ;;  %v2528_v40 = vsel %vm1291_vm0, %v2496_v48, 0.0  ;;  %v2470_v39 = vadd.f32 %v4193_v2, %v2469_v44  ;;  %v2639_v48 = vadd.f32 %v4193_v2, %v2638_v21 }
 0x424   :  { %v2487_v52 = vmax.f32 %v2470_v39, 0.0  ;;  %v2671_v34 = vmax.f32 %v2639_v48, 0.0 }
 0x426   :  { %v2503_v60 = vmul.f32 %v4208_v24, %v2487_v52 }
 0x428   :  { %v2549_v0 = vsel %vm1291_vm0, %v2503_v60, 0.0 }
 0x429   :  { %2353 = vxpose.xlu0.b32.cont [12/16] (narrow) %v2329_v62, 8  ;;  %2523 = vadd.xlane.f32.xlu1 %v2522_v10  ;;  %v2501_v62 = vmul.f32 %v4208_v24, %v2485_v18  ;;  %v2641_v10 = vpop.f32.mrf.mxu3 }
 0x42a   :  { %2157 = vxpose.xlu2.b32.cont [10/16] (narrow) %v4401_v22, 8  ;;  %v2497_v22 = vmul.f32 %v4208_v24, %v2481_v4 }
 0x42b   :  { %v2543_v23 = vsel %vm1291_vm0, %v2501_v62, 0.0 }
 0x42c   :  { %v2144_v36 = vpop.xlane.xlu2 %2143 }
 0x431   :  { %2354 = vxpose.xlu0.b32.cont [13/16] (narrow) %v2332_v32, 8  ;;  %2526 = vadd.xlane.f32.xlu1 %v2525_v5  ;;  %v2546_v32 = vsel %vm1291_vm0, %v2502_v47, 0.0  ;;  %v2670_v5 = vmax.f32 %v2637_v54, 0.0 }
 0x432   :  { %2158 = vxpose.xlu2.b32.cont [11/16] (narrow) %v4403_v51, 8  ;;  %v2531_v51 = vsel %vm1291_vm0, %v2497_v22, 0.0 }
 0x439   :  { %2355 = vxpose.xlu0.b32.cont [14/16] (narrow) %v2335_v59, 8  ;;  %2529 = vadd.xlane.f32.xlu1 %v2528_v40  ;;  %v2669_v59 = vmax.f32 %v2634_v50, 0.0  ;;  %v2686_v40 = vmul.f32 %v4208_v24, %v2670_v5 }
 0x43a   :  { %2159 = vxpose.xlu2.b32.cont [12/16] (narrow) %v4405_v28, 8  ;;  %v2483_v28 = vmax.f32 %v2460_v30, 0.0 }
 0x43b   :  { %v2685_v19 = vmul.f32 %v4208_v24, %v2669_v59  ;;  %v2710_v58 = vsel %vm1291_vm0, %v2686_v40, 0.0 }
 0x43d   :  { %v2707_v8 = vsel %vm1291_vm0, %v2685_v19, 0.0 }
 0x441   :  { %2356 = vxpose.xlu0.b32.cont [15/16] (narrow) %v2338_v43, 8  ;;  %2532 = vadd.xlane.f32.xlu1 %v2531_v51  ;;  %v2643_v43 = vpop.f32.mrf.mxu3  ;;  %v2687_v51 = vmul.f32 %v4208_v24, %v2671_v34 }
 0x442   :  { %2160 = vxpose.xlu2.b32.cont [13/16] (narrow) %v4408_v9, 8  ;;  %v2499_v9 = vmul.f32 %v4208_v24, %v2483_v28  ;;  %v2644_v30 = vadd.f32 %v4193_v2, %v2643_v43 }
 0x443   :  { %v2713_v17 = vsel %vm1291_vm0, %v2687_v51, 0.0 }
 0x444   :  { %v2537_v1 = vsel %vm1291_vm0, %v2499_v9, 0.0 }
 0x449   :  { %2357 = vxpose.xlu0.b32.end [16/16] (narrow) %v2341_v38, 8  ;;  %2535 = vadd.xlane.f32.xlu1 %v2534_v53  ;;  %v2646_v22 = vpop.f32.mrf.mxu3  ;;  %v2673_v53 = vmax.f32 %v2644_v30, 0.0 }
 0x44a   :  { %2161 = vxpose.xlu2.b32.cont [14/16] (narrow) %v2141_v12, 8  ;;  %v2682_v12 = vmul.f32 %v4208_v24, %v2666_v16  ;;  %v2647_v57 = vadd.f32 %v4193_v2, %v2646_v22  ;;  %v2703_v22 = vpop.xlane.xlu0 %2702 }
 0x44b   :  { %v2689_v27 = vmul.f32 %v4208_v24, %v2673_v53 }
 0x44c   :  { %v2698_v45 = vsel %vm1291_vm0, %v2682_v12, 0.0  ;;  %v3204_v12 = vld [vmem:[%s4515_s4] ss:$0 sm:$0xff] }
 0x451   :  { %2538 = vadd.xlane.f32.xlu1 %v2537_v1  ;;  %v2648_v38 = vpop.f32.mrf.mxu3  ;;  %v2674_v1 = vmax.f32 %v2647_v57, 0.0 }
 0x452   :  { %2162 = vxpose.xlu2.b32.cont [15/16] (narrow) %v2144_v36, 8  ;;  %v2719_v36 = vsel %vm1291_vm0, %v2689_v27, 0.0  ;;  %v2649_v46 = vadd.f32 %v4193_v2, %v2648_v38 }
 0x454   :  { %v2675_v14 = vmax.f32 %v2649_v46, 0.0 }
 0x456   :  { %v2691_v13 = vmul.f32 %v4208_v24, %v2675_v14 }
 0x458   :  { %v2725_v29 = vsel %vm1291_vm0, %v2691_v13, 0.0 }
 0x459   :  { %2541 = vadd.xlane.f32.xlu1 %v2540_v55  ;;  %v2651_v61 = vpop.f32.mrf.mxu3 }
 0x45a   :  { %2163 = vxpose.xlu2.b32.end [16/16] (narrow) %v2147_v11, 8  ;;  %v2642_v11 = vadd.f32 %v4193_v2, %v2641_v10  ;;  %v2652_v31 = vadd.f32 %v4193_v2, %v2651_v61 }
 0x45c   :  { %v2672_v7 = vmax.f32 %v2642_v11, 0.0 }
 0x45e   :  { %v2688_v28 = vmul.f32 %v4208_v24, %v2672_v7 }
 0x460   :  { %v2716_v41 = vsel %vm1291_vm0, %v2688_v28, 0.0 }
 0x461   :  { %2544 = vadd.xlane.f32.xlu1 %v2543_v23  ;;  %v2653_v55 = vpop.f32.mrf.mxu3  ;;  %v2676_v23 = vmax.f32 %v2652_v31, 0.0 }
 0x462   :  { %2552 = vxpose.xlu2.b32.start [1/16] (narrow) %v4384_v42, 8  ;;  %v2632_v42 = vadd.f32 %v4193_v2, %v2631_v63  ;;  %v2690_v63 = vmul.f32 %v4208_v24, %v2674_v1  ;;  %v2654_v39 = vadd.f32 %v4193_v2, %v2653_v55 }
 0x463   :  { %v2692_v52 = vmul.f32 %v4208_v24, %v2676_v23 }
 0x464   :  { %v2668_v49 = vmax.f32 %v2632_v42, 0.0  ;;  %v2722_v18 = vsel %vm1291_vm0, %v2690_v63, 0.0 }
 0x465   :  { %v2728_v33 = vsel %vm1291_vm0, %v2692_v52, 0.0 }
 0x466   :  { %v2684_v56 = vmul.f32 %v4208_v24, %v2668_v49 }
 0x468   :  { %v2704_v20 = vsel %vm1291_vm0, %v2684_v56, 0.0 }
 0x469   :  { %2547 = vadd.xlane.f32.xlu1 %v2546_v32  ;;  %v2656_v44 = vpop.f32.mrf.mxu3  ;;  %v2677_v32 = vmax.f32 %v2654_v39, 0.0 }
 0x46a   :  { %v2657_v6 = vadd.f32 %v4193_v2, %v2656_v44 }
 0x46b   :  { %v2693_v16 = vmul.f32 %v4208_v24, %v2677_v32 }
 0x46c   :  { %v2678_v42 = vmax.f32 %v2657_v6, 0.0 }
 0x471   :  { %2550 = vadd.xlane.f32.xlu1 %v2549_v0  ;;  %v2658_v0 = vpop.f32.mrf.mxu3 }
 0x472   :  { %v2659_v21 = vadd.f32 %v3204_v12, %v2658_v0 }
 0x474   :  { %v2509_v3 = vpop.xlane.xlu1 %2508  ;;  %v2679_v2 = vmax.f32 %v2659_v21, 0.0 }
 0x475   :  { %2553 = vxpose.xlu2.b32.cont [2/16] (narrow) %v2509_v3, 8  ;;  %v2731_v3 = vsel %vm1291_vm0, %v2693_v16, 0.0 }
 0x476   :  { %v2695_v59 = vmul.f32 %v4208_v24, %v2679_v2 }
 0x478   :  { %v2737_v54 = vsel %vm1291_vm0, %v2695_v59, 0.0 }
 0x479   :  { %2699 = vadd.xlane.f32.xlu1 %v2698_v45  ;;  %v2694_v45 = vmul.f32 %v4208_v24, %v2678_v42  ;;  %v2661_v50 = vpop.f32.mrf.mxu3 }
 0x47a   :  { %v2662_v56 = vadd.f32 %v3204_v12, %v2661_v50 }
 0x47b   :  { %v2164_v57 = vpop.trf.xlu2 }
 0x47c   :  { %v2512_v15 = vpop.xlane.xlu1 %2511  ;;  %2180 = vst [vmem:[#allocation5 + $0x4] sm:$0x1] %v2164_v57 }
 0x47d   :  { %2554 = vxpose.xlu2.b32.cont [3/16] (narrow) %v2512_v15, 8  ;;  %v2734_v15 = vsel %vm1291_vm0, %v2694_v45, 0.0 }
 0x481   :  { %2705 = vadd.xlane.f32.xlu1 %v2704_v20  ;;  %v2680_v20 = vmax.f32 %v2662_v56, 0.0 }
 0x484   :  { %v2515_v25 = vpop.xlane.xlu1 %2514 }
 0x485   :  { %2555 = vxpose.xlu2.b32.cont [4/16] (narrow) %v2515_v25, 8  ;;  %v2663_v25 = vpop.f32.mrf.mxu3 }
 0x486   :  { %v2664_v19 = vadd.f32 %v3204_v12, %v2663_v25 }
 0x488   :  { %v2681_v48 = vmax.f32 %v2664_v19, 0.0 }
 0x489   :  { %2708 = vadd.xlane.f32.xlu1 %v2707_v8  ;;  %v3205_v8 = vld [vmem:[%s4516_s5] ss:$0 sm:$0xff]  ;;  %s3261_s5 = smov [#allocation5]  }
 0x48a   :  { %v2696_v43 = vmul.f32 %v3205_v8, %v2680_v20  ;;  %v2697_v40 = vmul.f32 %v3205_v8, %v2681_v48  ;;  %s2784_s20 = sshll.u32 %s3261_s5, 4  ;;  %s2785_s20 = int_to_ptr.vmem [resolvable:$true] %s2784_s20 }
 0x48c   :  { %v2518_v4 = vpop.xlane.xlu1 %2517  ;;  %v2743_v34 = vsel %vm1291_vm0, %v2697_v40, 0.0 }
 0x48d   :  { %2556 = vxpose.xlu2.b32.cont [5/16] (narrow) %v2518_v4, 8  ;;  %v2740_v4 = vsel %vm1291_vm0, %v2696_v43, 0.0 }
 0x491   :  { %2711 = vadd.xlane.f32.xlu1 %v2710_v58 }
 0x494   :  { %v2521_v37 = vpop.xlane.xlu1 %2520 }
 0x495   :  { %2557 = vxpose.xlu2.b32.cont [6/16] (narrow) %v2521_v37, 8 }
 0x499   :  { %2714 = vadd.xlane.f32.xlu1 %v2713_v17 }
 0x49c   :  { %v2524_v35 = vpop.xlane.xlu1 %2523 }
 0x49d   :  { %2558 = vxpose.xlu2.b32.cont [7/16] (narrow) %v2524_v35, 8 }
 0x4a1   :  { %2717 = vadd.xlane.f32.xlu1 %v2716_v41  ;;  %v1760_v41 = vpop.trf.xlu0 }
 0x4a2   :  { %1776 = vst [vmem:[#allocation5 + $0x2] sm:$0x1] %v1760_v41 }
 0x4a4   :  { %v2527_v9 = vpop.xlane.xlu1 %2526 }
 0x4a5   :  { %2559 = vxpose.xlu2.b32.cont [8/16] (narrow) %v2527_v9, 8 }
 0x4a9   :  { %2720 = vadd.xlane.f32.xlu1 %v2719_v36  ;;  %v2358_v27 = vpop.trf.xlu0 }
 0x4aa   :  { %2374 = vst [vmem:[#allocation5 + $0x5] sm:$0x1] %v2358_v27 }
 0x4ac   :  { %v2530_v26 = vpop.xlane.xlu1 %2529 }
 0x4ad   :  { %2560 = vxpose.xlu2.b32.cont [9/16] (narrow) %v2530_v26, 8 }
 0x4b1   :  { %2723 = vadd.xlane.f32.xlu1 %v2722_v18 }
 0x4b4   :  { %v2533_v62 = vpop.xlane.xlu1 %2532 }
 0x4b5   :  { %2561 = vxpose.xlu2.b32.cont [10/16] (narrow) %v2533_v62, 8 }
 0x4b9   :  { %2726 = vadd.xlane.f32.xlu1 %v2725_v29 }
 0x4bc   :  { %v2536_v47 = vpop.xlane.xlu1 %2535 }
 0x4bd   :  { %2562 = vxpose.xlu2.b32.cont [11/16] (narrow) %v2536_v47, 8 }
 0x4c1   :  { %2729 = vadd.xlane.f32.xlu1 %v2728_v33 }
 0x4c4   :  { %v2539_v60 = vpop.xlane.xlu1 %2538 }
 0x4c5   :  { %2563 = vxpose.xlu2.b32.cont [12/16] (narrow) %v2539_v60, 8 }
 0x4c9   :  { %2732 = vadd.xlane.f32.xlu1 %v2731_v3 }
 0x4cc   :  { %v2542_v49 = vpop.xlane.xlu1 %2541 }
 0x4cd   :  { %2564 = vxpose.xlu2.b32.cont [13/16] (narrow) %v2542_v49, 8 }
 0x4d1   :  { %2735 = vadd.xlane.f32.xlu1 %v2734_v15 }
 0x4d4   :  { %v2545_v10 = vpop.xlane.xlu1 %2544 }
 0x4d5   :  { %2565 = vxpose.xlu2.b32.cont [14/16] (narrow) %v2545_v10, 8 }
 0x4d9   :  { %2738 = vadd.xlane.f32.xlu1 %v2737_v54 }
 0x4dc   :  { %v2548_v5 = vpop.xlane.xlu1 %2547 }
 0x4dd   :  { %2566 = vxpose.xlu2.b32.cont [15/16] (narrow) %v2548_v5, 8 }
 0x4e1   :  { %2741 = vadd.xlane.f32.xlu1 %v2740_v4 }
 0x4e4   :  { %v2551_v24 = vpop.xlane.xlu1 %2550 }
 0x4e5   :  { %2567 = vxpose.xlu2.b32.end [16/16] (narrow) %v2551_v24, 8 }
 0x4e9   :  { %2744 = vadd.xlane.f32.xlu1 %v2743_v34 }
 0x4ec   :  { %v2700_v58 = vpop.xlane.xlu1 %2699 }
 0x4ed   :  { %2746 = vxpose.xlu0.b32.start [1/16] (narrow) %v2700_v58, 8 }
 0x4f4   :  { %v2706_v11 = vpop.xlane.xlu1 %2705 }
 0x4f5   :  { %2747 = vxpose.xlu0.b32.cont [2/16] (narrow) %v2703_v22, 8 }
 0x4fc   :  { %v2709_v37 = vpop.xlane.xlu1 %2708 }
 0x4fd   :  { %2748 = vxpose.xlu0.b32.cont [3/16] (narrow) %v2706_v11, 8 }
 0x504   :  { %v2712_v51 = vpop.xlane.xlu1 %2711 }
 0x505   :  { %2749 = vxpose.xlu0.b32.cont [4/16] (narrow) %v2709_v37, 8 }
 0x506   :  { %v2568_v61 = vpop.trf.xlu2 }
 0x507   :  { %2584 = vst [vmem:[#allocation5 + $0x6] sm:$0x1] %v2568_v61 }
 0x50c   :  { %v2715_v7 = vpop.xlane.xlu1 %2714 }
 0x50d   :  { %2750 = vxpose.xlu0.b32.cont [5/16] (narrow) %v2712_v51, 8 }
 0x514   :  { %v2718_v17 = vpop.xlane.xlu1 %2717 }
 0x515   :  { %2751 = vxpose.xlu0.b32.cont [6/16] (narrow) %v2715_v7, 8 }
 0x51c   :  { %v2721_v30 = vpop.xlane.xlu1 %2720 }
 0x51d   :  { %2752 = vxpose.xlu0.b32.cont [7/16] (narrow) %v2718_v17, 8 }
 0x524   :  { %v2724_v35 = vpop.xlane.xlu1 %2723 }
 0x525   :  { %2753 = vxpose.xlu0.b32.cont [8/16] (narrow) %v2721_v30, 8 }
 0x52c   :  { %v2727_v28 = vpop.xlane.xlu1 %2726 }
 0x52d   :  { %2754 = vxpose.xlu0.b32.cont [9/16] (narrow) %v2724_v35, 8 }
 0x534   :  { %v2730_v38 = vpop.xlane.xlu1 %2729 }
 0x535   :  { %2755 = vxpose.xlu0.b32.cont [10/16] (narrow) %v2727_v28, 8 }
 0x53c   :  { %v2733_v53 = vpop.xlane.xlu1 %2732 }
 0x53d   :  { %2756 = vxpose.xlu0.b32.cont [11/16] (narrow) %v2730_v38, 8 }
 0x544   :  { %v2736_v9 = vpop.xlane.xlu1 %2735 }
 0x545   :  { %2757 = vxpose.xlu0.b32.cont [12/16] (narrow) %v2733_v53, 8 }
 0x54c   :  { %v2739_v1 = vpop.xlane.xlu1 %2738 }
 0x54d   :  { %2758 = vxpose.xlu0.b32.cont [13/16] (narrow) %v2736_v9, 8 }
 0x554   :  { %v2742_v36 = vpop.xlane.xlu1 %2741 }
 0x555   :  { %2759 = vxpose.xlu0.b32.cont [14/16] (narrow) %v2739_v1, 8 }
 0x55c   :  { %v2745_v46 = vpop.xlane.xlu1 %2744 }
 0x55d   :  { %2760 = vxpose.xlu0.b32.cont [15/16] (narrow) %v2742_v36, 8 }
 0x565   :  { %2761 = vxpose.xlu0.b32.end [16/16] (narrow) %v2745_v46, 8 }
 0x591   :  { %v2762_v26 = vpop.trf.xlu0 }
 0x592   :  { %2778 = vst [vmem:[#allocation5 + $0x7] sm:$0x1] %v2762_v26 }
 0x593   :  { %2789 = dma.vmem_to_hbm [thread:$0]  %s2785_s20, 128, %s2787_s23, [#allocation4]  }
 0x594   :  { %3256 = dma.done.wait [#allocation4], 128  }
 0x595   :  { %3257 = vsyncadd [#allocation4], 4294967168 }
 0x596   :  { %2794 = vsyncpa [#allocation3], 1 }
 0x597   :  { %2795 = vsyncpa [#allocation4], 1 }

</bundles_post_ra>
